<compile_context>
chip_gen: v7x
topology: tpu7x:2x2x1
jax: 0.10.0
libtpu: 0.0.40
codegen_flags: <defaults>
</compile_context>

<pallas_src>
import functools

import numpy as np

import jax
import jax.numpy as jnp
from jax.experimental import pallas as pl
from jax.experimental.pallas import tpu as pltpu

D_MODEL = 32
N_HEADS = 4
D_HEAD = D_MODEL // N_HEADS
D_FF = 64
E_LAYERS = 2
LN_EPS = 1e-5  # torch.nn.LayerNorm default eps

PARAM_ORDER = (
    "w_all", "b_all", "bo",
    "w1", "b1", "w2", "b2",
    "g1", "be1", "g2", "be2",
    "gf", "bf",
)


# ----------------------------- kernel ---------------------------------------


def _layernorm(x, gamma, beta):
    # x: [R, D] f32; gamma/beta: [1, D]. Biased variance, matching nn.LayerNorm.
    mean = jnp.mean(x, axis=-1, keepdims=True)
    var = jnp.mean((x - mean) ** 2, axis=-1, keepdims=True)
    return (x - mean) * jax.lax.rsqrt(var + LN_EPS) * gamma + beta


def fused_encoder_kernel(
    x_ref,
    w_all_ref, b_all_ref, bo_ref,
    w1_ref, b1_ref, w2_ref, b2_ref,
    g1_ref, be1_ref, g2_ref, be2_ref,
    gf_ref, bf_ref,
    o_ref,
    *, n_heads, n_layers, bt, n_pad, n_valid,
):
    """All E_LAYERS EncoderLayers + final LayerNorm for a [bt, n_pad, d] block."""
    d = o_ref.shape[-1]
    e = d // n_heads

    # Token-flattened [bt*n, d] f32 slab (leading-dims-only reshape, free).
    x = x_ref[...].reshape(bt * n_pad, d).astype(jnp.float32)

    # Additive key mask for padded variates (built once; only when padding).
    if n_pad > n_valid:
        key_ids = jax.lax.broadcasted_iota(jnp.int32, (1, 1, n_pad), 2)
        key_bias = jnp.where(key_ids >= n_valid, -1e30, 0.0).astype(jnp.float32)
    else:
        key_bias = None

    for l in range(n_layers):          # static unroll, E_LAYERS = 2
        xb = x.astype(jnp.bfloat16)

        # --- one fused projection matmul per layer (bf16 MXU, f32 acc) -------
        # columns: [ q (d, scale folded) | k (d) | Wvo_0..Wvo_{H-1} (H*d) ]
        proj = jnp.dot(xb, w_all_ref[l],
                       preferred_element_type=jnp.float32) + b_all_ref[l]
        projb = proj.astype(jnp.bfloat16).reshape(bt, n_pad, (2 + n_heads) * d)

        attn = jnp.zeros((bt, n_pad, d), jnp.float32)
        for h in range(n_heads):       # static unroll (4)
            q = projb[:, :, h * e:(h + 1) * e]                       # [bt,n,e]
            k = projb[:, :, d + h * e: d + (h + 1) * e]              # [bt,n,e]
            vo = projb[:, :, 2 * d + h * d: 2 * d + (h + 1) * d]     # [bt,n,d]

            # FullAttention: softmax(Q K^T / sqrt(E)) V  (scale folded into Q).
            s = jnp.einsum("bqe,bke->bqk", q, k,
                           preferred_element_type=jnp.float32)       # [bt,n,n]
            if key_bias is not None:
                s = s + key_bias                                     # mask pad keys
            s = s - jnp.max(s, axis=-1, keepdims=True)
            p = jnp.exp(s)                                           # unnormalized
            rs = jnp.sum(p, axis=-1, keepdims=True)
            u = jnp.einsum("bqk,bkf->bqf", p.astype(jnp.bfloat16), vo,
                           preferred_element_type=jnp.float32)       # [bt,n,d]
            # Normalize AFTER PV: reciprocal multiply on the d-lane tile only.
            attn = attn + u * pl.reciprocal(rs, approx=True)

        # --- residual + norm1 (out-projection bias bo added here) ------------
        x_attn = x + attn.reshape(bt * n_pad, d) + bo_ref[l]
        x1 = _layernorm(x_attn, g1_ref[l], be1_ref[l])

        # --- position-wise FFN (k=1 Conv1d pair as matmuls), activation=relu -
        # TODO(synk): configs.activation assumed 'relu'; swap jnp.maximum for
        # jax.nn.gelu if the config uses 'gelu'.
        y = jnp.dot(x1.astype(jnp.bfloat16), w1_ref[l],
                    preferred_element_type=jnp.float32) + b1_ref[l]
        y = jnp.maximum(y, 0.0)
        y = jnp.dot(y.astype(jnp.bfloat16), w2_ref[l],
                    preferred_element_type=jnp.float32) + b2_ref[l]

        # --- residual + norm2 -------------------------------------------------
        x = _layernorm(x1 + y, g2_ref[l], be2_ref[l])

    # --- Encoder's trailing nn.LayerNorm(d_model) -----------------------------
    out = _layernorm(x, gf_ref[...], bf_ref[...])
    o_ref[...] = out.reshape(bt, n_pad, d).astype(o_ref.dtype)
    # TODO(synk): output last dim is D=32 (<128 lanes) -> masked stores; a
    # lane-dense [bt, n*d] packing would need an in-kernel minor-dim relayout
    # (unsupported as a free shape_cast for d=32), so it is left as follow-up.


# ----------------------------- wrappers --------------------------------------


def _num_tensorcores():
    """v7x exposes 2 TensorCores per chip; v5e/v6e have 1."""
    try:
        kind = jax.devices()[0].device_kind.lower()
        if "v7" in kind:
            return 2
    except Exception:
        pass
    return 1


def _pick_block_batch(b, n_pad, num_tc):
    """Batch rows per grid step.

    Single-TC chips (v5e/v6e): one grid step (full batch) -- extra steps are
    pure serial-loop overhead.  v7x: at least `num_tc` steps so the batch axis
    can shard across cores.  Always bound per-step live intermediates
    (score/prob tiles + activations) to ~24 MiB (under the explicit 48 MiB
    vmem_limit_bytes on every generation)."""
    per_row = 4 * n_pad * (3 * n_pad + 256)      # bytes, generous estimate
    budget = 24 << 20
    bt = max(1, min(b, budget // max(per_row, 1)))
    if num_tc > 1 and b > 1:
        bt = min(bt, max(1, pl.cdiv(b, num_tc)))
    return bt


def _rep_spec(p):
    """BlockSpec for a parameter replicated (resident) across the batch grid."""
    nd = p.ndim
    return pl.BlockSpec(p.shape, lambda i, _nd=nd: (0,) * _nd)


def run_encoder(x, params):
    b, n, d = x.shape
    assert d == D_MODEL
    n_pad = max(8, -(-n // 8) * 8)           # sublane multiple of 8
    num_tc = _num_tensorcores()
    bt = _pick_block_batch(b, n_pad, num_tc)
    grid_b = pl.cdiv(b, bt)
    b_pad = grid_b * bt

    xp = x.astype(jnp.float32)
    if b_pad != b or n_pad != n:
        xp = jnp.pad(xp, ((0, b_pad - b), (0, n_pad - n), (0, 0)))

    plist = [params[k] for k in PARAM_ORDER]
    kernel = functools.partial(
        fused_encoder_kernel, n_heads=N_HEADS, n_layers=E_LAYERS,
        bt=bt, n_pad=n_pad, n_valid=n)

    out = pl.pallas_call(
        kernel,
        grid=(grid_b,),
        in_specs=[pl.BlockSpec((bt, n_pad, d), lambda i: (i, 0, 0))]
                 + [_rep_spec(p) for p in plist],
        out_specs=pl.BlockSpec((bt, n_pad, d), lambda i: (i, 0, 0)),
        out_shape=jax.ShapeDtypeStruct((b_pad, n_pad, d), jnp.float32),
        compiler_params=pltpu.CompilerParams(
            dimension_semantics=("parallel",),
            vmem_limit_bytes=48 << 20),
        # TODO(synk): on v7x, verify "parallel" actually shards the batch grid
        # across both TensorCores; otherwise switch to pltpu.CORE_PARALLEL.
    )(xp, *plist)
    return out[:b, :n, :]


def itransformer_forward(x_enc, x_mark_enc, params, subject_ids=None, modal="eeg"):
    """Mirrors iTransformer.forward: encoder(x_enc) then slice variates by modal.

    x_mark_enc / subject_ids are accepted but unused, exactly like the PyTorch
    forward (the embedding branch is never invoked there)."""
    del x_mark_enc, subject_ids
    enc_out = run_encoder(x_enc.astype(jnp.float32), params)
    # attns is a list of None when output_attention=False; not returned here.
    if modal == "eeg":
        enc_out = enc_out[:, :54, :]
    elif modal == "meg":
        enc_out = enc_out[:, :262, :]
    elif modal == "fmri":
        enc_out = enc_out[:, :8, :]
    return enc_out


# ----------------------------- parameters ------------------------------------


def init_params(key):
    """Deterministic synthetic parameters, pre-folded for the kernel.

    Linear weights are stored transposed (in, out).  Per layer:
      w_all = [Wq^T * scale | Wk^T | Wv_0^T@Wo_0^T | ... | Wv_3^T@Wo_3^T]  bf16 [32,192]
      b_all = [bq * scale   | bk   | bv_h @ Wo_h^T ...]                     f32  [1,192]
    scale = 1/sqrt(D_HEAD) is FullAttention's default score scale; folding it
    into Q and folding Wvo_h = Wv_h @ Wo_h are mathematically exact (folded
    product stored in bf16).  Conv1d k=1 weights stored as (in, out) matrices.
    Dropout layers are identity at inference and are omitted."""
    def normal(k, shape, scl=0.02):
        return scl * jax.random.normal(k, shape, jnp.float32)

    H, E = N_HEADS, D_HEAD
    scale = 1.0 / float(E) ** 0.5

    acc = {name: [] for name in PARAM_ORDER if name not in ("gf", "bf")}
    for _ in range(E_LAYERS):
        key, *ks = jax.random.split(key, 7)
        wq = normal(ks[0], (D_MODEL, D_MODEL))   # == nn.Linear weight.T
        wk = normal(ks[1], (D_MODEL, D_MODEL))
        wv = normal(ks[2], (D_MODEL, D_MODEL))
        wo = normal(ks[3], (D_MODEL, D_MODEL))   # out_projection weight.T
        w1 = normal(ks[4], (D_MODEL, D_FF))      # conv1.weight[:, :, 0].T
        w2 = normal(ks[5], (D_FF, D_MODEL))      # conv2.weight[:, :, 0].T
        bq = jnp.zeros((D_MODEL,), jnp.float32)
        bk = jnp.zeros((D_MODEL,), jnp.float32)
        bv = jnp.zeros((D_MODEL,), jnp.float32)
        bo = jnp.zeros((D_MODEL,), jnp.float32)

        wvo = [wv[:, h * E:(h + 1) * E] @ wo[h * E:(h + 1) * E, :]
               for h in range(H)]                                  # H x [32,32]
        bvo = [bv[h * E:(h + 1) * E] @ wo[h * E:(h + 1) * E, :]
               for h in range(H)]                                  # H x [32]

        acc["w_all"].append(jnp.concatenate([wq * scale, wk] + wvo, axis=1))
        acc["b_all"].append(
            jnp.concatenate([bq * scale, bk] + bvo, axis=0)[None, :])
        acc["bo"].append(bo[None, :])
        acc["w1"].append(w1)
        acc["b1"].append(jnp.zeros((1, D_FF), jnp.float32))
        acc["w2"].append(w2)
        acc["b2"].append(jnp.zeros((1, D_MODEL), jnp.float32))
        acc["g1"].append(jnp.ones((1, D_MODEL), jnp.float32))
        acc["be1"].append(jnp.zeros((1, D_MODEL), jnp.float32))
        acc["g2"].append(jnp.ones((1, D_MODEL), jnp.float32))
        acc["be2"].append(jnp.zeros((1, D_MODEL), jnp.float32))

    bf16_keys = {"w_all", "w1", "w2"}            # bf16-native MXU on v5e/v6e/v7x
    params = {}
    for name, vals in acc.items():
        stacked = jnp.stack(vals, axis=0)
        if name in bf16_keys:
            stacked = stacked.astype(jnp.bfloat16)
        params[name] = stacked
    params["gf"] = jnp.ones((1, D_MODEL), jnp.float32)
    params["bf"] = jnp.zeros((1, D_MODEL), jnp.float32)
    return params


# ----------------------------- reference (for tolerance check) ----------------


def encoder_reference(x, params):
    """Pure-JAX mirror of the kernel math (same folded params / bf16 cast
    points, exact softmax divide); used only for the tolerance check."""
    b, n, d = x.shape
    e = D_HEAD
    x = x.astype(jnp.float32)

    def ln(v, g, bb):
        m = jnp.mean(v, -1, keepdims=True)
        var = jnp.mean((v - m) ** 2, -1, keepdims=True)
        return (v - m) * jax.lax.rsqrt(var + LN_EPS) * g + bb

    for l in range(E_LAYERS):
        xb = x.astype(jnp.bfloat16)
        proj = jnp.einsum("bnd,df->bnf", xb, params["w_all"][l],
                          preferred_element_type=jnp.float32) + params["b_all"][l]
        projb = proj.astype(jnp.bfloat16)
        attn = jnp.zeros((b, n, d), jnp.float32)
        for h in range(N_HEADS):
            q = projb[..., h * e:(h + 1) * e]
            k = projb[..., d + h * e: d + (h + 1) * e]
            vo = projb[..., 2 * d + h * d: 2 * d + (h + 1) * d]
            s = jnp.einsum("bqe,bke->bqk", q, k,
                           preferred_element_type=jnp.float32)
            s = s - jnp.max(s, -1, keepdims=True)
            p = jnp.exp(s)
            rs = jnp.sum(p, -1, keepdims=True)
            u = jnp.einsum("bqk,bkf->bqf", p.astype(jnp.bfloat16), vo,
                           preferred_element_type=jnp.float32)
            attn = attn + u / rs
        x1 = ln(x + attn + params["bo"][l], params["g1"][l], params["be1"][l])
        y = jnp.einsum("bnd,df->bnf", x1.astype(jnp.bfloat16), params["w1"][l],
                       preferred_element_type=jnp.float32) + params["b1"][l]
        y = jnp.maximum(y, 0.0)
        y = jnp.einsum("bnf,fd->bnd", y.astype(jnp.bfloat16), params["w2"][l],
                       preferred_element_type=jnp.float32) + params["b2"][l]
        x = ln(x1 + y, params["g2"][l], params["be2"][l])
    return ln(x, params["gf"], params["bf"])


if __name__ == "__main__":
    key = jax.random.PRNGKey(0)
    key, kx, kp = jax.random.split(key, 3)

    B, N = 2, 16  # batch, number of variates/tokens
    x_enc = jax.random.normal(kx, (B, N, D_MODEL), jnp.float32)
    x_mark_enc = jnp.zeros((B, N, 4), jnp.float32)  # unused, as in PyTorch forward

    params = init_params(kp)

    out = itransformer_forward(x_enc, x_mark_enc, params, modal="eeg")
    jax.block_until_ready(out)
    assert out.shape == (B, min(54, N), D_MODEL)

    ref = encoder_reference(x_enc, params)[:, :min(54, N), :]
    np.testing.assert_allclose(np.asarray(out), np.asarray(ref), atol=5e-2, rtol=0)
    print("KERNEL_OK")
</pallas_src>

<mosaic_0001>
module attributes {stable_mosaic.version = 11 : i64} {
  func.func @fused_encoder_kernel(%arg0: i32, %arg1: memref<2x16x32xf32, #tpu.memory_space<vmem>>, %arg2: memref<2x32x192xbf16, #tpu.memory_space<vmem>>, %arg3: memref<2x1x192xf32, #tpu.memory_space<vmem>>, %arg4: memref<2x1x32xf32, #tpu.memory_space<vmem>>, %arg5: memref<2x32x64xbf16, #tpu.memory_space<vmem>>, %arg6: memref<2x1x64xf32, #tpu.memory_space<vmem>>, %arg7: memref<2x64x32xbf16, #tpu.memory_space<vmem>>, %arg8: memref<2x1x32xf32, #tpu.memory_space<vmem>>, %arg9: memref<2x1x32xf32, #tpu.memory_space<vmem>>, %arg10: memref<2x1x32xf32, #tpu.memory_space<vmem>>, %arg11: memref<2x1x32xf32, #tpu.memory_space<vmem>>, %arg12: memref<2x1x32xf32, #tpu.memory_space<vmem>>, %arg13: memref<1x32xf32, #tpu.memory_space<vmem>>, %arg14: memref<1x32xf32, #tpu.memory_space<vmem>>, %arg15: memref<2x16x32xf32, #tpu.memory_space<vmem>>) attributes {dimension_semantics = [#tpu.dimension_semantics<parallel>], iteration_bounds = array<i64: 1>, scalar_prefetch = 0 : i64, scratch_operands = 0 : i64, tpu.core_type = #tpu.core_type<tc>, window_params = [{transform_indices = @transform_0, window_bounds = array<i64: 2, 16, 32>}, {pipeline_mode = #tpu.pipeline_mode<synchronous>, transform_indices = @transform_1, window_bounds = array<i64: 2, 32, 192>}, {pipeline_mode = #tpu.pipeline_mode<synchronous>, transform_indices = @transform_2, window_bounds = array<i64: 2, 1, 192>}, {pipeline_mode = #tpu.pipeline_mode<synchronous>, transform_indices = @transform_3, window_bounds = array<i64: 2, 1, 32>}, {pipeline_mode = #tpu.pipeline_mode<synchronous>, transform_indices = @transform_4, window_bounds = array<i64: 2, 32, 64>}, {pipeline_mode = #tpu.pipeline_mode<synchronous>, transform_indices = @transform_5, window_bounds = array<i64: 2, 1, 64>}, {pipeline_mode = #tpu.pipeline_mode<synchronous>, transform_indices = @transform_6, window_bounds = array<i64: 2, 64, 32>}, {pipeline_mode = #tpu.pipeline_mode<synchronous>, transform_indices = @transform_7, window_bounds = array<i64: 2, 1, 32>}, {pipeline_mode = #tpu.pipeline_mode<synchronous>, transform_indices = @transform_8, window_bounds = array<i64: 2, 1, 32>}, {pipeline_mode = #tpu.pipeline_mode<synchronous>, transform_indices = @transform_9, window_bounds = array<i64: 2, 1, 32>}, {pipeline_mode = #tpu.pipeline_mode<synchronous>, transform_indices = @transform_10, window_bounds = array<i64: 2, 1, 32>}, {pipeline_mode = #tpu.pipeline_mode<synchronous>, transform_indices = @transform_11, window_bounds = array<i64: 2, 1, 32>}, {pipeline_mode = #tpu.pipeline_mode<synchronous>, transform_indices = @transform_12, window_bounds = array<i64: 1, 32>}, {pipeline_mode = #tpu.pipeline_mode<synchronous>, transform_indices = @transform_13, window_bounds = array<i64: 1, 32>}, {transform_indices = @transform_14, window_bounds = array<i64: 2, 16, 32>}]} {
    %c0 = arith.constant 0 : index
    %c0_0 = arith.constant 0 : index
    %c0_1 = arith.constant 0 : index
    %0 = vector.load %arg1[%c0, %c0_0, %c0_1] : memref<2x16x32xf32, #tpu.memory_space<vmem>>, vector<2x16x32xf32>
    %1 = vector.shape_cast %0 : vector<2x16x32xf32> to vector<32x32xf32>
    %2 = arith.truncf %1 : vector<32x32xf32> to vector<32x32xbf16>
    %c0_2 = arith.constant 0 : index
    %c0_3 = arith.constant 0 : index
    %c0_4 = arith.constant 0 : index
    %3 = vector.load %arg2[%c0_2, %c0_3, %c0_4] : memref<2x32x192xbf16, #tpu.memory_space<vmem>>, vector<1x32x192xbf16>
    %4 = vector.shape_cast %3 : vector<1x32x192xbf16> to vector<32x192xbf16>
    %cst = arith.constant dense<0.000000e+00> : vector<32x192xf32>
    %5 = tpu.matmul %2, %4, %cst {dimension_numbers = #tpu.dot_dimension_numbers<[1], [0], [0], [1], [0, 0, 1, 1], [], []>} : vector<32x32xbf16>, vector<32x192xbf16>, vector<32x192xf32> -> vector<32x192xf32>
    %c0_5 = arith.constant 0 : index
    %c0_6 = arith.constant 0 : index
    %c0_7 = arith.constant 0 : index
    %6 = vector.load %arg3[%c0_5, %c0_6, %c0_7] : memref<2x1x192xf32, #tpu.memory_space<vmem>>, vector<1x1x192xf32>
    %7 = vector.shape_cast %6 : vector<1x1x192xf32> to vector<1x192xf32>
    %8 = vector.broadcast %7 : vector<1x192xf32> to vector<32x192xf32>
    %9 = arith.addf %5, %8 : vector<32x192xf32>
    %10 = arith.truncf %9 : vector<32x192xf32> to vector<32x192xbf16>
    %11 = vector.shape_cast %10 : vector<32x192xbf16> to vector<2x16x192xbf16>
    %cst_8 = arith.constant 0.000000e+00 : f32
    %12 = vector.broadcast %cst_8 : f32 to vector<2x16x32xf32>
    %13 = vector.extract_strided_slice %11 {offsets = [0, 0, 0], sizes = [2, 16, 8], strides = [1, 1, 1]} : vector<2x16x192xbf16> to vector<2x16x8xbf16>
    %14 = vector.extract_strided_slice %11 {offsets = [0, 0, 32], sizes = [2, 16, 8], strides = [1, 1, 1]} : vector<2x16x192xbf16> to vector<2x16x8xbf16>
    %15 = vector.extract_strided_slice %11 {offsets = [0, 0, 64], sizes = [2, 16, 32], strides = [1, 1, 1]} : vector<2x16x192xbf16> to vector<2x16x32xbf16>
    "tpu.trace_start"() <{level = 10 : i32, message = "bqe,bke->bqk"}> : () -> ()
    %cst_9 = arith.constant dense<0.000000e+00> : vector<2x16x16xf32>
    %16 = tpu.matmul %13, %14, %cst_9 {dimension_numbers = #tpu.dot_dimension_numbers<[2], [2], [1], [1], [0, 0, 0, 1, 1, 1], [0], [0]>} : vector<2x16x8xbf16>, vector<2x16x8xbf16>, vector<2x16x16xf32> -> vector<2x16x16xf32>
    "tpu.trace_stop"() : () -> ()
    %cst_10 = arith.constant dense<0xFF800000> : vector<2x16xf32>
    %17 = vector.multi_reduction <maximumf>, %16, %cst_10 [2] : vector<2x16x16xf32> to vector<2x16xf32>
    %18 = vector.shape_cast %17 : vector<2x16xf32> to vector<2x16x1xf32>
    %19 = vector.broadcast %18 : vector<2x16x1xf32> to vector<2x16x16xf32>
    %20 = arith.subf %16, %19 : vector<2x16x16xf32>
    %21 = math.exp %20 : vector<2x16x16xf32>
    %cst_11 = arith.constant dense<0.000000e+00> : vector<2x16xf32>
    %22 = vector.multi_reduction <add>, %21, %cst_11 [2] : vector<2x16x16xf32> to vector<2x16xf32>
    %23 = vector.shape_cast %22 : vector<2x16xf32> to vector<2x16x1xf32>
    %24 = arith.truncf %21 : vector<2x16x16xf32> to vector<2x16x16xbf16>
    "tpu.trace_start"() <{level = 10 : i32, message = "bqk,bkf->bqf"}> : () -> ()
    %cst_12 = arith.constant dense<0.000000e+00> : vector<2x16x32xf32>
    %25 = tpu.matmul %24, %15, %cst_12 {dimension_numbers = #tpu.dot_dimension_numbers<[2], [1], [1], [2], [0, 0, 0, 1, 1, 2], [0], [0]>} : vector<2x16x16xbf16>, vector<2x16x32xbf16>, vector<2x16x32xf32> -> vector<2x16x32xf32>
    "tpu.trace_stop"() : () -> ()
    %26 = tpu.reciprocal %23 {approx = true} : vector<2x16x1xf32> -> vector<2x16x1xf32>
    %27 = vector.broadcast %26 : vector<2x16x1xf32> to vector<2x16x32xf32>
    %28 = arith.mulf %25, %27 : vector<2x16x32xf32>
    %29 = arith.addf %12, %28 : vector<2x16x32xf32>
    %30 = vector.extract_strided_slice %11 {offsets = [0, 0, 8], sizes = [2, 16, 8], strides = [1, 1, 1]} : vector<2x16x192xbf16> to vector<2x16x8xbf16>
    %31 = vector.extract_strided_slice %11 {offsets = [0, 0, 40], sizes = [2, 16, 8], strides = [1, 1, 1]} : vector<2x16x192xbf16> to vector<2x16x8xbf16>
    %32 = vector.extract_strided_slice %11 {offsets = [0, 0, 96], sizes = [2, 16, 32], strides = [1, 1, 1]} : vector<2x16x192xbf16> to vector<2x16x32xbf16>
    "tpu.trace_start"() <{level = 10 : i32, message = "bqe,bke->bqk"}> : () -> ()
    %cst_13 = arith.constant dense<0.000000e+00> : vector<2x16x16xf32>
    %33 = tpu.matmul %30, %31, %cst_13 {dimension_numbers = #tpu.dot_dimension_numbers<[2], [2], [1], [1], [0, 0, 0, 1, 1, 1], [0], [0]>} : vector<2x16x8xbf16>, vector<2x16x8xbf16>, vector<2x16x16xf32> -> vector<2x16x16xf32>
    "tpu.trace_stop"() : () -> ()
    %cst_14 = arith.constant dense<0xFF800000> : vector<2x16xf32>
    %34 = vector.multi_reduction <maximumf>, %33, %cst_14 [2] : vector<2x16x16xf32> to vector<2x16xf32>
    %35 = vector.shape_cast %34 : vector<2x16xf32> to vector<2x16x1xf32>
    %36 = vector.broadcast %35 : vector<2x16x1xf32> to vector<2x16x16xf32>
    %37 = arith.subf %33, %36 : vector<2x16x16xf32>
    %38 = math.exp %37 : vector<2x16x16xf32>
    %cst_15 = arith.constant dense<0.000000e+00> : vector<2x16xf32>
    %39 = vector.multi_reduction <add>, %38, %cst_15 [2] : vector<2x16x16xf32> to vector<2x16xf32>
    %40 = vector.shape_cast %39 : vector<2x16xf32> to vector<2x16x1xf32>
    %41 = arith.truncf %38 : vector<2x16x16xf32> to vector<2x16x16xbf16>
    "tpu.trace_start"() <{level = 10 : i32, message = "bqk,bkf->bqf"}> : () -> ()
    %cst_16 = arith.constant dense<0.000000e+00> : vector<2x16x32xf32>
    %42 = tpu.matmul %41, %32, %cst_16 {dimension_numbers = #tpu.dot_dimension_numbers<[2], [1], [1], [2], [0, 0, 0, 1, 1, 2], [0], [0]>} : vector<2x16x16xbf16>, vector<2x16x32xbf16>, vector<2x16x32xf32> -> vector<2x16x32xf32>
    "tpu.trace_stop"() : () -> ()
    %43 = tpu.reciprocal %40 {approx = true} : vector<2x16x1xf32> -> vector<2x16x1xf32>
    %44 = vector.broadcast %43 : vector<2x16x1xf32> to vector<2x16x32xf32>
    %45 = arith.mulf %42, %44 : vector<2x16x32xf32>
    %46 = arith.addf %29, %45 : vector<2x16x32xf32>
    %47 = vector.extract_strided_slice %11 {offsets = [0, 0, 16], sizes = [2, 16, 8], strides = [1, 1, 1]} : vector<2x16x192xbf16> to vector<2x16x8xbf16>
    %48 = vector.extract_strided_slice %11 {offsets = [0, 0, 48], sizes = [2, 16, 8], strides = [1, 1, 1]} : vector<2x16x192xbf16> to vector<2x16x8xbf16>
    %49 = vector.extract_strided_slice %11 {offsets = [0, 0, 128], sizes = [2, 16, 32], strides = [1, 1, 1]} : vector<2x16x192xbf16> to vector<2x16x32xbf16>
    "tpu.trace_start"() <{level = 10 : i32, message = "bqe,bke->bqk"}> : () -> ()
    %cst_17 = arith.constant dense<0.000000e+00> : vector<2x16x16xf32>
    %50 = tpu.matmul %47, %48, %cst_17 {dimension_numbers = #tpu.dot_dimension_numbers<[2], [2], [1], [1], [0, 0, 0, 1, 1, 1], [0], [0]>} : vector<2x16x8xbf16>, vector<2x16x8xbf16>, vector<2x16x16xf32> -> vector<2x16x16xf32>
    "tpu.trace_stop"() : () -> ()
    %cst_18 = arith.constant dense<0xFF800000> : vector<2x16xf32>
    %51 = vector.multi_reduction <maximumf>, %50, %cst_18 [2] : vector<2x16x16xf32> to vector<2x16xf32>
    %52 = vector.shape_cast %51 : vector<2x16xf32> to vector<2x16x1xf32>
    %53 = vector.broadcast %52 : vector<2x16x1xf32> to vector<2x16x16xf32>
    %54 = arith.subf %50, %53 : vector<2x16x16xf32>
    %55 = math.exp %54 : vector<2x16x16xf32>
    %cst_19 = arith.constant dense<0.000000e+00> : vector<2x16xf32>
    %56 = vector.multi_reduction <add>, %55, %cst_19 [2] : vector<2x16x16xf32> to vector<2x16xf32>
    %57 = vector.shape_cast %56 : vector<2x16xf32> to vector<2x16x1xf32>
    %58 = arith.truncf %55 : vector<2x16x16xf32> to vector<2x16x16xbf16>
    "tpu.trace_start"() <{level = 10 : i32, message = "bqk,bkf->bqf"}> : () -> ()
    %cst_20 = arith.constant dense<0.000000e+00> : vector<2x16x32xf32>
    %59 = tpu.matmul %58, %49, %cst_20 {dimension_numbers = #tpu.dot_dimension_numbers<[2], [1], [1], [2], [0, 0, 0, 1, 1, 2], [0], [0]>} : vector<2x16x16xbf16>, vector<2x16x32xbf16>, vector<2x16x32xf32> -> vector<2x16x32xf32>
    "tpu.trace_stop"() : () -> ()
    %60 = tpu.reciprocal %57 {approx = true} : vector<2x16x1xf32> -> vector<2x16x1xf32>
    %61 = vector.broadcast %60 : vector<2x16x1xf32> to vector<2x16x32xf32>
    %62 = arith.mulf %59, %61 : vector<2x16x32xf32>
    %63 = arith.addf %46, %62 : vector<2x16x32xf32>
    %64 = vector.extract_strided_slice %11 {offsets = [0, 0, 24], sizes = [2, 16, 8], strides = [1, 1, 1]} : vector<2x16x192xbf16> to vector<2x16x8xbf16>
    %65 = vector.extract_strided_slice %11 {offsets = [0, 0, 56], sizes = [2, 16, 8], strides = [1, 1, 1]} : vector<2x16x192xbf16> to vector<2x16x8xbf16>
    %66 = vector.extract_strided_slice %11 {offsets = [0, 0, 160], sizes = [2, 16, 32], strides = [1, 1, 1]} : vector<2x16x192xbf16> to vector<2x16x32xbf16>
    "tpu.trace_start"() <{level = 10 : i32, message = "bqe,bke->bqk"}> : () -> ()
    %cst_21 = arith.constant dense<0.000000e+00> : vector<2x16x16xf32>
    %67 = tpu.matmul %64, %65, %cst_21 {dimension_numbers = #tpu.dot_dimension_numbers<[2], [2], [1], [1], [0, 0, 0, 1, 1, 1], [0], [0]>} : vector<2x16x8xbf16>, vector<2x16x8xbf16>, vector<2x16x16xf32> -> vector<2x16x16xf32>
    "tpu.trace_stop"() : () -> ()
    %cst_22 = arith.constant dense<0xFF800000> : vector<2x16xf32>
    %68 = vector.multi_reduction <maximumf>, %67, %cst_22 [2] : vector<2x16x16xf32> to vector<2x16xf32>
    %69 = vector.shape_cast %68 : vector<2x16xf32> to vector<2x16x1xf32>
    %70 = vector.broadcast %69 : vector<2x16x1xf32> to vector<2x16x16xf32>
    %71 = arith.subf %67, %70 : vector<2x16x16xf32>
    %72 = math.exp %71 : vector<2x16x16xf32>
    %cst_23 = arith.constant dense<0.000000e+00> : vector<2x16xf32>
    %73 = vector.multi_reduction <add>, %72, %cst_23 [2] : vector<2x16x16xf32> to vector<2x16xf32>
    %74 = vector.shape_cast %73 : vector<2x16xf32> to vector<2x16x1xf32>
    %75 = arith.truncf %72 : vector<2x16x16xf32> to vector<2x16x16xbf16>
    "tpu.trace_start"() <{level = 10 : i32, message = "bqk,bkf->bqf"}> : () -> ()
    %cst_24 = arith.constant dense<0.000000e+00> : vector<2x16x32xf32>
    %76 = tpu.matmul %75, %66, %cst_24 {dimension_numbers = #tpu.dot_dimension_numbers<[2], [1], [1], [2], [0, 0, 0, 1, 1, 2], [0], [0]>} : vector<2x16x16xbf16>, vector<2x16x32xbf16>, vector<2x16x32xf32> -> vector<2x16x32xf32>
    "tpu.trace_stop"() : () -> ()
    %77 = tpu.reciprocal %74 {approx = true} : vector<2x16x1xf32> -> vector<2x16x1xf32>
    %78 = vector.broadcast %77 : vector<2x16x1xf32> to vector<2x16x32xf32>
    %79 = arith.mulf %76, %78 : vector<2x16x32xf32>
    %80 = arith.addf %63, %79 : vector<2x16x32xf32>
    %81 = vector.shape_cast %80 : vector<2x16x32xf32> to vector<32x32xf32>
    %82 = arith.addf %1, %81 : vector<32x32xf32>
    %c0_25 = arith.constant 0 : index
    %c0_26 = arith.constant 0 : index
    %c0_27 = arith.constant 0 : index
    %83 = vector.load %arg4[%c0_25, %c0_26, %c0_27] : memref<2x1x32xf32, #tpu.memory_space<vmem>>, vector<1x1x32xf32>
    %84 = vector.shape_cast %83 : vector<1x1x32xf32> to vector<1x32xf32>
    %85 = vector.broadcast %84 : vector<1x32xf32> to vector<32x32xf32>
    %86 = arith.addf %82, %85 : vector<32x32xf32>
    %c0_28 = arith.constant 0 : index
    %c0_29 = arith.constant 0 : index
    %c0_30 = arith.constant 0 : index
    %87 = vector.load %arg9[%c0_28, %c0_29, %c0_30] : memref<2x1x32xf32, #tpu.memory_space<vmem>>, vector<1x1x32xf32>
    %88 = vector.shape_cast %87 : vector<1x1x32xf32> to vector<1x32xf32>
    %c0_31 = arith.constant 0 : index
    %c0_32 = arith.constant 0 : index
    %c0_33 = arith.constant 0 : index
    %89 = vector.load %arg10[%c0_31, %c0_32, %c0_33] : memref<2x1x32xf32, #tpu.memory_space<vmem>>, vector<1x1x32xf32>
    %90 = vector.shape_cast %89 : vector<1x1x32xf32> to vector<1x32xf32>
    %cst_34 = arith.constant dense<0.000000e+00> : vector<32xf32>
    %91 = vector.multi_reduction <add>, %86, %cst_34 [1] : vector<32x32xf32> to vector<32xf32>
    %92 = vector.shape_cast %91 : vector<32xf32> to vector<32x1xf32>
    %cst_35 = arith.constant 3.200000e+01 : f32
    %93 = vector.broadcast %cst_35 : f32 to vector<32x1xf32>
    %94 = arith.divf %92, %93 : vector<32x1xf32>
    %95 = vector.broadcast %94 : vector<32x1xf32> to vector<32x32xf32>
    %96 = arith.subf %86, %95 : vector<32x32xf32>
    %97 = arith.mulf %96, %96 : vector<32x32xf32>
    %cst_36 = arith.constant dense<0.000000e+00> : vector<32xf32>
    %98 = vector.multi_reduction <add>, %97, %cst_36 [1] : vector<32x32xf32> to vector<32xf32>
    %99 = vector.shape_cast %98 : vector<32xf32> to vector<32x1xf32>
    %cst_37 = arith.constant 3.200000e+01 : f32
    %100 = vector.broadcast %cst_37 : f32 to vector<32x1xf32>
    %101 = arith.divf %99, %100 : vector<32x1xf32>
    %102 = vector.broadcast %94 : vector<32x1xf32> to vector<32x32xf32>
    %103 = arith.subf %86, %102 : vector<32x32xf32>
    %cst_38 = arith.constant 9.99999974E-6 : f32
    %104 = vector.broadcast %cst_38 : f32 to vector<32x1xf32>
    %105 = arith.addf %101, %104 : vector<32x1xf32>
    %106 = math.rsqrt %105 : vector<32x1xf32>
    %107 = vector.broadcast %106 : vector<32x1xf32> to vector<32x32xf32>
    %108 = arith.mulf %103, %107 : vector<32x32xf32>
    %109 = vector.broadcast %88 : vector<1x32xf32> to vector<32x32xf32>
    %110 = arith.mulf %108, %109 : vector<32x32xf32>
    %111 = vector.broadcast %90 : vector<1x32xf32> to vector<32x32xf32>
    %112 = arith.addf %110, %111 : vector<32x32xf32>
    %113 = arith.truncf %112 : vector<32x32xf32> to vector<32x32xbf16>
    %c0_39 = arith.constant 0 : index
    %c0_40 = arith.constant 0 : index
    %c0_41 = arith.constant 0 : index
    %114 = vector.load %arg5[%c0_39, %c0_40, %c0_41] : memref<2x32x64xbf16, #tpu.memory_space<vmem>>, vector<1x32x64xbf16>
    %115 = vector.shape_cast %114 : vector<1x32x64xbf16> to vector<32x64xbf16>
    %cst_42 = arith.constant dense<0.000000e+00> : vector<32x64xf32>
    %116 = tpu.matmul %113, %115, %cst_42 {dimension_numbers = #tpu.dot_dimension_numbers<[1], [0], [0], [1], [0, 0, 1, 1], [], []>} : vector<32x32xbf16>, vector<32x64xbf16>, vector<32x64xf32> -> vector<32x64xf32>
    %c0_43 = arith.constant 0 : index
    %c0_44 = arith.constant 0 : index
    %c0_45 = arith.constant 0 : index
    %117 = vector.load %arg6[%c0_43, %c0_44, %c0_45] : memref<2x1x64xf32, #tpu.memory_space<vmem>>, vector<1x1x64xf32>
    %118 = vector.shape_cast %117 : vector<1x1x64xf32> to vector<1x64xf32>
    %119 = vector.broadcast %118 : vector<1x64xf32> to vector<32x64xf32>
    %120 = arith.addf %116, %119 : vector<32x64xf32>
    %cst_46 = arith.constant 0.000000e+00 : f32
    %121 = vector.broadcast %cst_46 : f32 to vector<32x64xf32>
    %122 = arith.maximumf %120, %121 : vector<32x64xf32>
    %123 = arith.truncf %122 : vector<32x64xf32> to vector<32x64xbf16>
    %c0_47 = arith.constant 0 : index
    %c0_48 = arith.constant 0 : index
    %c0_49 = arith.constant 0 : index
    %124 = vector.load %arg7[%c0_47, %c0_48, %c0_49] : memref<2x64x32xbf16, #tpu.memory_space<vmem>>, vector<1x64x32xbf16>
    %125 = vector.shape_cast %124 : vector<1x64x32xbf16> to vector<64x32xbf16>
    %cst_50 = arith.constant dense<0.000000e+00> : vector<32x32xf32>
    %126 = tpu.matmul %123, %125, %cst_50 {dimension_numbers = #tpu.dot_dimension_numbers<[1], [0], [0], [1], [0, 0, 1, 1], [], []>} : vector<32x64xbf16>, vector<64x32xbf16>, vector<32x32xf32> -> vector<32x32xf32>
    %c0_51 = arith.constant 0 : index
    %c0_52 = arith.constant 0 : index
    %c0_53 = arith.constant 0 : index
    %127 = vector.load %arg8[%c0_51, %c0_52, %c0_53] : memref<2x1x32xf32, #tpu.memory_space<vmem>>, vector<1x1x32xf32>
    %128 = vector.shape_cast %127 : vector<1x1x32xf32> to vector<1x32xf32>
    %129 = vector.broadcast %128 : vector<1x32xf32> to vector<32x32xf32>
    %130 = arith.addf %126, %129 : vector<32x32xf32>
    %131 = arith.addf %112, %130 : vector<32x32xf32>
    %c0_54 = arith.constant 0 : index
    %c0_55 = arith.constant 0 : index
    %c0_56 = arith.constant 0 : index
    %132 = vector.load %arg11[%c0_54, %c0_55, %c0_56] : memref<2x1x32xf32, #tpu.memory_space<vmem>>, vector<1x1x32xf32>
    %133 = vector.shape_cast %132 : vector<1x1x32xf32> to vector<1x32xf32>
    %c0_57 = arith.constant 0 : index
    %c0_58 = arith.constant 0 : index
    %c0_59 = arith.constant 0 : index
    %134 = vector.load %arg12[%c0_57, %c0_58, %c0_59] : memref<2x1x32xf32, #tpu.memory_space<vmem>>, vector<1x1x32xf32>
    %135 = vector.shape_cast %134 : vector<1x1x32xf32> to vector<1x32xf32>
    %cst_60 = arith.constant dense<0.000000e+00> : vector<32xf32>
    %136 = vector.multi_reduction <add>, %131, %cst_60 [1] : vector<32x32xf32> to vector<32xf32>
    %137 = vector.shape_cast %136 : vector<32xf32> to vector<32x1xf32>
    %cst_61 = arith.constant 3.200000e+01 : f32
    %138 = vector.broadcast %cst_61 : f32 to vector<32x1xf32>
    %139 = arith.divf %137, %138 : vector<32x1xf32>
    %140 = vector.broadcast %139 : vector<32x1xf32> to vector<32x32xf32>
    %141 = arith.subf %131, %140 : vector<32x32xf32>
    %142 = arith.mulf %141, %141 : vector<32x32xf32>
    %cst_62 = arith.constant dense<0.000000e+00> : vector<32xf32>
    %143 = vector.multi_reduction <add>, %142, %cst_62 [1] : vector<32x32xf32> to vector<32xf32>
    %144 = vector.shape_cast %143 : vector<32xf32> to vector<32x1xf32>
    %cst_63 = arith.constant 3.200000e+01 : f32
    %145 = vector.broadcast %cst_63 : f32 to vector<32x1xf32>
    %146 = arith.divf %144, %145 : vector<32x1xf32>
    %147 = vector.broadcast %139 : vector<32x1xf32> to vector<32x32xf32>
    %148 = arith.subf %131, %147 : vector<32x32xf32>
    %cst_64 = arith.constant 9.99999974E-6 : f32
    %149 = vector.broadcast %cst_64 : f32 to vector<32x1xf32>
    %150 = arith.addf %146, %149 : vector<32x1xf32>
    %151 = math.rsqrt %150 : vector<32x1xf32>
    %152 = vector.broadcast %151 : vector<32x1xf32> to vector<32x32xf32>
    %153 = arith.mulf %148, %152 : vector<32x32xf32>
    %154 = vector.broadcast %133 : vector<1x32xf32> to vector<32x32xf32>
    %155 = arith.mulf %153, %154 : vector<32x32xf32>
    %156 = vector.broadcast %135 : vector<1x32xf32> to vector<32x32xf32>
    %157 = arith.addf %155, %156 : vector<32x32xf32>
    %158 = arith.truncf %157 : vector<32x32xf32> to vector<32x32xbf16>
    %c1 = arith.constant 1 : index
    %c0_65 = arith.constant 0 : index
    %c0_66 = arith.constant 0 : index
    %159 = vector.load %arg2[%c1, %c0_65, %c0_66] : memref<2x32x192xbf16, #tpu.memory_space<vmem>>, vector<1x32x192xbf16>
    %160 = vector.shape_cast %159 : vector<1x32x192xbf16> to vector<32x192xbf16>
    %cst_67 = arith.constant dense<0.000000e+00> : vector<32x192xf32>
    %161 = tpu.matmul %158, %160, %cst_67 {dimension_numbers = #tpu.dot_dimension_numbers<[1], [0], [0], [1], [0, 0, 1, 1], [], []>} : vector<32x32xbf16>, vector<32x192xbf16>, vector<32x192xf32> -> vector<32x192xf32>
    %c1_68 = arith.constant 1 : index
    %c0_69 = arith.constant 0 : index
    %c0_70 = arith.constant 0 : index
    %162 = vector.load %arg3[%c1_68, %c0_69, %c0_70] : memref<2x1x192xf32, #tpu.memory_space<vmem>>, vector<1x1x192xf32>
    %163 = vector.shape_cast %162 : vector<1x1x192xf32> to vector<1x192xf32>
    %164 = vector.broadcast %163 : vector<1x192xf32> to vector<32x192xf32>
    %165 = arith.addf %161, %164 : vector<32x192xf32>
    %166 = arith.truncf %165 : vector<32x192xf32> to vector<32x192xbf16>
    %167 = vector.shape_cast %166 : vector<32x192xbf16> to vector<2x16x192xbf16>
    %cst_71 = arith.constant 0.000000e+00 : f32
    %168 = vector.broadcast %cst_71 : f32 to vector<2x16x32xf32>
    %169 = vector.extract_strided_slice %167 {offsets = [0, 0, 0], sizes = [2, 16, 8], strides = [1, 1, 1]} : vector<2x16x192xbf16> to vector<2x16x8xbf16>
    %170 = vector.extract_strided_slice %167 {offsets = [0, 0, 32], sizes = [2, 16, 8], strides = [1, 1, 1]} : vector<2x16x192xbf16> to vector<2x16x8xbf16>
    %171 = vector.extract_strided_slice %167 {offsets = [0, 0, 64], sizes = [2, 16, 32], strides = [1, 1, 1]} : vector<2x16x192xbf16> to vector<2x16x32xbf16>
    "tpu.trace_start"() <{level = 10 : i32, message = "bqe,bke->bqk"}> : () -> ()
    %cst_72 = arith.constant dense<0.000000e+00> : vector<2x16x16xf32>
    %172 = tpu.matmul %169, %170, %cst_72 {dimension_numbers = #tpu.dot_dimension_numbers<[2], [2], [1], [1], [0, 0, 0, 1, 1, 1], [0], [0]>} : vector<2x16x8xbf16>, vector<2x16x8xbf16>, vector<2x16x16xf32> -> vector<2x16x16xf32>
    "tpu.trace_stop"() : () -> ()
    %cst_73 = arith.constant dense<0xFF800000> : vector<2x16xf32>
    %173 = vector.multi_reduction <maximumf>, %172, %cst_73 [2] : vector<2x16x16xf32> to vector<2x16xf32>
    %174 = vector.shape_cast %173 : vector<2x16xf32> to vector<2x16x1xf32>
    %175 = vector.broadcast %174 : vector<2x16x1xf32> to vector<2x16x16xf32>
    %176 = arith.subf %172, %175 : vector<2x16x16xf32>
    %177 = math.exp %176 : vector<2x16x16xf32>
    %cst_74 = arith.constant dense<0.000000e+00> : vector<2x16xf32>
    %178 = vector.multi_reduction <add>, %177, %cst_74 [2] : vector<2x16x16xf32> to vector<2x16xf32>
    %179 = vector.shape_cast %178 : vector<2x16xf32> to vector<2x16x1xf32>
    %180 = arith.truncf %177 : vector<2x16x16xf32> to vector<2x16x16xbf16>
    "tpu.trace_start"() <{level = 10 : i32, message = "bqk,bkf->bqf"}> : () -> ()
    %cst_75 = arith.constant dense<0.000000e+00> : vector<2x16x32xf32>
    %181 = tpu.matmul %180, %171, %cst_75 {dimension_numbers = #tpu.dot_dimension_numbers<[2], [1], [1], [2], [0, 0, 0, 1, 1, 2], [0], [0]>} : vector<2x16x16xbf16>, vector<2x16x32xbf16>, vector<2x16x32xf32> -> vector<2x16x32xf32>
    "tpu.trace_stop"() : () -> ()
    %182 = tpu.reciprocal %179 {approx = true} : vector<2x16x1xf32> -> vector<2x16x1xf32>
    %183 = vector.broadcast %182 : vector<2x16x1xf32> to vector<2x16x32xf32>
    %184 = arith.mulf %181, %183 : vector<2x16x32xf32>
    %185 = arith.addf %168, %184 : vector<2x16x32xf32>
    %186 = vector.extract_strided_slice %167 {offsets = [0, 0, 8], sizes = [2, 16, 8], strides = [1, 1, 1]} : vector<2x16x192xbf16> to vector<2x16x8xbf16>
    %187 = vector.extract_strided_slice %167 {offsets = [0, 0, 40], sizes = [2, 16, 8], strides = [1, 1, 1]} : vector<2x16x192xbf16> to vector<2x16x8xbf16>
    %188 = vector.extract_strided_slice %167 {offsets = [0, 0, 96], sizes = [2, 16, 32], strides = [1, 1, 1]} : vector<2x16x192xbf16> to vector<2x16x32xbf16>
    "tpu.trace_start"() <{level = 10 : i32, message = "bqe,bke->bqk"}> : () -> ()
    %cst_76 = arith.constant dense<0.000000e+00> : vector<2x16x16xf32>
    %189 = tpu.matmul %186, %187, %cst_76 {dimension_numbers = #tpu.dot_dimension_numbers<[2], [2], [1], [1], [0, 0, 0, 1, 1, 1], [0], [0]>} : vector<2x16x8xbf16>, vector<2x16x8xbf16>, vector<2x16x16xf32> -> vector<2x16x16xf32>
    "tpu.trace_stop"() : () -> ()
    %cst_77 = arith.constant dense<0xFF800000> : vector<2x16xf32>
    %190 = vector.multi_reduction <maximumf>, %189, %cst_77 [2] : vector<2x16x16xf32> to vector<2x16xf32>
    %191 = vector.shape_cast %190 : vector<2x16xf32> to vector<2x16x1xf32>
    %192 = vector.broadcast %191 : vector<2x16x1xf32> to vector<2x16x16xf32>
    %193 = arith.subf %189, %192 : vector<2x16x16xf32>
    %194 = math.exp %193 : vector<2x16x16xf32>
    %cst_78 = arith.constant dense<0.000000e+00> : vector<2x16xf32>
    %195 = vector.multi_reduction <add>, %194, %cst_78 [2] : vector<2x16x16xf32> to vector<2x16xf32>
    %196 = vector.shape_cast %195 : vector<2x16xf32> to vector<2x16x1xf32>
    %197 = arith.truncf %194 : vector<2x16x16xf32> to vector<2x16x16xbf16>
    "tpu.trace_start"() <{level = 10 : i32, message = "bqk,bkf->bqf"}> : () -> ()
    %cst_79 = arith.constant dense<0.000000e+00> : vector<2x16x32xf32>
    %198 = tpu.matmul %197, %188, %cst_79 {dimension_numbers = #tpu.dot_dimension_numbers<[2], [1], [1], [2], [0, 0, 0, 1, 1, 2], [0], [0]>} : vector<2x16x16xbf16>, vector<2x16x32xbf16>, vector<2x16x32xf32> -> vector<2x16x32xf32>
    "tpu.trace_stop"() : () -> ()
    %199 = tpu.reciprocal %196 {approx = true} : vector<2x16x1xf32> -> vector<2x16x1xf32>
    %200 = vector.broadcast %199 : vector<2x16x1xf32> to vector<2x16x32xf32>
    %201 = arith.mulf %198, %200 : vector<2x16x32xf32>
    %202 = arith.addf %185, %201 : vector<2x16x32xf32>
    %203 = vector.extract_strided_slice %167 {offsets = [0, 0, 16], sizes = [2, 16, 8], strides = [1, 1, 1]} : vector<2x16x192xbf16> to vector<2x16x8xbf16>
    %204 = vector.extract_strided_slice %167 {offsets = [0, 0, 48], sizes = [2, 16, 8], strides = [1, 1, 1]} : vector<2x16x192xbf16> to vector<2x16x8xbf16>
    %205 = vector.extract_strided_slice %167 {offsets = [0, 0, 128], sizes = [2, 16, 32], strides = [1, 1, 1]} : vector<2x16x192xbf16> to vector<2x16x32xbf16>
    "tpu.trace_start"() <{level = 10 : i32, message = "bqe,bke->bqk"}> : () -> ()
    %cst_80 = arith.constant dense<0.000000e+00> : vector<2x16x16xf32>
    %206 = tpu.matmul %203, %204, %cst_80 {dimension_numbers = #tpu.dot_dimension_numbers<[2], [2], [1], [1], [0, 0, 0, 1, 1, 1], [0], [0]>} : vector<2x16x8xbf16>, vector<2x16x8xbf16>, vector<2x16x16xf32> -> vector<2x16x16xf32>
    "tpu.trace_stop"() : () -> ()
    %cst_81 = arith.constant dense<0xFF800000> : vector<2x16xf32>
    %207 = vector.multi_reduction <maximumf>, %206, %cst_81 [2] : vector<2x16x16xf32> to vector<2x16xf32>
    %208 = vector.shape_cast %207 : vector<2x16xf32> to vector<2x16x1xf32>
    %209 = vector.broadcast %208 : vector<2x16x1xf32> to vector<2x16x16xf32>
    %210 = arith.subf %206, %209 : vector<2x16x16xf32>
    %211 = math.exp %210 : vector<2x16x16xf32>
    %cst_82 = arith.constant dense<0.000000e+00> : vector<2x16xf32>
    %212 = vector.multi_reduction <add>, %211, %cst_82 [2] : vector<2x16x16xf32> to vector<2x16xf32>
    %213 = vector.shape_cast %212 : vector<2x16xf32> to vector<2x16x1xf32>
    %214 = arith.truncf %211 : vector<2x16x16xf32> to vector<2x16x16xbf16>
    "tpu.trace_start"() <{level = 10 : i32, message = "bqk,bkf->bqf"}> : () -> ()
    %cst_83 = arith.constant dense<0.000000e+00> : vector<2x16x32xf32>
    %215 = tpu.matmul %214, %205, %cst_83 {dimension_numbers = #tpu.dot_dimension_numbers<[2], [1], [1], [2], [0, 0, 0, 1, 1, 2], [0], [0]>} : vector<2x16x16xbf16>, vector<2x16x32xbf16>, vector<2x16x32xf32> -> vector<2x16x32xf32>
    "tpu.trace_stop"() : () -> ()
    %216 = tpu.reciprocal %213 {approx = true} : vector<2x16x1xf32> -> vector<2x16x1xf32>
    %217 = vector.broadcast %216 : vector<2x16x1xf32> to vector<2x16x32xf32>
    %218 = arith.mulf %215, %217 : vector<2x16x32xf32>
    %219 = arith.addf %202, %218 : vector<2x16x32xf32>
    %220 = vector.extract_strided_slice %167 {offsets = [0, 0, 24], sizes = [2, 16, 8], strides = [1, 1, 1]} : vector<2x16x192xbf16> to vector<2x16x8xbf16>
    %221 = vector.extract_strided_slice %167 {offsets = [0, 0, 56], sizes = [2, 16, 8], strides = [1, 1, 1]} : vector<2x16x192xbf16> to vector<2x16x8xbf16>
    %222 = vector.extract_strided_slice %167 {offsets = [0, 0, 160], sizes = [2, 16, 32], strides = [1, 1, 1]} : vector<2x16x192xbf16> to vector<2x16x32xbf16>
    "tpu.trace_start"() <{level = 10 : i32, message = "bqe,bke->bqk"}> : () -> ()
    %cst_84 = arith.constant dense<0.000000e+00> : vector<2x16x16xf32>
    %223 = tpu.matmul %220, %221, %cst_84 {dimension_numbers = #tpu.dot_dimension_numbers<[2], [2], [1], [1], [0, 0, 0, 1, 1, 1], [0], [0]>} : vector<2x16x8xbf16>, vector<2x16x8xbf16>, vector<2x16x16xf32> -> vector<2x16x16xf32>
    "tpu.trace_stop"() : () -> ()
    %cst_85 = arith.constant dense<0xFF800000> : vector<2x16xf32>
    %224 = vector.multi_reduction <maximumf>, %223, %cst_85 [2] : vector<2x16x16xf32> to vector<2x16xf32>
    %225 = vector.shape_cast %224 : vector<2x16xf32> to vector<2x16x1xf32>
    %226 = vector.broadcast %225 : vector<2x16x1xf32> to vector<2x16x16xf32>
    %227 = arith.subf %223, %226 : vector<2x16x16xf32>
    %228 = math.exp %227 : vector<2x16x16xf32>
    %cst_86 = arith.constant dense<0.000000e+00> : vector<2x16xf32>
    %229 = vector.multi_reduction <add>, %228, %cst_86 [2] : vector<2x16x16xf32> to vector<2x16xf32>
    %230 = vector.shape_cast %229 : vector<2x16xf32> to vector<2x16x1xf32>
    %231 = arith.truncf %228 : vector<2x16x16xf32> to vector<2x16x16xbf16>
    "tpu.trace_start"() <{level = 10 : i32, message = "bqk,bkf->bqf"}> : () -> ()
    %cst_87 = arith.constant dense<0.000000e+00> : vector<2x16x32xf32>
    %232 = tpu.matmul %231, %222, %cst_87 {dimension_numbers = #tpu.dot_dimension_numbers<[2], [1], [1], [2], [0, 0, 0, 1, 1, 2], [0], [0]>} : vector<2x16x16xbf16>, vector<2x16x32xbf16>, vector<2x16x32xf32> -> vector<2x16x32xf32>
    "tpu.trace_stop"() : () -> ()
    %233 = tpu.reciprocal %230 {approx = true} : vector<2x16x1xf32> -> vector<2x16x1xf32>
    %234 = vector.broadcast %233 : vector<2x16x1xf32> to vector<2x16x32xf32>
    %235 = arith.mulf %232, %234 : vector<2x16x32xf32>
    %236 = arith.addf %219, %235 : vector<2x16x32xf32>
    %237 = vector.shape_cast %236 : vector<2x16x32xf32> to vector<32x32xf32>
    %238 = arith.addf %157, %237 : vector<32x32xf32>
    %c1_88 = arith.constant 1 : index
    %c0_89 = arith.constant 0 : index
    %c0_90 = arith.constant 0 : index
    %239 = vector.load %arg4[%c1_88, %c0_89, %c0_90] : memref<2x1x32xf32, #tpu.memory_space<vmem>>, vector<1x1x32xf32>
    %240 = vector.shape_cast %239 : vector<1x1x32xf32> to vector<1x32xf32>
    %241 = vector.broadcast %240 : vector<1x32xf32> to vector<32x32xf32>
    %242 = arith.addf %238, %241 : vector<32x32xf32>
    %c1_91 = arith.constant 1 : index
    %c0_92 = arith.constant 0 : index
    %c0_93 = arith.constant 0 : index
    %243 = vector.load %arg9[%c1_91, %c0_92, %c0_93] : memref<2x1x32xf32, #tpu.memory_space<vmem>>, vector<1x1x32xf32>
    %244 = vector.shape_cast %243 : vector<1x1x32xf32> to vector<1x32xf32>
    %c1_94 = arith.constant 1 : index
    %c0_95 = arith.constant 0 : index
    %c0_96 = arith.constant 0 : index
    %245 = vector.load %arg10[%c1_94, %c0_95, %c0_96] : memref<2x1x32xf32, #tpu.memory_space<vmem>>, vector<1x1x32xf32>
    %246 = vector.shape_cast %245 : vector<1x1x32xf32> to vector<1x32xf32>
    %cst_97 = arith.constant dense<0.000000e+00> : vector<32xf32>
    %247 = vector.multi_reduction <add>, %242, %cst_97 [1] : vector<32x32xf32> to vector<32xf32>
    %248 = vector.shape_cast %247 : vector<32xf32> to vector<32x1xf32>
    %cst_98 = arith.constant 3.200000e+01 : f32
    %249 = vector.broadcast %cst_98 : f32 to vector<32x1xf32>
    %250 = arith.divf %248, %249 : vector<32x1xf32>
    %251 = vector.broadcast %250 : vector<32x1xf32> to vector<32x32xf32>
    %252 = arith.subf %242, %251 : vector<32x32xf32>
    %253 = arith.mulf %252, %252 : vector<32x32xf32>
    %cst_99 = arith.constant dense<0.000000e+00> : vector<32xf32>
    %254 = vector.multi_reduction <add>, %253, %cst_99 [1] : vector<32x32xf32> to vector<32xf32>
    %255 = vector.shape_cast %254 : vector<32xf32> to vector<32x1xf32>
    %cst_100 = arith.constant 3.200000e+01 : f32
    %256 = vector.broadcast %cst_100 : f32 to vector<32x1xf32>
    %257 = arith.divf %255, %256 : vector<32x1xf32>
    %258 = vector.broadcast %250 : vector<32x1xf32> to vector<32x32xf32>
    %259 = arith.subf %242, %258 : vector<32x32xf32>
    %cst_101 = arith.constant 9.99999974E-6 : f32
    %260 = vector.broadcast %cst_101 : f32 to vector<32x1xf32>
    %261 = arith.addf %257, %260 : vector<32x1xf32>
    %262 = math.rsqrt %261 : vector<32x1xf32>
    %263 = vector.broadcast %262 : vector<32x1xf32> to vector<32x32xf32>
    %264 = arith.mulf %259, %263 : vector<32x32xf32>
    %265 = vector.broadcast %244 : vector<1x32xf32> to vector<32x32xf32>
    %266 = arith.mulf %264, %265 : vector<32x32xf32>
    %267 = vector.broadcast %246 : vector<1x32xf32> to vector<32x32xf32>
    %268 = arith.addf %266, %267 : vector<32x32xf32>
    %269 = arith.truncf %268 : vector<32x32xf32> to vector<32x32xbf16>
    %c1_102 = arith.constant 1 : index
    %c0_103 = arith.constant 0 : index
    %c0_104 = arith.constant 0 : index
    %270 = vector.load %arg5[%c1_102, %c0_103, %c0_104] : memref<2x32x64xbf16, #tpu.memory_space<vmem>>, vector<1x32x64xbf16>
    %271 = vector.shape_cast %270 : vector<1x32x64xbf16> to vector<32x64xbf16>
    %cst_105 = arith.constant dense<0.000000e+00> : vector<32x64xf32>
    %272 = tpu.matmul %269, %271, %cst_105 {dimension_numbers = #tpu.dot_dimension_numbers<[1], [0], [0], [1], [0, 0, 1, 1], [], []>} : vector<32x32xbf16>, vector<32x64xbf16>, vector<32x64xf32> -> vector<32x64xf32>
    %c1_106 = arith.constant 1 : index
    %c0_107 = arith.constant 0 : index
    %c0_108 = arith.constant 0 : index
    %273 = vector.load %arg6[%c1_106, %c0_107, %c0_108] : memref<2x1x64xf32, #tpu.memory_space<vmem>>, vector<1x1x64xf32>
    %274 = vector.shape_cast %273 : vector<1x1x64xf32> to vector<1x64xf32>
    %275 = vector.broadcast %274 : vector<1x64xf32> to vector<32x64xf32>
    %276 = arith.addf %272, %275 : vector<32x64xf32>
    %cst_109 = arith.constant 0.000000e+00 : f32
    %277 = vector.broadcast %cst_109 : f32 to vector<32x64xf32>
    %278 = arith.maximumf %276, %277 : vector<32x64xf32>
    %279 = arith.truncf %278 : vector<32x64xf32> to vector<32x64xbf16>
    %c1_110 = arith.constant 1 : index
    %c0_111 = arith.constant 0 : index
    %c0_112 = arith.constant 0 : index
    %280 = vector.load %arg7[%c1_110, %c0_111, %c0_112] : memref<2x64x32xbf16, #tpu.memory_space<vmem>>, vector<1x64x32xbf16>
    %281 = vector.shape_cast %280 : vector<1x64x32xbf16> to vector<64x32xbf16>
    %cst_113 = arith.constant dense<0.000000e+00> : vector<32x32xf32>
    %282 = tpu.matmul %279, %281, %cst_113 {dimension_numbers = #tpu.dot_dimension_numbers<[1], [0], [0], [1], [0, 0, 1, 1], [], []>} : vector<32x64xbf16>, vector<64x32xbf16>, vector<32x32xf32> -> vector<32x32xf32>
    %c1_114 = arith.constant 1 : index
    %c0_115 = arith.constant 0 : index
    %c0_116 = arith.constant 0 : index
    %283 = vector.load %arg8[%c1_114, %c0_115, %c0_116] : memref<2x1x32xf32, #tpu.memory_space<vmem>>, vector<1x1x32xf32>
    %284 = vector.shape_cast %283 : vector<1x1x32xf32> to vector<1x32xf32>
    %285 = vector.broadcast %284 : vector<1x32xf32> to vector<32x32xf32>
    %286 = arith.addf %282, %285 : vector<32x32xf32>
    %287 = arith.addf %268, %286 : vector<32x32xf32>
    %c1_117 = arith.constant 1 : index
    %c0_118 = arith.constant 0 : index
    %c0_119 = arith.constant 0 : index
    %288 = vector.load %arg11[%c1_117, %c0_118, %c0_119] : memref<2x1x32xf32, #tpu.memory_space<vmem>>, vector<1x1x32xf32>
    %289 = vector.shape_cast %288 : vector<1x1x32xf32> to vector<1x32xf32>
    %c1_120 = arith.constant 1 : index
    %c0_121 = arith.constant 0 : index
    %c0_122 = arith.constant 0 : index
    %290 = vector.load %arg12[%c1_120, %c0_121, %c0_122] : memref<2x1x32xf32, #tpu.memory_space<vmem>>, vector<1x1x32xf32>
    %291 = vector.shape_cast %290 : vector<1x1x32xf32> to vector<1x32xf32>
    %cst_123 = arith.constant dense<0.000000e+00> : vector<32xf32>
    %292 = vector.multi_reduction <add>, %287, %cst_123 [1] : vector<32x32xf32> to vector<32xf32>
    %293 = vector.shape_cast %292 : vector<32xf32> to vector<32x1xf32>
    %cst_124 = arith.constant 3.200000e+01 : f32
    %294 = vector.broadcast %cst_124 : f32 to vector<32x1xf32>
    %295 = arith.divf %293, %294 : vector<32x1xf32>
    %296 = vector.broadcast %295 : vector<32x1xf32> to vector<32x32xf32>
    %297 = arith.subf %287, %296 : vector<32x32xf32>
    %298 = arith.mulf %297, %297 : vector<32x32xf32>
    %cst_125 = arith.constant dense<0.000000e+00> : vector<32xf32>
    %299 = vector.multi_reduction <add>, %298, %cst_125 [1] : vector<32x32xf32> to vector<32xf32>
    %300 = vector.shape_cast %299 : vector<32xf32> to vector<32x1xf32>
    %cst_126 = arith.constant 3.200000e+01 : f32
    %301 = vector.broadcast %cst_126 : f32 to vector<32x1xf32>
    %302 = arith.divf %300, %301 : vector<32x1xf32>
    %303 = vector.broadcast %295 : vector<32x1xf32> to vector<32x32xf32>
    %304 = arith.subf %287, %303 : vector<32x32xf32>
    %cst_127 = arith.constant 9.99999974E-6 : f32
    %305 = vector.broadcast %cst_127 : f32 to vector<32x1xf32>
    %306 = arith.addf %302, %305 : vector<32x1xf32>
    %307 = math.rsqrt %306 : vector<32x1xf32>
    %308 = vector.broadcast %307 : vector<32x1xf32> to vector<32x32xf32>
    %309 = arith.mulf %304, %308 : vector<32x32xf32>
    %310 = vector.broadcast %289 : vector<1x32xf32> to vector<32x32xf32>
    %311 = arith.mulf %309, %310 : vector<32x32xf32>
    %312 = vector.broadcast %291 : vector<1x32xf32> to vector<32x32xf32>
    %313 = arith.addf %311, %312 : vector<32x32xf32>
    %c0_128 = arith.constant 0 : index
    %c0_129 = arith.constant 0 : index
    %314 = vector.load %arg13[%c0_128, %c0_129] : memref<1x32xf32, #tpu.memory_space<vmem>>, vector<1x32xf32>
    %c0_130 = arith.constant 0 : index
    %c0_131 = arith.constant 0 : index
    %315 = vector.load %arg14[%c0_130, %c0_131] : memref<1x32xf32, #tpu.memory_space<vmem>>, vector<1x32xf32>
    %cst_132 = arith.constant dense<0.000000e+00> : vector<32xf32>
    %316 = vector.multi_reduction <add>, %313, %cst_132 [1] : vector<32x32xf32> to vector<32xf32>
    %317 = vector.shape_cast %316 : vector<32xf32> to vector<32x1xf32>
    %cst_133 = arith.constant 3.200000e+01 : f32
    %318 = vector.broadcast %cst_133 : f32 to vector<32x1xf32>
    %319 = arith.divf %317, %318 : vector<32x1xf32>
    %320 = vector.broadcast %319 : vector<32x1xf32> to vector<32x32xf32>
    %321 = arith.subf %313, %320 : vector<32x32xf32>
    %322 = arith.mulf %321, %321 : vector<32x32xf32>
    %cst_134 = arith.constant dense<0.000000e+00> : vector<32xf32>
    %323 = vector.multi_reduction <add>, %322, %cst_134 [1] : vector<32x32xf32> to vector<32xf32>
    %324 = vector.shape_cast %323 : vector<32xf32> to vector<32x1xf32>
    %cst_135 = arith.constant 3.200000e+01 : f32
    %325 = vector.broadcast %cst_135 : f32 to vector<32x1xf32>
    %326 = arith.divf %324, %325 : vector<32x1xf32>
    %327 = vector.broadcast %319 : vector<32x1xf32> to vector<32x32xf32>
    %328 = arith.subf %313, %327 : vector<32x32xf32>
    %cst_136 = arith.constant 9.99999974E-6 : f32
    %329 = vector.broadcast %cst_136 : f32 to vector<32x1xf32>
    %330 = arith.addf %326, %329 : vector<32x1xf32>
    %331 = math.rsqrt %330 : vector<32x1xf32>
    %332 = vector.broadcast %331 : vector<32x1xf32> to vector<32x32xf32>
    %333 = arith.mulf %328, %332 : vector<32x32xf32>
    %334 = vector.broadcast %314 : vector<1x32xf32> to vector<32x32xf32>
    %335 = arith.mulf %333, %334 : vector<32x32xf32>
    %336 = vector.broadcast %315 : vector<1x32xf32> to vector<32x32xf32>
    %337 = arith.addf %335, %336 : vector<32x32xf32>
    %338 = vector.shape_cast %337 : vector<32x32xf32> to vector<2x16x32xf32>
    %c0_137 = arith.constant 0 : index
    %c0_138 = arith.constant 0 : index
    %c0_139 = arith.constant 0 : index
    %339 = vector.load %arg15[%c0_137, %c0_138, %c0_139] : memref<2x16x32xf32, #tpu.memory_space<vmem>>, vector<2x16x32xf32>
    tpu.vector_store %arg15[%c0_137, %c0_138, %c0_139], %338 {strides = array<i32>} : memref<2x16x32xf32, #tpu.memory_space<vmem>>, vector<2x16x32xf32>,
    return
  }
  func.func @transform_0(%arg0: i32) -> (i32, i32, i32) {
    %c0_i32 = arith.constant 0 : i32
    %c0_i32_0 = arith.constant 0 : i32
    %c0_i32_1 = arith.constant 0 : i32
    return %arg0, %c0_i32, %c0_i32_0 : i32, i32, i32
  }
  func.func @transform_1(%arg0: i32) -> (i32, i32, i32) {
    %c0_i32 = arith.constant 0 : i32
    %c0_i32_0 = arith.constant 0 : i32
    %c0_i32_1 = arith.constant 0 : i32
    %c0_i32_2 = arith.constant 0 : i32
    return %c0_i32, %c0_i32_0, %c0_i32_1 : i32, i32, i32
  }
  func.func @transform_2(%arg0: i32) -> (i32, i32, i32) {
    %c0_i32 = arith.constant 0 : i32
    %c0_i32_0 = arith.constant 0 : i32
    %c0_i32_1 = arith.constant 0 : i32
    %c0_i32_2 = arith.constant 0 : i32
    return %c0_i32, %c0_i32_0, %c0_i32_1 : i32, i32, i32
  }
  func.func @transform_3(%arg0: i32) -> (i32, i32, i32) {
    %c0_i32 = arith.constant 0 : i32
    %c0_i32_0 = arith.constant 0 : i32
    %c0_i32_1 = arith.constant 0 : i32
    %c0_i32_2 = arith.constant 0 : i32
    return %c0_i32, %c0_i32_0, %c0_i32_1 : i32, i32, i32
  }
  func.func @transform_4(%arg0: i32) -> (i32, i32, i32) {
    %c0_i32 = arith.constant 0 : i32
    %c0_i32_0 = arith.constant 0 : i32
    %c0_i32_1 = arith.constant 0 : i32
    %c0_i32_2 = arith.constant 0 : i32
    return %c0_i32, %c0_i32_0, %c0_i32_1 : i32, i32, i32
  }
  func.func @transform_5(%arg0: i32) -> (i32, i32, i32) {
    %c0_i32 = arith.constant 0 : i32
    %c0_i32_0 = arith.constant 0 : i32
    %c0_i32_1 = arith.constant 0 : i32
    %c0_i32_2 = arith.constant 0 : i32
    return %c0_i32, %c0_i32_0, %c0_i32_1 : i32, i32, i32
  }
  func.func @transform_6(%arg0: i32) -> (i32, i32, i32) {
    %c0_i32 = arith.constant 0 : i32
    %c0_i32_0 = arith.constant 0 : i32
    %c0_i32_1 = arith.constant 0 : i32
    %c0_i32_2 = arith.constant 0 : i32
    return %c0_i32, %c0_i32_0, %c0_i32_1 : i32, i32, i32
  }
  func.func @transform_7(%arg0: i32) -> (i32, i32, i32) {
    %c0_i32 = arith.constant 0 : i32
    %c0_i32_0 = arith.constant 0 : i32
    %c0_i32_1 = arith.constant 0 : i32
    %c0_i32_2 = arith.constant 0 : i32
    return %c0_i32, %c0_i32_0, %c0_i32_1 : i32, i32, i32
  }
  func.func @transform_8(%arg0: i32) -> (i32, i32, i32) {
    %c0_i32 = arith.constant 0 : i32
    %c0_i32_0 = arith.constant 0 : i32
    %c0_i32_1 = arith.constant 0 : i32
    %c0_i32_2 = arith.constant 0 : i32
    return %c0_i32, %c0_i32_0, %c0_i32_1 : i32, i32, i32
  }
  func.func @transform_9(%arg0: i32) -> (i32, i32, i32) {
    %c0_i32 = arith.constant 0 : i32
    %c0_i32_0 = arith.constant 0 : i32
    %c0_i32_1 = arith.constant 0 : i32
    %c0_i32_2 = arith.constant 0 : i32
    return %c0_i32, %c0_i32_0, %c0_i32_1 : i32, i32, i32
  }
  func.func @transform_10(%arg0: i32) -> (i32, i32, i32) {
    %c0_i32 = arith.constant 0 : i32
    %c0_i32_0 = arith.constant 0 : i32
    %c0_i32_1 = arith.constant 0 : i32
    %c0_i32_2 = arith.constant 0 : i32
    return %c0_i32, %c0_i32_0, %c0_i32_1 : i32, i32, i32
  }
  func.func @transform_11(%arg0: i32) -> (i32, i32, i32) {
    %c0_i32 = arith.constant 0 : i32
    %c0_i32_0 = arith.constant 0 : i32
    %c0_i32_1 = arith.constant 0 : i32
    %c0_i32_2 = arith.constant 0 : i32
    return %c0_i32, %c0_i32_0, %c0_i32_1 : i32, i32, i32
  }
  func.func @transform_12(%arg0: i32) -> (i32, i32) {
    %c0_i32 = arith.constant 0 : i32
    %c0_i32_0 = arith.constant 0 : i32
    %c0_i32_1 = arith.constant 0 : i32
    return %c0_i32, %c0_i32_0 : i32, i32
  }
  func.func @transform_13(%arg0: i32) -> (i32, i32) {
    %c0_i32 = arith.constant 0 : i32
    %c0_i32_0 = arith.constant 0 : i32
    %c0_i32_1 = arith.constant 0 : i32
    return %c0_i32, %c0_i32_0 : i32, i32
  }
  func.func @transform_14(%arg0: i32) -> (i32, i32, i32) {
    %c0_i32 = arith.constant 0 : i32
    %c0_i32_0 = arith.constant 0 : i32
    %c0_i32_1 = arith.constant 0 : i32
    return %arg0, %c0_i32, %c0_i32_0 : i32, i32, i32
  }
}

</mosaic_0001>

<bundles_post_ra>
// kernel: tpu_custom_call.1
= control target key start
LH: loop header
LB: loop body
LE: loop exit
PB: predicated region body
PF: predicated region fallthrough
CT: control target
= control target key end

     0   :  { %19 = vsyncpa [#allocation3], 0  ;;  %s4503_s0 = inlined_call_operand.vmem [shape: f32[2,16,32], index: 0, kind: input, shape index: {}]   ;;  %s4504_s1 = inlined_call_operand.vmem [shape: bf16[2,32,192], index: 1, kind: input, shape index: {}]   ;;  %s4505_s2 = inlined_call_operand.vmem [shape: f32[2,1,192], index: 2, kind: input, shape index: {}]   ;;  %s4506_s3 = inlined_call_operand.vmem [shape: f32[2,1,32], index: 3, kind: input, shape index: {}]   ;;  %s4507_s4 = inlined_call_operand.hbm [shape: bf16[2,32,64], index: 4, kind: input, shape index: {}]   ;;  %s4508_s5 = inlined_call_operand.vmem [shape: f32[2,1,64], index: 5, kind: input, shape index: {}]   ;;  %s4509_s6 = inlined_call_operand.vmem [shape: bf16[2,64,32], index: 6, kind: input, shape index: {}]   ;;  %s4510_s7 = inlined_call_operand.vmem [shape: f32[2,1,32], index: 7, kind: input, shape index: {}]   ;;  %s4511_s8 = inlined_call_operand.vmem [shape: f32[2,1,32], index: 8, kind: input, shape index: {}]   ;;  %s4512_s9 = inlined_call_operand.vmem [shape: f32[2,1,32], index: 9, kind: input, shape index: {}]   ;;  %s4513_s10 = inlined_call_operand.vmem [shape: f32[2,1,32], index: 10, kind: input, shape index: {}]   ;;  %s4514_s11 = inlined_call_operand.vmem [shape: f32[2,1,32], index: 11, kind: input, shape index: {}]   ;;  %s4515_s12 = inlined_call_operand.vmem [shape: f32[1,32], index: 12, kind: input, shape index: {}]   ;;  %s4516_s13 = inlined_call_operand.vmem [shape: f32[1,32], index: 13, kind: input, shape index: {}]   ;;  %s4517_s14 = inlined_call_operand.hbm [shape: f32[2,16,32], index: 14, kind: output, shape index: {}]  }
   0x1   :  { %20 = vsyncpa [#allocation4], 0  ;;  %s3707_s29 = smov [#allocation2]   ;;  %s3659_s17 = scalar_lea.hbm %s4507_s4, 512 }
   0x2   :  { %s34_s30 = sshll.u32 %s3707_s29, 4  ;;  %p3660_p0 = scmp.ne.s32.totalorder %s4507_s4, %s3659_s17  ;;  %s35_s30 = int_to_ptr.vmem [resolvable:$true] %s34_s30 }
   0x3   :  { %p3663_p1 = scmp.lt.u32.totalorder %s3659_s17, %s4507_s4 }
   0x5   :  { %p3665_p2 = pnand %p3663_p1, %p3660_p0 }
   0x7   :  { %3668 = shalt.err (!%p3665_p2)
}
   0x8   :  { %s3669_s22 = scalar_lea.vmem %s35_s30, 512  ;;  %p3674_p4 = scmp.lt.s32.totalorder %s35_s30, %s35_s30 }
   0x9   :  { %p3670_p3 = scmp.ne.s32.totalorder %s35_s30, %s3669_s22  ;;  %p3675_p5 = scmp.lt.s32.totalorder %s3669_s22, %s3669_s22 }
   0xb   :  { %p3676_p6 = por %p3675_p5, %p3674_p4 }
   0xd   :  { %p3677_p7 = pnand %p3676_p6, %p3670_p3 }
   0xf   :  { %3680 = shalt.err (!%p3677_p7)
}
  0x10   :  { %s3708_s23 = smov 64   ;;  %s3709_s24 = smov 4  }
  0x11   :  { %40 = dma.hbm_to_vmem [thread:$0]  %s4507_s4, 512, %s35_s30, [#allocation3], %s3708_s23, %s3708_s23, %s3709_s24  }
  0x12   :  { %3703 = dma.done.wait [#allocation3], 512  }
  0x13   :  { %3704 = vsyncadd [#allocation3], 4294966784  ;;  %v3710_v0 = vmov 0   ;;  %v3467_v1 = vld [vmem:[%s4504_s1 + $0x4] ss:$8 sps:$4 sm:$0xff]   ;;  %v3840_v7 = vld [vmem:[%s4503_s0 + $0x10] sm:$0xff]  ;;  %v75_v11 = vlaneseq }
  0x14   :  { %144 = vmatprep.mubr.bf16.mxu0 %v3710_v0  ;;  %154 = vmatprep.mubr.bf16.mxu1 %v3710_v0  ;;  %v3469_v2 = vld [vmem:[%s4504_s1] ss:$8 sps:$4 sm:$0xff]   ;;  %v3470_v3 = vld [vmem:[%s4504_s1 + $0x14] ss:$8 sps:$4 sm:$0xff]   ;;  %v3472_v4 = vld [vmem:[%s4504_s1 + $0x10] ss:$8 sps:$4 sm:$0xff]  }
  0x15   :  { %112 = vmatprep.subr.bf16.mxu0 %v3467_v1  ;;  %3446 = vmatprep.subr.bf16.mxu1 %v3467_v1  ;;  %v3830_v5 = vld [vmem:[%s4503_s0] sm:$0xff]  ;;  %v3835_v6 = vld [vmem:[%s4503_s0 + $0x8] sm:$0xff]  ;;  %v3845_v8 = vld [vmem:[%s4503_s0 + $0x18] sm:$0xff]  ;;  %vm105_vm0 = vcmask 261120   ;;  %v3853_v12 = vshrl.u32 %v75_v11, 7  ;;  %v3711_v13 = vmov 0.0  }
  0x16   :  { %113 = vmatpush1.bf16.msra.mxu0 %v3469_v2  ;;  %3448 = vmatpush1.bf16.msra.mxu1 %v3469_v2  ;;  %v67_v9 = vpack.c.bf16 %v3835_v6, %v3830_v5  ;;  %v68_v10 = vpack.c.bf16 %v3845_v8, %v3840_v7  ;;  %v73_v15 = vld [vmem:[%s4505_s2] sm:$0x3]  ;;  %vm3712_vm1 = vmmov 0   ;;  %s3713_s28 = smov 96   ;;  %vm172_vm2 = vcmask 64512   ;;  %s3714_s29 = smov 88  }
  0x17   :  { %114 = vmatprep.subr.bf16.mxu0 %v3470_v3  ;;  %3447 = vmatprep.subr.bf16.mxu1 %v3470_v3  ;;  %v77_v14 = vsub.s32 0, %v3853_v12  ;;  %v81_v16 = vsub.s32 1, %v3853_v12  ;;  %vm270_vm3 = vcmask 130048   ;;  %s3715_s15 = smov 120   ;;  %s3716_s16 = smov 32   ;;  %vm1364_vm4 = vcmask 523264  }
  0x18   :  { %s3717_s17 = smov 80   ;;  %s3718_s4 = smov 112  }
  0x19   :  { %v78_v17 = vrot.slane %v73_v15, %v77_v14  ;;  %v82_v19 = vrot.slane %v73_v15, %v81_v16  ;;  %s3719_s30 = smov 72   ;;  %s3720_s18 = smov 104  }
  0x1a   :  { %115 = vmatpush1.bf16.msra.mxu0 %v3472_v4  ;;  %3449 = vmatpush1.bf16.msra.mxu1 %v3472_v4  ;;  %s3721_s21 = smov [#allocation5]  }
  0x1b   :  { %3214 = vmatprep.subr.bf16.mxu1 %v3711_v13  ;;  %3226 = vmatprep.subr.bf16.mxu0 %v3711_v13 }
  0x1d   :  { %3034 = vmatmul.mubr.msk.bf16.vlgmr.msra.gmra.mrb[0].mxu0 %vm105_vm0, %v67_v9  ;;  %3035 = vmatmul.mubr.msk.bf16.vlgmr.msra.gmra.mrb[0].mxu1 %vm105_vm0, %v68_v10 }
  0x1e   :  { %3216 = vmatprep.mubr.msk.bf16.mxu1 %vm3712_vm1, %v3711_v13  ;;  %3228 = vmatprep.mubr.msk.bf16.mxu0 %vm3712_vm1, %v3711_v13 }
  0xf0   :  { %v146_v18 = vpop.f32.mrb[0].mxu0  ;;  %v156_v20 = vpop.f32.mrb[0].mxu1 }
  0xf1   :  { %v148_v21 = vpop.f32.mrb[1].mxu0  ;;  %v157_v22 = vadd.f32 %v156_v20, %v78_v17  ;;  %v158_v23 = vpop.f32.mrb[1].mxu1  ;;  %v147_v27 = vadd.f32 %v146_v18, %v78_v17 }
  0xf2   :  { %v150_v24 = vpop.f32.mrb[2].mxu0  ;;  %v159_v25 = vadd.f32 %v158_v23, %v82_v19  ;;  %v160_v26 = vpop.f32.mrb[2].mxu1  ;;  %v149_v32 = vadd.f32 %v148_v21, %v82_v19 }
  0xf3   :  { %v151_v28 = vadd.f32 %v150_v24, %v78_v17  ;;  %v152_v29 = vpop.f32.mrb[3].mxu0  ;;  %v161_v30 = vadd.f32 %v160_v26, %v78_v17  ;;  %v162_v31 = vpop.f32.mrb[3].mxu1 }
  0xf4   :  { %v153_v33 = vadd.f32 %v152_v29, %v82_v19  ;;  %v163_v34 = vadd.f32 %v162_v31, %v82_v19 }
  0xf5   :  { %v3870_v35 = vpack.c.bf16 %v151_v28, %v147_v27  ;;  %v3872_v36 = vpack.c.bf16 %v161_v30, %v157_v22 }
  0xf6   :  { %v3874_v37 = vpack.c.bf16 %v153_v33, %v149_v32  ;;  %v3876_v38 = vpack.c.bf16 %v163_v34, %v159_v25 }
  0xf7   :  { %170 = vrot.lane.b32.xlu0 %v3870_v35, %s3713_s28 }
  0xfb   :  { %221 = vrot.lane.b32.xlu0 %v3872_v36, %s3713_s28 }
 0x169   :  { %v171_v39 = vpop.permute.xlu0 %170 }
 0x16a   :  { %v177_v40 = vsel %vm172_vm2, %v171_v39, 0 }
 0x16b   :  { %3215 = vmatpush3.bf16.xpose.msra.mxu1 %v177_v40 }
 0x16c   :  { %3220 = vmatprep.subr.bf16.mxu1 %v3711_v13 }
 0x16d   :  { %v222_v41 = vpop.permute.xlu0 %221 }
 0x16e   :  { %v227_v42 = vsel %vm172_vm2, %v222_v41, 0 }
 0x172   :  { %3217 = vmatmul.mubr.msk.bf16.vlgmr.msra.gmra.mrb[4].mxu1 %vm172_vm2, %v3870_v35 }
 0x173   :  { %3221 = vmatpush3.bf16.xpose.msra.mxu1 %v227_v42  ;;  %3222 = vmatprep.mubr.msk.bf16.mxu1 %vm3712_vm1, %v3711_v13 }
 0x174   :  { %3232 = vmatprep.subr.bf16.mxu1 %v3711_v13 }
 0x17a   :  { %3223 = vmatmul.mubr.msk.bf16.vlgmr.msra.gmra.mrb[8].mxu1 %vm172_vm2, %v3872_v36 }
 0x17b   :  { %3234 = vmatprep.mubr.msk.bf16.mxu1 %vm3712_vm1, %v3711_v13 }
 0x245   :  { %v213_v43 = vpop.f32.mrb[4].mxu1 }
 0x246   :  { %v3218_v44 = vpop.f32.mrb[5].mxu1  ;;  %v271_v45 = vsel %vm270_vm3, %v213_v43, -inf }
 0x247   :  { %272 = vmax.xlane.f32.xlu1 %v271_v45  ;;  %v216_v46 = vpop.f32.mrb[6].mxu1 }
 0x248   :  { %v3219_v47 = vpop.f32.mrb[7].mxu1  ;;  %v274_v48 = vsel %vm270_vm3, %v216_v46, -inf }
 0x24b   :  { %275 = vmax.xlane.f32.xlu1 %v274_v48 }
 0x24d   :  { %v263_v49 = vpop.f32.mrb[8].mxu1 }
 0x24e   :  { %v3224_v50 = vpop.f32.mrb[9].mxu1  ;;  %v277_v51 = vsel %vm270_vm3, %v263_v49, -inf }
 0x24f   :  { %278 = vmax.xlane.f32.xlu0 %v277_v51  ;;  %v266_v52 = vpop.f32.mrb[10].mxu1 }
 0x250   :  { %v3225_v53 = vpop.f32.mrb[11].mxu1  ;;  %v280_v54 = vsel %vm270_vm3, %v266_v52, -inf }
 0x25c   :  { %309 = vrot.lane.b32.xlu1 %v3870_v35, %s3708_s23 }
 0x260   :  { %356 = vrot.lane.b32.xlu1 %v3872_v36, %s3708_s23 }
 0x264   :  { %417 = vrot.lane.b32.xlu1 %v3870_v35, %s3714_s29 }
 0x265   :  { %415 = vrot.lane.b32.xlu0 %v3870_v35, %s3715_s15 }
 0x288   :  { %281 = vmax.xlane.f32.xlu1 %v280_v54 }
 0x299   :  { %468 = vrot.lane.b32.xlu1 %v3872_v36, %s3714_s29 }
 0x29d   :  { %466 = vrot.lane.b32.xlu1 %v3872_v36, %s3715_s15 }
 0x2a1   :  { %555 = vrot.lane.b32.xlu1 %v3870_v35, %s3716_s16 }
 0x2d4   :  { %v273_v55 = vpop.xlane.xlu1 %272 }
 0x2d5   :  { %v283_v56 = vsub.f32 %v213_v43, %v273_v55 }
 0x2d7   :  { %v287_v57 = vmul.f32 1.442695, %v283_v56 }
 0x2d8   :  { %v276_v58 = vpop.xlane.xlu1 %275 }
 0x2d9   :  { %v284_v59 = vsub.f32 %v216_v46, %v276_v58  ;;  %3491 = vpow2.f32 %v287_v57 }
 0x2db   :  { %v289_v60 = vmul.f32 1.442695, %v284_v59 }
 0x2dc   :  { %v310_v61 = vpop.permute.xlu1 %309  ;;  %v279_v9 = vpop.xlane.xlu0 %278 }
 0x2dd   :  { %3493 = vpow2.f32 %v289_v60  ;;  %3227 = vmatpush3.bf16.msra.mxu0 %v310_v61  ;;  %v285_v11 = vsub.f32 %v263_v49, %v279_v9 }
 0x2de   :  { %3238 = vmatprep.subr.bf16.mxu0 %v3711_v13 }
 0x2df   :  { %v291_v15 = vmul.f32 1.442695, %v285_v11 }
 0x2e0   :  { %v357_v62 = vpop.permute.xlu1 %356  ;;  %v416_v10 = vpop.permute.xlu0 %415 }
 0x2e1   :  { %3233 = vmatpush3.bf16.msra.mxu1 %v357_v62  ;;  %3495 = vpow2.f32 %v291_v15 }
 0x2e2   :  { %3244 = vmatprep.subr.bf16.mxu1 %v3711_v13 }
 0x2e3   :  { %v3914_v63 = vpop.eup %3491 }
 0x2e4   :  { %v418_v2 = vpop.permute.xlu1 %417 }
 0x2e5   :  { %v423_v4 = vsel %vm172_vm2, %v418_v2, 0 }
 0x2e7   :  { %v3916_v1 = vpop.eup %3493 }
 0x2e8   :  { %v307_v3 = vpack.c.bf16 %v3916_v1, %v3914_v63 }
 0x2ea   :  { %3229 = vmatmul.mubr.msk.bf16.vlgmr.msra.gmra.mrb[4].mxu0 %vm270_vm3, %v307_v3 }
 0x2eb   :  { %3239 = vmatpush3.bf16.xpose.msra.mxu0 %v423_v4  ;;  %3240 = vmatprep.mubr.msk.bf16.mxu0 %vm3712_vm1, %v3711_v13  ;;  %v3928_v23 = vpop.eup %3495 }
 0x2ec   :  { %3250 = vmatprep.subr.bf16.mxu0 %v3711_v13 }
 0x2f2   :  { %3241 = vmatmul.mubr.msk.bf16.vlgmr.msra.gmra.mrb[8].mxu0 %vm172_vm2, %v416_v10 }
 0x2f3   :  { %3252 = vmatprep.mubr.msk.bf16.mxu0 %vm3712_vm1, %v3711_v13 }
 0x315   :  { %v282_v17 = vpop.xlane.xlu1 %281 }
 0x316   :  { %v286_v18 = vsub.f32 %v266_v52, %v282_v17 }
 0x318   :  { %v293_v19 = vmul.f32 1.442695, %v286_v18 }
 0x319   :  { %v469_v20 = vpop.permute.xlu1 %468 }
 0x31a   :  { %3497 = vpow2.f32 %v293_v19  ;;  %v474_v26 = vsel %vm172_vm2, %v469_v20, 0 }
 0x31d   :  { %v467_v21 = vpop.permute.xlu1 %466 }
 0x321   :  { %v556_v22 = vpop.permute.xlu1 %555 }
 0x322   :  { %3251 = vmatpush3.bf16.msra.mxu0 %v556_v22 }
 0x323   :  { %3262 = vmatprep.subr.bf16.mxu0 %v3711_v13 }
 0x324   :  { %v3931_v24 = vpop.eup %3497 }
 0x325   :  { %v308_v25 = vpack.c.bf16 %v3931_v24, %v3928_v23 }
 0x327   :  { %3235 = vmatmul.mubr.msk.bf16.vlgmr.msra.gmra.mrb[12].mxu1 %vm270_vm3, %v308_v25 }
 0x328   :  { %3245 = vmatpush3.bf16.xpose.msra.mxu1 %v474_v26  ;;  %3246 = vmatprep.mubr.msk.bf16.mxu1 %vm3712_vm1, %v3711_v13 }
 0x329   :  { %3256 = vmatprep.subr.bf16.mxu1 %v3711_v13 }
 0x32f   :  { %3247 = vmatmul.mubr.msk.bf16.vlgmr.msra.gmra.mrb[16].mxu1 %vm172_vm2, %v467_v21 }
 0x330   :  { %3258 = vmatprep.mubr.msk.bf16.mxu1 %vm3712_vm1, %v3711_v13 }
 0x3bd   :  { %v3943_v27 = vpop.f32.mrb[4].mxu0 }
 0x3be   :  { %v3230_v28 = vpop.f32.mrb[5].mxu0 }
 0x3bf   :  { %v3945_v29 = vpop.f32.mrb[6].mxu0 }
 0x3c0   :  { %v3231_v30 = vpop.f32.mrb[7].mxu0 }
 0x3c5   :  { %v459_v31 = vpop.f32.mrb[8].mxu0 }
 0x3c6   :  { %v3242_v32 = vpop.f32.mrb[9].mxu0  ;;  %v517_v33 = vsel %vm270_vm3, %v459_v31, -inf }
 0x3c7   :  { %v462_v34 = vpop.f32.mrb[10].mxu0  ;;  %518 = vmax.xlane.f32.xlu1 %v517_v33 }
 0x3c8   :  { %v3243_v39 = vpop.f32.mrb[11].mxu0  ;;  %v520_v40 = vsel %vm270_vm3, %v462_v34, -inf }
 0x3c9   :  { %521 = vmax.xlane.f32.xlu0 %v520_v40 }
 0x3d8   :  { %663 = vrot.lane.b32.xlu1 %v3870_v35, %s3717_s17 }
 0x3df   :  { %602 = vrot.lane.b32.xlu0 %v3872_v36, %s3716_s16 }
 0x3e3   :  { %661 = vrot.lane.b32.xlu0 %v3870_v35, %s3718_s4 }
 0x3fa   :  { %v3955_v41 = vpop.f32.mrb[12].mxu1 }
 0x3fb   :  { %v3236_v42 = vpop.f32.mrb[13].mxu1 }
 0x3fc   :  { %v3957_v43 = vpop.f32.mrb[14].mxu1 }
 0x3fd   :  { %v3237_v44 = vpop.f32.mrb[15].mxu1 }
 0x402   :  { %v510_v45 = vpop.f32.mrb[16].mxu1 }
 0x403   :  { %v3248_v46 = vpop.f32.mrb[17].mxu1  ;;  %v523_v47 = vsel %vm270_vm3, %v510_v45, -inf }
 0x404   :  { %524 = vmax.xlane.f32.xlu1 %v523_v47  ;;  %v513_v48 = vpop.f32.mrb[18].mxu1 }
 0x405   :  { %v3249_v49 = vpop.f32.mrb[19].mxu1  ;;  %v526_v50 = vsel %vm270_vm3, %v513_v48, -inf }
 0x408   :  { %527 = vmax.xlane.f32.xlu1 %v526_v50 }
 0x419   :  { %714 = vrot.lane.b32.xlu1 %v3872_v36, %s3717_s17 }
 0x41d   :  { %712 = vrot.lane.b32.xlu1 %v3872_v36, %s3718_s4 }
 0x421   :  { %903 = vrot.lane.b32.xlu1 %v3870_v35, %s3719_s30 }
 0x454   :  { %v519_v51 = vpop.xlane.xlu1 %518 }
 0x455   :  { %v529_v52 = vsub.f32 %v459_v31, %v519_v51 }
 0x456   :  { %v522_v53 = vpop.xlane.xlu0 %521 }
 0x457   :  { %v533_v54 = vmul.f32 1.442695, %v529_v52  ;;  %v530_v55 = vsub.f32 %v462_v34, %v522_v53 }
 0x458   :  { %v664_v60 = vpop.permute.xlu1 %663 }
 0x459   :  { %v535_v56 = vmul.f32 1.442695, %v530_v55  ;;  %3499 = vpow2.f32 %v533_v54  ;;  %v669_v62 = vsel %vm172_vm2, %v664_v60, 0 }
 0x45a   :  { %v603_v57 = vpop.permute.xlu0 %602 }
 0x45b   :  { %3501 = vpow2.f32 %v535_v56  ;;  %3257 = vmatpush3.bf16.msra.mxu1 %v603_v57 }
 0x45c   :  { %3268 = vmatprep.subr.bf16.mxu1 %v3711_v13 }
 0x45e   :  { %v662_v2 = vpop.permute.xlu0 %661 }
 0x463   :  { %v3968_v58 = vpop.eup %3499 }
 0x465   :  { %v3970_v59 = vpop.eup %3501 }
 0x466   :  { %v553_v61 = vpack.c.bf16 %v3970_v59, %v3968_v58 }
 0x468   :  { %3253 = vmatmul.mubr.msk.bf16.vlgmr.msra.gmra.mrb[12].mxu0 %vm270_vm3, %v553_v61 }
 0x469   :  { %3263 = vmatpush3.bf16.xpose.msra.mxu0 %v669_v62  ;;  %3264 = vmatprep.mubr.msk.bf16.mxu0 %vm3712_vm1, %v3711_v13 }
 0x46a   :  { %3274 = vmatprep.subr.bf16.mxu0 %v3711_v13 }
 0x470   :  { %3265 = vmatmul.mubr.msk.bf16.vlgmr.msra.gmra.mrb[16].mxu0 %vm172_vm2, %v662_v2 }
 0x471   :  { %3275 = vmatpush3.bf16.msra.mxu0 %v3874_v37  ;;  %3276 = vmatprep.mubr.msk.bf16.mxu0 %vm3712_vm1, %v3711_v13 }
 0x472   :  { %3286 = vmatprep.subr.bf16.mxu0 %v3711_v13 }
 0x491   :  { %v525_v3 = vpop.xlane.xlu1 %524 }
 0x492   :  { %v531_v4 = vsub.f32 %v510_v45, %v525_v3 }
 0x494   :  { %v537_v9 = vmul.f32 1.442695, %v531_v4 }
 0x495   :  { %v528_v10 = vpop.xlane.xlu1 %527 }
 0x496   :  { %v532_v11 = vsub.f32 %v513_v48, %v528_v10  ;;  %3503 = vpow2.f32 %v537_v9 }
 0x498   :  { %v539_v15 = vmul.f32 1.442695, %v532_v11 }
 0x499   :  { %v715_v19 = vpop.permute.xlu1 %714 }
 0x49a   :  { %3505 = vpow2.f32 %v539_v15  ;;  %v720_v21 = vsel %vm172_vm2, %v715_v19, 0 }
 0x49d   :  { %v713_v22 = vpop.permute.xlu1 %712 }
 0x4a0   :  { %v3984_v17 = vpop.eup %3503 }
 0x4a4   :  { %v3986_v18 = vpop.eup %3505 }
 0x4a5   :  { %v554_v20 = vpack.c.bf16 %v3986_v18, %v3984_v17 }
 0x4a7   :  { %3259 = vmatmul.mubr.msk.bf16.vlgmr.msra.gmra.mrb[20].mxu1 %vm270_vm3, %v554_v20 }
 0x4a8   :  { %3269 = vmatpush3.bf16.xpose.msra.mxu1 %v720_v21  ;;  %3270 = vmatprep.mubr.msk.bf16.mxu1 %vm3712_vm1, %v3711_v13 }
 0x4a9   :  { %3280 = vmatprep.subr.bf16.mxu1 %v3711_v13 }
 0x4af   :  { %3271 = vmatmul.mubr.msk.bf16.vlgmr.msra.gmra.mrb[24].mxu1 %vm172_vm2, %v713_v22 }
 0x4b0   :  { %3281 = vmatpush3.bf16.msra.mxu1 %v3876_v38  ;;  %3282 = vmatprep.mubr.msk.bf16.mxu1 %vm3712_vm1, %v3711_v13 }
 0x4b1   :  { %3292 = vmatprep.subr.bf16.mxu1 %v3711_v13 }
 0x53b   :  { %v4000_v25 = vpop.f32.mrb[12].mxu0 }
 0x53c   :  { %v3254_v26 = vpop.f32.mrb[13].mxu0 }
 0x53d   :  { %v4002_v28 = vpop.f32.mrb[14].mxu0 }
 0x53e   :  { %v3255_v30 = vpop.f32.mrb[15].mxu0 }
 0x543   :  { %v705_v31 = vpop.f32.mrb[16].mxu0 }
 0x544   :  { %v3266_v32 = vpop.f32.mrb[17].mxu0  ;;  %v763_v33 = vsel %vm270_vm3, %v705_v31, -inf }
 0x545   :  { %764 = vmax.xlane.f32.xlu0 %v763_v33  ;;  %v708_v34 = vpop.f32.mrb[18].mxu0 }
 0x546   :  { %v3267_v39 = vpop.f32.mrb[19].mxu0  ;;  %v766_v40 = vsel %vm270_vm3, %v708_v34, -inf }
 0x547   :  { %767 = vmax.xlane.f32.xlu1 %v766_v40 }
 0x558   :  { %901 = vrot.lane.b32.xlu1 %v3870_v35, %s3720_s18  ;;  %v904_v35 = vpop.permute.xlu1 %903 }
 0x559   :  { %v909_v3 = vsel %vm172_vm2, %v904_v35, 0 }
 0x55c   :  { %952 = vrot.lane.b32.xlu1 %v3872_v36, %s3720_s18 }
 0x57a   :  { %v4010_v42 = vpop.f32.mrb[20].mxu1 }
 0x57b   :  { %v3260_v44 = vpop.f32.mrb[21].mxu1 }
 0x57c   :  { %v4012_v45 = vpop.f32.mrb[22].mxu1 }
 0x57d   :  { %v3261_v46 = vpop.f32.mrb[23].mxu1 }
 0x582   :  { %v756_v47 = vpop.f32.mrb[24].mxu1 }
 0x583   :  { %v3272_v48 = vpop.f32.mrb[25].mxu1  ;;  %v769_v49 = vsel %vm270_vm3, %v756_v47, -inf }
 0x584   :  { %770 = vmax.xlane.f32.xlu0 %v769_v49  ;;  %v759_v50 = vpop.f32.mrb[26].mxu1 }
 0x585   :  { %v3273_v51 = vpop.f32.mrb[27].mxu1  ;;  %v772_v52 = vsel %vm270_vm3, %v759_v50, -inf }
 0x588   :  { %773 = vmax.xlane.f32.xlu0 %v772_v52 }
 0x59e   :  { %954 = vrot.lane.b32.xlu0 %v3872_v36, %s3719_s30 }
 0x5d2   :  { %v765_v53 = vpop.xlane.xlu0 %764 }
 0x5d3   :  { %v775_v54 = vsub.f32 %v705_v31, %v765_v53 }
 0x5d4   :  { %v768_v55 = vpop.xlane.xlu1 %767 }
 0x5d5   :  { %v779_v56 = vmul.f32 1.442695, %v775_v54  ;;  %v776_v57 = vsub.f32 %v708_v34, %v768_v55  ;;  %v541_v54 = vsel %vm270_vm3, %v3968_v58, 0.0  ;;  %v301_v55 = vsel %vm270_vm3, %v3928_v23, 0.0 }
 0x5d7   :  { %v781_v60 = vmul.f32 1.442695, %v776_v57  ;;  %3507 = vpow2.f32 %v779_v56 }
 0x5d8   :  { %v902_v36 = vpop.permute.xlu1 %901 }
 0x5d9   :  { %3509 = vpow2.f32 %v781_v60 }
 0x5dc   :  { %v953_v31 = vpop.permute.xlu1 %952 }
 0x5e1   :  { %v4018_v61 = vpop.eup %3507 }
 0x5e2   :  { %v787_v58 = vsel %vm270_vm3, %v4018_v61, 0.0 }
 0x5e3   :  { %v4020_v62 = vpop.eup %3509 }
 0x5e4   :  { %v799_v2 = vpack.c.bf16 %v4020_v62, %v4018_v61  ;;  %v550_v61 = vsel %vm270_vm3, %v3986_v18, 0.0 }
 0x5e6   :  { %3277 = vmatmul.mubr.msk.bf16.vlgmr.msra.gmra.mrb[20].mxu0 %vm270_vm3, %v799_v2  ;;  %v547_v2 = vsel %vm270_vm3, %v3984_v17, 0.0  ;;  %v544_v17 = vsel %vm270_vm3, %v3970_v59, 0.0 }
 0x5e7   :  { %3287 = vmatpush3.bf16.xpose.msra.mxu0 %v909_v3  ;;  %3288 = vmatprep.mubr.msk.bf16.mxu0 %vm3712_vm1, %v3711_v13 }
 0x5e8   :  { %3298 = vmatprep.subr.bf16.mxu0 %v3711_v13 }
 0x5ee   :  { %3289 = vmatmul.mubr.msk.bf16.vlgmr.msra.gmra.mrb[24].mxu0 %vm172_vm2, %v902_v36  ;;  %v298_v36 = vsel %vm270_vm3, %v3916_v1, 0.0 }
 0x5ef   :  { %3300 = vmatprep.mubr.msk.bf16.mxu0 %vm3712_vm1, %v3711_v13 }
 0x611   :  { %v771_v4 = vpop.xlane.xlu0 %770 }
 0x612   :  { %v777_v9 = vsub.f32 %v756_v47, %v771_v4  ;;  %v304_v4 = vsel %vm270_vm3, %v3931_v24, 0.0 }
 0x614   :  { %v783_v10 = vmul.f32 1.442695, %v777_v9  ;;  %v790_v9 = vsel %vm270_vm3, %v4020_v62, 0.0 }
 0x615   :  { %v774_v11 = vpop.xlane.xlu0 %773 }
 0x616   :  { %v778_v15 = vsub.f32 %v759_v50, %v774_v11  ;;  %3511 = vpow2.f32 %v783_v10  ;;  %v295_v50 = vsel %vm270_vm3, %v3914_v63, 0.0 }
 0x618   :  { %v785_v19 = vmul.f32 1.442695, %v778_v15 }
 0x619   :  { %v955_v22 = vpop.permute.xlu0 %954 }
 0x61a   :  { %3513 = vpow2.f32 %v785_v19  ;;  %v960_v30 = vsel %vm172_vm2, %v955_v22, 0 }
 0x620   :  { %v3512_v20 = vpop.eup %3511 }
 0x621   :  { %v793_v23 = vsel %vm270_vm3, %v3512_v20, 0.0 }
 0x624   :  { %v3514_v21 = vpop.eup %3513 }
 0x625   :  { %v800_v26 = vpack.c.bf16 %v3514_v21, %v3512_v20  ;;  %v796_v1 = vsel %vm270_vm3, %v3514_v21, 0.0 }
 0x627   :  { %3283 = vmatmul.mubr.msk.bf16.vlgmr.msra.gmra.mrb[28].mxu1 %vm270_vm3, %v800_v26 }
 0x628   :  { %3293 = vmatpush3.bf16.xpose.msra.mxu1 %v960_v30  ;;  %3294 = vmatprep.mubr.msk.bf16.mxu1 %vm3712_vm1, %v3711_v13 }
 0x629   :  { %3304 = vmatprep.subr.bf16.mxu1 %v3711_v13 }
 0x62f   :  { %3295 = vmatmul.mubr.msk.bf16.vlgmr.msra.gmra.mrb[32].mxu1 %vm172_vm2, %v953_v31 }
 0x630   :  { %3306 = vmatprep.mubr.msk.bf16.mxu1 %vm3712_vm1, %v3711_v13 }
 0x6b9   :  { %v4040_v32 = vpop.f32.mrb[20].mxu0 }
 0x6ba   :  { %v3278_v33 = vpop.f32.mrb[21].mxu0 }
 0x6bb   :  { %v4042_v34 = vpop.f32.mrb[22].mxu0 }
 0x6bc   :  { %v3279_v39 = vpop.f32.mrb[23].mxu0 }
 0x6c1   :  { %v945_v40 = vpop.f32.mrb[24].mxu0 }
 0x6c2   :  { %v3290_v44 = vpop.f32.mrb[25].mxu0  ;;  %v1003_v46 = vsel %vm270_vm3, %v945_v40, -inf }
 0x6c3   :  { %v948_v47 = vpop.f32.mrb[26].mxu0  ;;  %1004 = vmax.xlane.f32.xlu0 %v1003_v46 }
 0x6c4   :  { %v3291_v48 = vpop.f32.mrb[27].mxu0  ;;  %v1006_v49 = vsel %vm270_vm3, %v948_v47, -inf }
 0x6c5   :  { %1007 = vmax.xlane.f32.xlu1 %v1006_v49 }
 0x6d6   :  { %1042 = vrot.lane.b32.xlu1 %v3874_v37, %s3713_s28 }
 0x6fa   :  { %296 = vadd.xlane.f32.xlu1 %v295_v50  ;;  %v4050_v51 = vpop.f32.mrb[28].mxu1 }
 0x6fb   :  { %v3284_v52 = vpop.f32.mrb[29].mxu1 }
 0x6fc   :  { %v4052_v35 = vpop.f32.mrb[30].mxu1 }
 0x6fd   :  { %v3285_v53 = vpop.f32.mrb[31].mxu1 }
 0x6fe   :  { %542 = vadd.xlane.f32.xlu1 %v541_v54 }
 0x702   :  { %302 = vadd.xlane.f32.xlu1 %v301_v55  ;;  %v996_v56 = vpop.f32.mrb[32].mxu1 }
 0x703   :  { %v3296_v37 = vpop.f32.mrb[33].mxu1  ;;  %v1009_v57 = vsel %vm270_vm3, %v996_v56, -inf }
 0x704   :  { %1010 = vmax.xlane.f32.xlu0 %v1009_v57  ;;  %v999_v63 = vpop.f32.mrb[34].mxu1 }
 0x705   :  { %v3297_v60 = vpop.f32.mrb[35].mxu1  ;;  %v1012_v3 = vsel %vm270_vm3, %v999_v63, -inf }
 0x706   :  { %548 = vadd.xlane.f32.xlu1 %v547_v2 }
 0x708   :  { %1013 = vmax.xlane.f32.xlu0 %v1012_v3 }
 0x70a   :  { %788 = vadd.xlane.f32.xlu1 %v787_v58 }
 0x70e   :  { %794 = vadd.xlane.f32.xlu1 %v793_v23 }
 0x71e   :  { %1090 = vrot.lane.b32.xlu0 %v3876_v38, %s3713_s28 }
 0x73d   :  { %299 = vadd.xlane.f32.xlu0 %v298_v36 }
 0x741   :  { %545 = vadd.xlane.f32.xlu0 %v544_v17 }
 0x745   :  { %305 = vadd.xlane.f32.xlu0 %v304_v4 }
 0x749   :  { %551 = vadd.xlane.f32.xlu0 %v550_v61 }
 0x74d   :  { %791 = vadd.xlane.f32.xlu0 %v790_v9 }
 0x750   :  { %v1005_v38 = vpop.xlane.xlu0 %1004 }
 0x751   :  { %v1015_v10 = vsub.f32 %v945_v40, %v1005_v38  ;;  %797 = vadd.xlane.f32.xlu0 %v796_v1 }
 0x752   :  { %v1008_v11 = vpop.xlane.xlu1 %1007 }
 0x753   :  { %v1019_v59 = vmul.f32 1.442695, %v1015_v10  ;;  %v1016_v15 = vsub.f32 %v948_v47, %v1008_v11 }
 0x755   :  { %3515 = vpow2.f32 %v1019_v59  ;;  %v1021_v19 = vmul.f32 1.442695, %v1016_v15 }
 0x756   :  { %v1043_v24 = vpop.permute.xlu1 %1042 }
 0x757   :  { %3517 = vpow2.f32 %v1021_v19  ;;  %3299 = vmatpush3.bf16.msra.mxu0 %v1043_v24 }
 0x75f   :  { %v3516_v20 = vpop.eup %3515 }
 0x760   :  { %v1027_v18 = vsel %vm270_vm3, %v3516_v20, 0.0 }
 0x761   :  { %v3518_v22 = vpop.eup %3517  ;;  %1028 = vadd.xlane.f32.xlu1 %v1027_v18 }
 0x762   :  { %v1030_v62 = vsel %vm270_vm3, %v3518_v22, 0.0  ;;  %v1039_v26 = vpack.c.bf16 %v3518_v22, %v3516_v20 }
 0x763   :  { %1031 = vadd.xlane.f32.xlu0 %v1030_v62 }
 0x764   :  { %3301 = vmatmul.mubr.msk.bf16.vlgmr.msra.gmra.mrb[28].mxu0 %vm270_vm3, %v1039_v26 }
 0x787   :  { %v297_v21 = vpop.xlane.xlu1 %296 }
 0x788   :  { %3519 = vrcp.f32 %v297_v21 }
 0x78b   :  { %v543_v30 = vpop.xlane.xlu1 %542 }
 0x78c   :  { %3521 = vrcp.f32 %v543_v30 }
 0x78f   :  { %v303_v31 = vpop.xlane.xlu1 %302 }
 0x790   :  { %3523 = vrcp.f32 %v303_v31 }
 0x791   :  { %v1011_v33 = vpop.xlane.xlu0 %1010 }
 0x792   :  { %v1017_v39 = vsub.f32 %v996_v56, %v1011_v33  ;;  %v3520_v44 = vpop.eup %3519 }
 0x793   :  { %v549_v40 = vpop.xlane.xlu1 %548  ;;  %v407_v52 = vmul.f32 %v3520_v44, %v3943_v27 }
 0x794   :  { %v1023_v46 = vmul.f32 1.442695, %v1017_v39  ;;  %3525 = vrcp.f32 %v549_v40 }
 0x795   :  { %v1014_v47 = vpop.xlane.xlu0 %1013 }
 0x796   :  { %v3522_v48 = vpop.eup %3521  ;;  %3527 = vpow2.f32 %v1023_v46  ;;  %v1018_v49 = vsub.f32 %v999_v63, %v1014_v47 }
 0x797   :  { %v789_v50 = vpop.xlane.xlu1 %788  ;;  %v653_v53 = vmul.f32 %v3522_v48, %v4000_v25 }
 0x798   :  { %v1025_v54 = vmul.f32 1.442695, %v1018_v49  ;;  %3529 = vrcp.f32 %v789_v50 }
 0x799   :  { %v1091_v55 = vpop.permute.xlu0 %1090  ;;  %v657_v37 = vadd.f32 %v653_v53, %v407_v52 }
 0x79a   :  { %3531 = vpow2.f32 %v1025_v54  ;;  %3305 = vmatpush3.bf16.msra.mxu1 %v1091_v55  ;;  %v3524_v57 = vpop.eup %3523 }
 0x79b   :  { %v795_v56 = vpop.xlane.xlu1 %794  ;;  %v409_v2 = vmul.f32 %v3524_v57, %v3955_v41 }
 0x79c   :  { %3533 = vrcp.f32 %v795_v56 }
 0x79e   :  { %v3526_v60 = vpop.eup %3525 }
 0x79f   :  { %v655_v3 = vmul.f32 %v3526_v60, %v4010_v42 }
 0x7a0   :  { %v3528_v63 = vpop.eup %3527 }
 0x7a1   :  { %v1033_v58 = vsel %vm270_vm3, %v3528_v63, 0.0  ;;  %v659_v27 = vadd.f32 %v655_v3, %v409_v2 }
 0x7a2   :  { %v3530_v23 = vpop.eup %3529  ;;  %1034 = vadd.xlane.f32.xlu1 %v1033_v58 }
 0x7a3   :  { %v893_v25 = vmul.f32 %v3530_v23, %v4040_v32 }
 0x7a4   :  { %v3532_v36 = vpop.eup %3531 }
 0x7a5   :  { %v1036_v17 = vsel %vm270_vm3, %v3532_v36, 0.0  ;;  %v1040_v4 = vpack.c.bf16 %v3532_v36, %v3528_v63  ;;  %v897_v61 = vadd.f32 %v893_v25, %v657_v37 }
 0x7a6   :  { %v3534_v9 = vpop.eup %3533  ;;  %1037 = vadd.xlane.f32.xlu0 %v1036_v17 }
 0x7a7   :  { %3307 = vmatmul.mubr.msk.bf16.vlgmr.msra.gmra.mrb[36].mxu1 %vm270_vm3, %v1040_v4  ;;  %v895_v41 = vmul.f32 %v3534_v9, %v4050_v51 }
 0x7a9   :  { %v899_v42 = vadd.f32 %v895_v41, %v659_v27 }
 0x7ca   :  { %v300_v38 = vpop.xlane.xlu0 %299 }
 0x7cb   :  { %3535 = vrcp.f32 %v300_v38 }
 0x7ce   :  { %v546_v1 = vpop.xlane.xlu0 %545 }
 0x7cf   :  { %3537 = vrcp.f32 %v546_v1 }
 0x7d2   :  { %v306_v10 = vpop.xlane.xlu0 %305 }
 0x7d3   :  { %3539 = vrcp.f32 %v306_v10 }
 0x7d5   :  { %v3536_v32 = vpop.eup %3535 }
 0x7d6   :  { %v552_v11 = vpop.xlane.xlu0 %551  ;;  %v408_v19 = vmul.f32 %v3536_v32, %v3945_v29 }
 0x7d7   :  { %3541 = vrcp.f32 %v552_v11 }
 0x7d9   :  { %v3538_v59 = vpop.eup %3537 }
 0x7da   :  { %v792_v15 = vpop.xlane.xlu0 %791  ;;  %v654_v24 = vmul.f32 %v3538_v59, %v4002_v28 }
 0x7db   :  { %3543 = vrcp.f32 %v792_v15 }
 0x7dc   :  { %v658_v20 = vadd.f32 %v654_v24, %v408_v19 }
 0x7dd   :  { %v3540_v51 = vpop.eup %3539 }
 0x7de   :  { %v798_v18 = vpop.xlane.xlu0 %797  ;;  %v410_v62 = vmul.f32 %v3540_v51, %v3957_v43 }
 0x7df   :  { %3545 = vrcp.f32 %v798_v18 }
 0x7e1   :  { %v3542_v22 = vpop.eup %3541 }
 0x7e2   :  { %v656_v26 = vmul.f32 %v3542_v22, %v4012_v45 }
 0x7e4   :  { %v660_v21 = vadd.f32 %v656_v26, %v410_v62 }
 0x7e5   :  { %v3544_v30 = vpop.eup %3543 }
 0x7e6   :  { %v894_v31 = vmul.f32 %v3544_v30, %v4042_v34  ;;  %v3052_v34 = vld [vmem:[%s4506_s3] ss:$0 sm:$0xff] }
 0x7e8   :  { %v898_v33 = vadd.f32 %v894_v31, %v658_v20 }
 0x7e9   :  { %v3546_v39 = vpop.eup %3545 }
 0x7ea   :  { %v896_v29 = vmul.f32 %v3546_v39, %v4052_v35 }
 0x7ec   :  { %v900_v40 = vadd.f32 %v896_v29, %v660_v21  ;;  %v3473_v29 = vld [vmem:[#allocation2] sm:$0xff]  }
 0x7ed   :  { %3310 = vmatprep.subr.bf16.mxu0 %v3473_v29 }
 0x7ee   :  { %v1029_v28 = vpop.xlane.xlu1 %1028  ;;  %3311 = vmatpush3.bf16.msra.mxu0 %v3473_v29 }
 0x7ef   :  { %3547 = vrcp.f32 %v1029_v28  ;;  %v3475_v28 = vld [vmem:[%s4509_s6] sm:$0xff]  }
 0x7f0   :  { %v1032_v44 = vpop.xlane.xlu0 %1031  ;;  %3318 = vmatprep.subr.bf16.mxu1 %v3475_v28 }
 0x7f1   :  { %3549 = vrcp.f32 %v1032_v44  ;;  %v3476_v44 = vld [vmem:[%s4509_s6 + $0x8] sm:$0xff]   ;;  %3319 = vmatpush3.bf16.msra.mxu1 %v3475_v28 }
 0x7f2   :  { %3320 = vmatprep.subr.bf16.mxu1 %v3476_v44 }
 0x7f5   :  { %3321 = vmatpush3.bf16.msra.mxu1 %v3476_v44 }
 0x7f9   :  { %v3548_v46 = vpop.eup %3547 }
 0x7fb   :  { %v3550_v43 = vpop.eup %3549 }
 0x82f   :  { %v1035_v2 = vpop.xlane.xlu1 %1034 }
 0x830   :  { %3551 = vrcp.f32 %v1035_v2 }
 0x833   :  { %v1038_v3 = vpop.xlane.xlu0 %1037 }
 0x834   :  { %3553 = vrcp.f32 %v1038_v3 }
 0x837   :  { %v1082_v47 = vpop.f32.mrb[28].mxu0 }
 0x838   :  { %v1141_v48 = vmul.f32 %v3548_v46, %v1082_v47  ;;  %v3302_v49 = vpop.f32.mrb[29].mxu0 }
 0x839   :  { %v1085_v50 = vpop.f32.mrb[30].mxu0 }
 0x83a   :  { %v1145_v45 = vadd.f32 %v1141_v48, %v897_v61  ;;  %v1142_v52 = vmul.f32 %v3550_v43, %v1085_v50  ;;  %v3303_v53 = vpop.f32.mrb[31].mxu0  ;;  %v3552_v63 = vpop.eup %3551 }
 0x83c   :  { %v1146_v54 = vadd.f32 %v1142_v52, %v898_v33  ;;  %v1149_v35 = vadd.f32 %v1145_v45, %v3830_v5  ;;  %v3053_v52 = vld [vmem:[%s4511_s8] ss:$0 sm:$0xff] }
 0x83e   :  { %v1160_v55 = vadd.f32 %v3052_v34, %v1149_v35  ;;  %v1150_v37 = vadd.f32 %v1146_v54, %v3835_v6  ;;  %v3554_v25 = vpop.eup %3553 }
 0x840   :  { %v1166_v56 = vsel %vm105_vm0, %v1160_v55, 0.0  ;;  %v1161_v57 = vadd.f32 %v3052_v34, %v1150_v37 }
 0x841   :  { %1167 = vadd.xlane.f32.xlu1 %v1166_v56 }
 0x842   :  { %v1169_v60 = vsel %vm105_vm0, %v1161_v57, 0.0 }
 0x843   :  { %1170 = vadd.xlane.f32.xlu0 %v1169_v60 }
 0x87a   :  { %v1130_v58 = vpop.f32.mrb[36].mxu1 }
 0x87b   :  { %v1143_v27 = vmul.f32 %v3552_v63, %v1130_v58  ;;  %v3308_v23 = vpop.f32.mrb[37].mxu1 }
 0x87c   :  { %v1133_v5 = vpop.f32.mrb[38].mxu1 }
 0x87d   :  { %v1147_v36 = vadd.f32 %v1143_v27, %v899_v42  ;;  %v1144_v17 = vmul.f32 %v3554_v25, %v1133_v5  ;;  %v3309_v6 = vpop.f32.mrb[39].mxu1 }
 0x87f   :  { %v1148_v4 = vadd.f32 %v1144_v17, %v900_v40  ;;  %v1151_v61 = vadd.f32 %v1147_v36, %v3840_v7  ;;  %v3474_v40 = vld [vmem:[#allocation2 + $0x8] sm:$0xff]  }
 0x880   :  { %3312 = vmatprep.subr.bf16.mxu0 %v3474_v40 }
 0x881   :  { %v1162_v9 = vadd.f32 %v3052_v34, %v1151_v61  ;;  %v1152_v41 = vadd.f32 %v1148_v4, %v3845_v8  ;;  %3313 = vmatpush3.bf16.msra.mxu0 %v3474_v40 }
 0x883   :  { %v1172_v38 = vsel %vm105_vm0, %v1162_v9, 0.0  ;;  %v1163_v1 = vadd.f32 %v3052_v34, %v1152_v41 }
 0x884   :  { %1173 = vadd.xlane.f32.xlu1 %v1172_v38  ;;  %v3477_v38 = vld [vmem:[%s4509_s6 + $0x10] sm:$0xff]  }
 0x885   :  { %v1175_v10 = vsel %vm105_vm0, %v1163_v1, 0.0  ;;  %3322 = vmatprep.subr.bf16.mxu1 %v3477_v38 }
 0x886   :  { %1176 = vadd.xlane.f32.xlu0 %v1175_v10  ;;  %3323 = vmatpush3.bf16.msra.mxu1 %v3477_v38  ;;  %v3055_v10 = vld [vmem:[%s4508_s5] ss:$0 sm:$0xff] }
 0x8ce   :  { %v1168_v11 = vpop.xlane.xlu1 %1167 }
 0x8cf   :  { %v1179_v32 = vmul.f32 0.03125, %v1168_v11 }
 0x8d0   :  { %v1171_v59 = vpop.xlane.xlu0 %1170 }
 0x8d1   :  { %v1183_v15 = vsub.f32 %v1160_v55, %v1179_v32  ;;  %v1180_v42 = vmul.f32 0.03125, %v1171_v59  ;;  %v3054_v55 = vld [vmem:[%s4512_s9] ss:$0 sm:$0xff] }
 0x8d3   :  { %v1184_v19 = vsub.f32 %v1161_v57, %v1180_v42  ;;  %v1187_v24 = vmul.f32 %v1183_v15, %v1183_v15 }
 0x8d5   :  { %v1191_v20 = vsel %vm105_vm0, %v1187_v24, 0.0  ;;  %v1188_v7 = vmul.f32 %v1184_v19, %v1184_v19 }
 0x8d6   :  { %1192 = vadd.xlane.f32.xlu1 %v1191_v20 }
 0x8d7   :  { %v1194_v8 = vsel %vm105_vm0, %v1188_v7, 0.0 }
 0x8d8   :  { %1195 = vadd.xlane.f32.xlu0 %v1194_v8 }
 0x911   :  { %v1174_v18 = vpop.xlane.xlu1 %1173 }
 0x912   :  { %v1181_v51 = vmul.f32 0.03125, %v1174_v18 }
 0x913   :  { %v1177_v22 = vpop.xlane.xlu0 %1176 }
 0x914   :  { %v1185_v62 = vsub.f32 %v1162_v9, %v1181_v51  ;;  %v1182_v26 = vmul.f32 0.03125, %v1177_v22 }
 0x916   :  { %v1186_v21 = vsub.f32 %v1163_v1, %v1182_v26  ;;  %v1189_v30 = vmul.f32 %v1185_v62, %v1185_v62  ;;  %v3478_v1 = vld [vmem:[%s4509_s6 + $0x18] sm:$0xff]   ;;  %v3060_v26 = vld [vmem:[%s4510_s7] ss:$0 sm:$0xff] }
 0x917   :  { %3324 = vmatprep.subr.bf16.mxu1 %v3478_v1 }
 0x918   :  { %v1197_v31 = vsel %vm105_vm0, %v1189_v30, 0.0  ;;  %v1190_v33 = vmul.f32 %v1186_v21, %v1186_v21  ;;  %3325 = vmatpush3.bf16.msra.mxu1 %v3478_v1 }
 0x919   :  { %1198 = vadd.xlane.f32.xlu1 %v1197_v31  ;;  %3330 = vmatprep.subr.bf16.mxu1 %v3711_v13 }
 0x91a   :  { %v1200_v39 = vsel %vm105_vm0, %v1190_v33, 0.0 }
 0x91b   :  { %1201 = vadd.xlane.f32.xlu0 %v1200_v39 }
 0x963   :  { %v1193_v46 = vpop.xlane.xlu1 %1192 }
 0x964   :  { %v1203_v47 = vmul.f32 0.03125, %v1193_v46 }
 0x965   :  { %v1196_v48 = vpop.xlane.xlu0 %1195 }
 0x966   :  { %v1207_v49 = vadd.f32 1e-05, %v1203_v47  ;;  %v1204_v43 = vmul.f32 0.03125, %v1196_v48 }
 0x968   :  { %3555 = vrsqrt.f32 %v1207_v49  ;;  %v1208_v50 = vadd.f32 1e-05, %v1204_v43 }
 0x96a   :  { %3557 = vrsqrt.f32 %v1208_v50 }
 0x972   :  { %v3556_v45 = vpop.eup %3555 }
 0x973   :  { %v1215_v53 = vmul.f32 %v3556_v45, %v1183_v15 }
 0x974   :  { %v3558_v34 = vpop.eup %3557 }
 0x975   :  { %v1216_v54 = vmul.f32 %v3558_v34, %v1184_v19  ;;  %v1225_v35 = vmul.f32 %v3053_v52, %v1215_v53 }
 0x977   :  { %v1226_v37 = vmul.f32 %v3053_v52, %v1216_v54  ;;  %v1235_v56 = vadd.f32 %v3054_v55, %v1225_v35 }
 0x979   :  { %v1236_v57 = vadd.f32 %v3054_v55, %v1226_v37 }
 0x97b   :  { %v1239_v60 = vpack.c.bf16 %v1236_v57, %v1235_v56 }
 0x97d   :  { %3314 = vmatprep.mubr.msk.bf16.mxu0 %vm105_vm0, %v1239_v60 }
 0x9a6   :  { %v1199_v2 = vpop.xlane.xlu1 %1198 }
 0x9a7   :  { %v1205_v3 = vmul.f32 0.03125, %v1199_v2 }
 0x9a8   :  { %v1202_v63 = vpop.xlane.xlu0 %1201 }
 0x9a9   :  { %v1209_v58 = vadd.f32 1e-05, %v1205_v3  ;;  %v1206_v27 = vmul.f32 0.03125, %v1202_v63 }
 0x9ab   :  { %3559 = vrsqrt.f32 %v1209_v58  ;;  %v1210_v23 = vadd.f32 1e-05, %v1206_v27 }
 0x9ad   :  { %3561 = vrsqrt.f32 %v1210_v23 }
 0x9b5   :  { %v3560_v25 = vpop.eup %3559 }
 0x9b6   :  { %v1217_v5 = vmul.f32 %v3560_v25, %v1185_v62 }
 0x9b7   :  { %v3562_v36 = vpop.eup %3561 }
 0x9b8   :  { %v1227_v17 = vmul.f32 %v3053_v52, %v1217_v5  ;;  %v1218_v6 = vmul.f32 %v3562_v36, %v1186_v21 }
 0x9ba   :  { %v1228_v4 = vmul.f32 %v3053_v52, %v1218_v6  ;;  %v1237_v61 = vadd.f32 %v3054_v55, %v1227_v17  ;;  %v3481_v6 = vld [vmem:[%s4504_s1 + $0x24] ss:$8 sps:$4 sm:$0xff]  }
 0x9bb   :  { %1544 = vmatprep.subr.bf16.mxu0 %v3481_v6 }
 0x9bc   :  { %v1238_v9 = vadd.f32 %v3054_v55, %v1228_v4  ;;  %v3479_v4 = vld [vmem:[%s4504_s1 + $0x20] ss:$8 sps:$4 sm:$0xff]  }
 0x9be   :  { %v1240_v41 = vpack.c.bf16 %v1238_v9, %v1237_v61 }
 0x9c0   :  { %3315 = vmatmul.mubr.msk.bf16.vlgmr.msra.gmra.mrb[32].mxu0 %vm105_vm0, %v1240_v41 }
 0x9c1   :  { %1576 = vmatprep.mubr.bf16.mxu0 %v3710_v0  ;;  %1545 = vmatpush1.bf16.msra.mxu0 %v3479_v4 }
 0xa93   :  { %v3316_v11 = vpop.f32.mrb[32].mxu0 }
 0xa94   :  { %v1313_v32 = vadd.f32 %v3316_v11, %v3055_v10  ;;  %v1304_v59 = vpop.f32.mrb[33].mxu0 }
 0xa95   :  { %v1305_v15 = vadd.f32 %v3055_v10, %v1304_v59  ;;  %v3317_v42 = vpop.f32.mrb[34].mxu0 }
 0xa96   :  { %v1316_v19 = vadd.f32 %v3317_v42, %v3055_v10  ;;  %v1307_v24 = vpop.f32.mrb[35].mxu0  ;;  %v1321_v7 = vmax.f32 %v1313_v32, 0.0 }
 0xa97   :  { %v1308_v20 = vadd.f32 %v3055_v10, %v1307_v24  ;;  %v1319_v18 = vmax.f32 %v1305_v15, 0.0 }
 0xa98   :  { %v1322_v8 = vmax.f32 %v1316_v19, 0.0 }
 0xa99   :  { %v1320_v51 = vmax.f32 %v1308_v20, 0.0 }
 0xa9a   :  { %v1324_v22 = vpack.c.bf16 %v1322_v8, %v1321_v7  ;;  %v3067_v8 = vld [vmem:[%s4513_s10] ss:$0 sm:$0xff] }
 0xa9b   :  { %v1323_v62 = vpack.c.bf16 %v1320_v51, %v1319_v18 }
 0xa9d   :  { %3326 = vmatprep.mubr.msk.bf16.mxu1 %vm1364_vm4, %v1323_v62 }
 0xa9e   :  { %3327 = vmatmul.mubr.msk.bf16.vlgmr.msra.gmra.mrb[40].mxu1 %vm1364_vm4, %v1324_v22 }
 0xa9f   :  { %3332 = vmatprep.mubr.msk.bf16.mxu1 %vm3712_vm1, %v3711_v13 }
 0xb71   :  { %v3328_v21 = vpop.f32.mrb[40].mxu1 }
 0xb72   :  { %v1405_v30 = vpop.f32.mrb[41].mxu1  ;;  %v1414_v31 = vadd.f32 %v3328_v21, %v3060_v26  ;;  %v3068_v21 = vld [vmem:[%s4514_s11] ss:$0 sm:$0xff] }
 0xb73   :  { %v1406_v33 = vadd.f32 %v3060_v26, %v1405_v30  ;;  %v3329_v39 = vpop.f32.mrb[42].mxu1 }
 0xb74   :  { %v1408_v29 = vpop.f32.mrb[43].mxu1  ;;  %v1417_v40 = vadd.f32 %v3329_v39, %v3060_v26  ;;  %v1422_v48 = vadd.f32 %v1414_v31, %v1237_v61  ;;  %v3484_v61 = vld [vmem:[%s4504_s1 + $0x34] ss:$8 sps:$4 sm:$0xff]  }
 0xb75   :  { %v1409_v28 = vadd.f32 %v3060_v26, %v1408_v29  ;;  %v1420_v44 = vadd.f32 %v1406_v33, %v1235_v56  ;;  %1546 = vmatprep.subr.bf16.mxu0 %v3484_v61 }
 0xb76   :  { %v1423_v43 = vadd.f32 %v1417_v40, %v1238_v9  ;;  %v1432_v50 = vsel %vm105_vm0, %v1422_v48, 0.0  ;;  %v3482_v9 = vld [vmem:[%s4504_s1 + $0x30] ss:$8 sps:$4 sm:$0xff]  }
 0xb77   :  { %v1426_v46 = vsel %vm105_vm0, %v1420_v44, 0.0  ;;  %v1421_v47 = vadd.f32 %v1409_v28, %v1236_v57  ;;  %1547 = vmatpush1.bf16.msra.mxu0 %v3482_v9 }
 0xb78   :  { %1427 = vadd.xlane.f32.xlu1 %v1426_v46  ;;  %v1435_v45 = vsel %vm105_vm0, %v1423_v43, 0.0  ;;  %3336 = vmatprep.subr.bf16.mxu0 %v3711_v13 }
 0xb79   :  { %v1429_v49 = vsel %vm105_vm0, %v1421_v47, 0.0 }
 0xb7a   :  { %1430 = vadd.xlane.f32.xlu0 %v1429_v49 }
 0xb7c   :  { %1433 = vadd.xlane.f32.xlu1 %v1432_v50 }
 0xb7e   :  { %1436 = vadd.xlane.f32.xlu0 %v1435_v45 }
 0xc05   :  { %v1428_v52 = vpop.xlane.xlu1 %1427 }
 0xc06   :  { %v1438_v53 = vmul.f32 0.03125, %v1428_v52 }
 0xc07   :  { %v1431_v34 = vpop.xlane.xlu0 %1430 }
 0xc08   :  { %v1442_v54 = vsub.f32 %v1420_v44, %v1438_v53  ;;  %v1439_v35 = vmul.f32 0.03125, %v1431_v34 }
 0xc09   :  { %v1434_v55 = vpop.xlane.xlu1 %1433 }
 0xc0a   :  { %v1443_v37 = vsub.f32 %v1421_v47, %v1439_v35  ;;  %v1440_v56 = vmul.f32 0.03125, %v1434_v55  ;;  %v1446_v57 = vmul.f32 %v1442_v54, %v1442_v54 }
 0xc0b   :  { %v1437_v60 = vpop.xlane.xlu0 %1436 }
 0xc0c   :  { %v1444_v2 = vsub.f32 %v1422_v48, %v1440_v56  ;;  %v1441_v3 = vmul.f32 0.03125, %v1437_v60  ;;  %v1450_v63 = vsel %vm105_vm0, %v1446_v57, 0.0  ;;  %v1447_v58 = vmul.f32 %v1443_v37, %v1443_v37 }
 0xc0d   :  { %1451 = vadd.xlane.f32.xlu1 %v1450_v63 }
 0xc0e   :  { %v1445_v27 = vsub.f32 %v1423_v43, %v1441_v3  ;;  %v1453_v23 = vsel %vm105_vm0, %v1447_v58, 0.0  ;;  %v1448_v25 = vmul.f32 %v1444_v2, %v1444_v2  ;;  %v3073_v43 = vld [vmem:[%s4505_s2 + $0x2] sm:$0x3] }
 0xc0f   :  { %1454 = vadd.xlane.f32.xlu0 %v1453_v23  ;;  %v1511_v50 = vrot.slane %v3073_v43, %v77_v14  ;;  %v1515_v45 = vrot.slane %v3073_v43, %v81_v16 }
 0xc10   :  { %v1456_v5 = vsel %vm105_vm0, %v1448_v25, 0.0  ;;  %v1449_v36 = vmul.f32 %v1445_v27, %v1445_v27 }
 0xc11   :  { %1457 = vadd.xlane.f32.xlu1 %v1456_v5 }
 0xc12   :  { %v1459_v17 = vsel %vm105_vm0, %v1449_v36, 0.0 }
 0xc13   :  { %1460 = vadd.xlane.f32.xlu0 %v1459_v17 }
 0xc9a   :  { %v1452_v41 = vpop.xlane.xlu1 %1451 }
 0xc9b   :  { %v1462_v38 = vmul.f32 0.03125, %v1452_v41 }
 0xc9c   :  { %v1455_v1 = vpop.xlane.xlu0 %1454 }
 0xc9d   :  { %v1466_v10 = vadd.f32 1e-05, %v1462_v38  ;;  %v1463_v11 = vmul.f32 0.03125, %v1455_v1 }
 0xc9e   :  { %v1458_v32 = vpop.xlane.xlu1 %1457 }
 0xc9f   :  { %3563 = vrsqrt.f32 %v1466_v10  ;;  %v1467_v59 = vadd.f32 1e-05, %v1463_v11  ;;  %v1464_v15 = vmul.f32 0.03125, %v1458_v32 }
 0xca0   :  { %v1461_v42 = vpop.xlane.xlu0 %1460 }
 0xca1   :  { %3565 = vrsqrt.f32 %v1467_v59  ;;  %v1468_v19 = vadd.f32 1e-05, %v1464_v15  ;;  %v1465_v24 = vmul.f32 0.03125, %v1461_v42 }
 0xca3   :  { %3567 = vrsqrt.f32 %v1468_v19  ;;  %v1469_v20 = vadd.f32 1e-05, %v1465_v24 }
 0xca5   :  { %3569 = vrsqrt.f32 %v1469_v20 }
 0xca9   :  { %v3564_v7 = vpop.eup %3563 }
 0xcaa   :  { %v1474_v18 = vmul.f32 %v3564_v7, %v1442_v54 }
 0xcab   :  { %v3566_v51 = vpop.eup %3565 }
 0xcac   :  { %v1484_v22 = vmul.f32 %v3067_v8, %v1474_v18  ;;  %v1475_v62 = vmul.f32 %v3566_v51, %v1443_v37 }
 0xcad   :  { %v3568_v26 = vpop.eup %3567 }
 0xcae   :  { %v1485_v30 = vmul.f32 %v3067_v8, %v1475_v62  ;;  %v1476_v33 = vmul.f32 %v3568_v26, %v1444_v2  ;;  %v4170_v29 = vadd.f32 %v3068_v21, %v1484_v22 }
 0xcaf   :  { %v3570_v31 = vpop.eup %3569 }
 0xcb0   :  { %v1477_v39 = vmul.f32 %v3570_v31, %v1445_v27  ;;  %v4172_v40 = vadd.f32 %v3068_v21, %v1485_v30  ;;  %v1486_v46 = vmul.f32 %v3067_v8, %v1476_v33 }
 0xcb2   :  { %v1498_v28 = vpack.c.bf16 %v4172_v40, %v4170_v29  ;;  %v1487_v44 = vmul.f32 %v3067_v8, %v1477_v39  ;;  %v4180_v48 = vadd.f32 %v3068_v21, %v1486_v46 }
 0xcb4   :  { %3078 = vmatmul.mubr.msk.bf16.vlgmr.msra.gmra.mrb[36].mxu0 %vm105_vm0, %v1498_v28  ;;  %v4178_v47 = vadd.f32 %v3068_v21, %v1487_v44 }
 0xcb5   :  { %1586 = vmatprep.mubr.bf16.mxu0 %v3710_v0 }
 0xcb6   :  { %v1499_v49 = vpack.c.bf16 %v4178_v47, %v4180_v48 }
 0xcbc   :  { %3079 = vmatmul.mubr.msk.bf16.gmra.mrb[40].mxu0 %vm105_vm0, %v1499_v49 }
 0xcbd   :  { %3338 = vmatprep.mubr.msk.bf16.mxu0 %vm3712_vm1, %v3711_v13 }
 0xd87   :  { %v1578_v0 = vpop.f32.mrb[36].mxu0 }
 0xd88   :  { %v1580_v52 = vpop.f32.mrb[37].mxu0  ;;  %v1579_v34 = vadd.f32 %v1578_v0, %v1511_v50 }
 0xd89   :  { %v1582_v53 = vpop.f32.mrb[38].mxu0  ;;  %v1581_v55 = vadd.f32 %v1580_v52, %v1515_v45 }
 0xd8a   :  { %v1583_v54 = vadd.f32 %v1582_v53, %v1511_v50  ;;  %v1584_v35 = vpop.f32.mrb[39].mxu0 }
 0xd8b   :  { %v1585_v37 = vadd.f32 %v1584_v35, %v1515_v45 }
 0xd8c   :  { %v4194_v56 = vpack.c.bf16 %v1583_v54, %v1579_v34 }
 0xd8d   :  { %v4196_v57 = vpack.c.bf16 %v1585_v37, %v1581_v55 }
 0xd8e   :  { %1602 = vrot.lane.b32.xlu1 %v4194_v56, %s3713_s28 }
 0xd8f   :  { %v1588_v60 = vpop.f32.mrb[40].mxu0 }
 0xd90   :  { %v1590_v14 = vpop.f32.mrb[41].mxu0  ;;  %v1589_v3 = vadd.f32 %v1588_v60, %v1511_v50 }
 0xd91   :  { %v1592_v2 = vpop.f32.mrb[42].mxu0  ;;  %v1591_v63 = vadd.f32 %v1590_v14, %v1515_v45 }
 0xd92   :  { %v1593_v12 = vadd.f32 %v1592_v2, %v1511_v50  ;;  %1739 = vrot.lane.b32.xlu1 %v4194_v56, %s3708_s23  ;;  %v1594_v16 = vpop.f32.mrb[43].mxu0 }
 0xd93   :  { %v1595_v58 = vadd.f32 %v1594_v16, %v1515_v45 }
 0xd94   :  { %v4202_v27 = vpack.c.bf16 %v1593_v12, %v1589_v3 }
 0xd95   :  { %v4204_v23 = vpack.c.bf16 %v1595_v58, %v1591_v63 }
 0xd96   :  { %1652 = vrot.lane.b32.xlu0 %v4202_v27, %s3713_s28 }
 0xe00   :  { %v1603_v25 = vpop.permute.xlu1 %1602 }
 0xe01   :  { %v1608_v5 = vsel %vm172_vm2, %v1603_v25, 0 }
 0xe02   :  { %3331 = vmatpush3.bf16.xpose.msra.mxu1 %v1608_v5 }
 0xe03   :  { %3342 = vmatprep.subr.bf16.mxu1 %v3711_v13 }
 0xe04   :  { %v1740_v17 = vpop.permute.xlu1 %1739 }
 0xe08   :  { %v1653_v36 = vpop.permute.xlu0 %1652 }
 0xe09   :  { %v1658_v6 = vsel %vm172_vm2, %v1653_v36, 0  ;;  %3333 = vmatmul.mubr.msk.bf16.vlgmr.msra.gmra.mrb[44].mxu1 %vm172_vm2, %v4194_v56 }
 0xe0a   :  { %3337 = vmatpush3.bf16.xpose.msra.mxu0 %v1658_v6  ;;  %3343 = vmatpush3.bf16.msra.mxu1 %v1740_v17 }
 0xe0b   :  { %3348 = vmatprep.subr.bf16.mxu0 %v3711_v13  ;;  %3344 = vmatprep.mubr.msk.bf16.mxu1 %vm3712_vm1, %v3711_v13 }
 0xe0c   :  { %3354 = vmatprep.subr.bf16.mxu1 %v3711_v13 }
 0xe11   :  { %3339 = vmatmul.mubr.msk.bf16.vlgmr.msra.gmra.mrb[44].mxu0 %vm172_vm2, %v4202_v27 }
 0xe12   :  { %3350 = vmatprep.mubr.msk.bf16.mxu0 %vm3712_vm1, %v3711_v13 }
 0xedc   :  { %v1644_v4 = vpop.f32.mrb[44].mxu1 }
 0xedd   :  { %v3334_v61 = vpop.f32.mrb[45].mxu1  ;;  %v1701_v9 = vsel %vm270_vm3, %v1644_v4, -inf }
 0xede   :  { %1702 = vmax.xlane.f32.xlu1 %v1701_v9  ;;  %v1647_v41 = vpop.f32.mrb[46].mxu1 }
 0xedf   :  { %v3335_v38 = vpop.f32.mrb[47].mxu1  ;;  %v1704_v1 = vsel %vm270_vm3, %v1647_v41, -inf }
 0xee0   :  { %1705 = vmax.xlane.f32.xlu0 %v1704_v1 }
 0xee4   :  { %v1694_v10 = vpop.f32.mrb[44].mxu0 }
 0xee5   :  { %v3340_v11 = vpop.f32.mrb[45].mxu0  ;;  %v1707_v32 = vsel %vm270_vm3, %v1694_v10, -inf }
 0xee6   :  { %v1697_v59 = vpop.f32.mrb[46].mxu0  ;;  %1708 = vmax.xlane.f32.xlu1 %v1707_v32 }
 0xee7   :  { %v3341_v15 = vpop.f32.mrb[47].mxu0  ;;  %v1710_v42 = vsel %vm270_vm3, %v1697_v59, -inf }
 0xee8   :  { %1711 = vmax.xlane.f32.xlu0 %v1710_v42 }
 0xef7   :  { %1847 = vrot.lane.b32.xlu1 %v4194_v56, %s3714_s29 }
 0xefb   :  { %1898 = vrot.lane.b32.xlu1 %v4202_v27, %s3714_s29 }
 0xefe   :  { %1786 = vrot.lane.b32.xlu0 %v4202_v27, %s3708_s23 }
 0xeff   :  { %1896 = vrot.lane.b32.xlu1 %v4202_v27, %s3715_s15 }
 0xf02   :  { %1845 = vrot.lane.b32.xlu0 %v4194_v56, %s3715_s15 }
 0xf03   :  { %1985 = vrot.lane.b32.xlu1 %v4194_v56, %s3716_s16 }
 0xf6b   :  { %v1703_v19 = vpop.xlane.xlu1 %1702 }
 0xf6c   :  { %v1713_v24 = vsub.f32 %v1644_v4, %v1703_v19 }
 0xf6d   :  { %v1706_v20 = vpop.xlane.xlu0 %1705 }
 0xf6e   :  { %v1717_v7 = vmul.f32 1.442695, %v1713_v24  ;;  %v1714_v8 = vsub.f32 %v1647_v41, %v1706_v20 }
 0xf70   :  { %v1719_v18 = vmul.f32 1.442695, %v1714_v8  ;;  %3571 = vpow2.f32 %v1717_v7 }
 0xf72   :  { %3573 = vpow2.f32 %v1719_v18 }
 0xf73   :  { %v1709_v51 = vpop.xlane.xlu1 %1708 }
 0xf74   :  { %v1715_v22 = vsub.f32 %v1694_v10, %v1709_v51 }
 0xf75   :  { %v1712_v62 = vpop.xlane.xlu0 %1711 }
 0xf76   :  { %v1721_v26 = vmul.f32 1.442695, %v1715_v22  ;;  %v1716_v21 = vsub.f32 %v1697_v59, %v1712_v62 }
 0xf77   :  { %v1848_v30 = vpop.permute.xlu1 %1847 }
 0xf78   :  { %v1723_v31 = vmul.f32 1.442695, %v1716_v21  ;;  %3575 = vpow2.f32 %v1721_v26  ;;  %v1853_v49 = vsel %vm172_vm2, %v1848_v30, 0 }
 0xf79   :  { %v1787_v33 = vpop.permute.xlu0 %1786 }
 0xf7a   :  { %3577 = vpow2.f32 %v1723_v31  ;;  %3349 = vmatpush3.bf16.msra.mxu0 %v1787_v33  ;;  %v4237_v39 = vpop.eup %3571 }
 0xf7b   :  { %v1899_v28 = vpop.permute.xlu1 %1898  ;;  %3360 = vmatprep.subr.bf16.mxu0 %v3711_v13 }
 0xf7c   :  { %v4240_v44 = vpop.eup %3573  ;;  %v1904_v53 = vsel %vm172_vm2, %v1899_v28, 0 }
 0xf7d   :  { %v1737_v46 = vpack.c.bf16 %v4240_v44, %v4237_v39  ;;  %v1846_v52 = vpop.permute.xlu0 %1845 }
 0xf7f   :  { %3345 = vmatmul.mubr.msk.bf16.vlgmr.msra.gmra.mrb[48].mxu1 %vm270_vm3, %v1737_v46  ;;  %v1897_v43 = vpop.permute.xlu1 %1896 }
 0xf80   :  { %3355 = vmatpush3.bf16.xpose.msra.mxu1 %v1853_v49  ;;  %3356 = vmatprep.mubr.msk.bf16.mxu1 %vm3712_vm1, %v3711_v13 }
 0xf81   :  { %3366 = vmatprep.subr.bf16.mxu1 %v3711_v13 }
 0xf82   :  { %v4249_v50 = vpop.eup %3575 }
 0xf83   :  { %v1986_v34 = vpop.permute.xlu1 %1985 }
 0xf84   :  { %v4251_v0 = vpop.eup %3577 }
 0xf85   :  { %v1738_v45 = vpack.c.bf16 %v4251_v0, %v4249_v50 }
 0xf87   :  { %3351 = vmatmul.mubr.msk.bf16.vlgmr.msra.gmra.mrb[48].mxu0 %vm270_vm3, %v1738_v45  ;;  %3357 = vmatmul.mubr.msk.bf16.vlgmr.msra.gmra.mrb[52].mxu1 %vm172_vm2, %v1846_v52 }
 0xf88   :  { %3361 = vmatpush3.bf16.xpose.msra.mxu0 %v1904_v53  ;;  %3367 = vmatpush3.bf16.msra.mxu1 %v1986_v34 }
 0xf89   :  { %3362 = vmatprep.mubr.msk.bf16.mxu0 %vm3712_vm1, %v3711_v13  ;;  %3372 = vmatprep.subr.bf16.mxu0 %v3711_v13 }
 0xf8a   :  { %3368 = vmatprep.mubr.msk.bf16.mxu1 %vm3712_vm1, %v3711_v13  ;;  %3378 = vmatprep.subr.bf16.mxu1 %v3711_v13 }
 0xf8f   :  { %3363 = vmatmul.mubr.msk.bf16.vlgmr.msra.gmra.mrb[52].mxu0 %vm172_vm2, %v1897_v43 }
 0xf90   :  { %3374 = vmatprep.mubr.msk.bf16.mxu0 %vm3712_vm1, %v3711_v13 }
0x1052   :  { %v4267_v54 = vpop.f32.mrb[48].mxu1 }
0x1053   :  { %v3346_v35 = vpop.f32.mrb[49].mxu1 }
0x1054   :  { %v4269_v55 = vpop.f32.mrb[50].mxu1 }
0x1055   :  { %v3347_v37 = vpop.f32.mrb[51].mxu1 }
0x105a   :  { %v4271_v60 = vpop.f32.mrb[48].mxu0  ;;  %v1889_v14 = vpop.f32.mrb[52].mxu1 }
0x105b   :  { %v3352_v2 = vpop.f32.mrb[49].mxu0  ;;  %v3358_v3 = vpop.f32.mrb[53].mxu1  ;;  %v1947_v12 = vsel %vm270_vm3, %v1889_v14, -inf }
0x105c   :  { %v4274_v16 = vpop.f32.mrb[50].mxu0  ;;  %1948 = vmax.xlane.f32.xlu0 %v1947_v12  ;;  %v1892_v63 = vpop.f32.mrb[54].mxu1 }
0x105d   :  { %v3353_v58 = vpop.f32.mrb[51].mxu0  ;;  %v3359_v25 = vpop.f32.mrb[55].mxu1  ;;  %v1950_v5 = vsel %vm270_vm3, %v1892_v63, -inf }
0x105e   :  { %1951 = vmax.xlane.f32.xlu1 %v1950_v5 }
0x1062   :  { %v1940_v36 = vpop.f32.mrb[52].mxu0 }
0x1063   :  { %v3364_v17 = vpop.f32.mrb[53].mxu0  ;;  %v1953_v6 = vsel %vm270_vm3, %v1940_v36, -inf }
0x1064   :  { %1954 = vmax.xlane.f32.xlu0 %v1953_v6  ;;  %v1943_v4 = vpop.f32.mrb[54].mxu0 }
0x1065   :  { %v3365_v61 = vpop.f32.mrb[55].mxu0  ;;  %v1956_v9 = vsel %vm270_vm3, %v1943_v4, -inf }
0x1068   :  { %1957 = vmax.xlane.f32.xlu0 %v1956_v9 }
0x106f   :  { %2093 = vrot.lane.b32.xlu1 %v4194_v56, %s3717_s17 }
0x1073   :  { %2144 = vrot.lane.b32.xlu1 %v4202_v27, %s3717_s17 }
0x1077   :  { %2142 = vrot.lane.b32.xlu1 %v4202_v27, %s3718_s4 }
0x107b   :  { %2333 = vrot.lane.b32.xlu1 %v4194_v56, %s3719_s30 }
0x107e   :  { %2032 = vrot.lane.b32.xlu0 %v4202_v27, %s3716_s16 }
0x1082   :  { %2091 = vrot.lane.b32.xlu0 %v4194_v56, %s3718_s4 }
0x10e9   :  { %v1949_v41 = vpop.xlane.xlu0 %1948 }
0x10ea   :  { %v1959_v38 = vsub.f32 %v1889_v14, %v1949_v41 }
0x10eb   :  { %v1952_v1 = vpop.xlane.xlu1 %1951 }
0x10ec   :  { %v1963_v10 = vmul.f32 1.442695, %v1959_v38  ;;  %v1960_v11 = vsub.f32 %v1892_v63, %v1952_v1 }
0x10ee   :  { %v1965_v32 = vmul.f32 1.442695, %v1960_v11  ;;  %3579 = vpow2.f32 %v1963_v10 }
0x10ef   :  { %v2094_v51 = vpop.permute.xlu1 %2093 }
0x10f0   :  { %3581 = vpow2.f32 %v1965_v32  ;;  %v2099_v62 = vsel %vm172_vm2, %v2094_v51, 0 }
0x10f1   :  { %v1955_v59 = vpop.xlane.xlu0 %1954 }
0x10f2   :  { %v1961_v15 = vsub.f32 %v1940_v36, %v1955_v59 }
0x10f3   :  { %v2145_v30 = vpop.permute.xlu1 %2144 }
0x10f4   :  { %v1967_v42 = vmul.f32 1.442695, %v1961_v15  ;;  %v2150_v28 = vsel %vm172_vm2, %v2145_v30, 0 }
0x10f5   :  { %v1958_v19 = vpop.xlane.xlu0 %1957 }
0x10f6   :  { %v1962_v24 = vsub.f32 %v1943_v4, %v1958_v19  ;;  %3583 = vpow2.f32 %v1967_v42 }
0x10f7   :  { %v2143_v46 = vpop.permute.xlu1 %2142 }
0x10f8   :  { %v1969_v20 = vmul.f32 1.442695, %v1962_v24  ;;  %v4291_v7 = vpop.eup %3579 }
0x10f9   :  { %v2033_v8 = vpop.permute.xlu0 %2032 }
0x10fa   :  { %v4293_v18 = vpop.eup %3581  ;;  %3585 = vpow2.f32 %v1969_v20  ;;  %3373 = vmatpush3.bf16.msra.mxu0 %v2033_v8 }
0x10fb   :  { %v1983_v22 = vpack.c.bf16 %v4293_v18, %v4291_v7  ;;  %3384 = vmatprep.subr.bf16.mxu0 %v3711_v13  ;;  %v2334_v61 = vpop.permute.xlu1 %2333 }
0x10fc   :  { %v2339_v8 = vsel %vm172_vm2, %v2334_v61, 0 }
0x10fd   :  { %3369 = vmatmul.mubr.msk.bf16.vlgmr.msra.gmra.mrb[56].mxu1 %vm270_vm3, %v1983_v22  ;;  %v2092_v31 = vpop.permute.xlu0 %2091 }
0x10fe   :  { %3379 = vmatpush3.bf16.xpose.msra.mxu1 %v2099_v62  ;;  %3380 = vmatprep.mubr.msk.bf16.mxu1 %vm3712_vm1, %v3711_v13 }
0x10ff   :  { %3390 = vmatprep.subr.bf16.mxu1 %v3711_v13 }
0x1100   :  { %v4303_v26 = vpop.eup %3583 }
0x1104   :  { %v4305_v21 = vpop.eup %3585 }
0x1105   :  { %3381 = vmatmul.mubr.msk.bf16.vlgmr.msra.gmra.mrb[60].mxu1 %vm172_vm2, %v2092_v31  ;;  %v1984_v33 = vpack.c.bf16 %v4305_v21, %v4303_v26 }
0x1106   :  { %3391 = vmatpush3.bf16.msra.mxu1 %v4196_v57  ;;  %3392 = vmatprep.mubr.msk.bf16.mxu1 %vm3712_vm1, %v3711_v13 }
0x1107   :  { %3375 = vmatmul.mubr.msk.bf16.vlgmr.msra.gmra.mrb[56].mxu0 %vm270_vm3, %v1984_v33  ;;  %3402 = vmatprep.subr.bf16.mxu1 %v3711_v13 }
0x1108   :  { %3385 = vmatpush3.bf16.xpose.msra.mxu0 %v2150_v28  ;;  %3386 = vmatprep.mubr.msk.bf16.mxu0 %vm3712_vm1, %v3711_v13 }
0x1109   :  { %3396 = vmatprep.subr.bf16.mxu0 %v3711_v13 }
0x110f   :  { %3387 = vmatmul.mubr.msk.bf16.vlgmr.msra.gmra.mrb[60].mxu0 %vm172_vm2, %v2143_v46 }
0x1110   :  { %3397 = vmatpush3.bf16.msra.mxu0 %v4204_v23  ;;  %3398 = vmatprep.mubr.msk.bf16.mxu0 %vm3712_vm1, %v3711_v13 }
0x1111   :  { %3408 = vmatprep.subr.bf16.mxu0 %v3711_v13 }
0x11d0   :  { %v4324_v49 = vpop.f32.mrb[56].mxu1 }
0x11d1   :  { %v3370_v43 = vpop.f32.mrb[57].mxu1 }
0x11d2   :  { %v4326_v45 = vpop.f32.mrb[58].mxu1 }
0x11d3   :  { %v3371_v52 = vpop.f32.mrb[59].mxu1 }
0x11d8   :  { %v2135_v53 = vpop.f32.mrb[60].mxu1 }
0x11d9   :  { %v3382_v34 = vpop.f32.mrb[61].mxu1  ;;  %v2193_v35 = vsel %vm270_vm3, %v2135_v53, -inf }
0x11da   :  { %v4329_v37 = vpop.f32.mrb[56].mxu0  ;;  %2194 = vmax.xlane.f32.xlu0 %v2193_v35  ;;  %v2138_v14 = vpop.f32.mrb[62].mxu1 }
0x11db   :  { %v3376_v2 = vpop.f32.mrb[57].mxu0  ;;  %v3383_v3 = vpop.f32.mrb[63].mxu1  ;;  %v2196_v12 = vsel %vm270_vm3, %v2138_v14, -inf }
0x11dc   :  { %v4332_v63 = vpop.f32.mrb[58].mxu0  ;;  %2197 = vmax.xlane.f32.xlu1 %v2196_v12 }
0x11dd   :  { %v3377_v58 = vpop.f32.mrb[59].mxu0 }
0x11e2   :  { %v2186_v25 = vpop.f32.mrb[60].mxu0 }
0x11e3   :  { %v3388_v5 = vpop.f32.mrb[61].mxu0  ;;  %v2199_v36 = vsel %vm270_vm3, %v2186_v25, -inf }
0x11e4   :  { %2200 = vmax.xlane.f32.xlu0 %v2199_v36  ;;  %v2189_v17 = vpop.f32.mrb[62].mxu0 }
0x11e5   :  { %v3389_v6 = vpop.f32.mrb[63].mxu0  ;;  %v2202_v4 = vsel %vm270_vm3, %v2189_v17, -inf }
0x11e8   :  { %2203 = vmax.xlane.f32.xlu0 %v2202_v4 }
0x11ed   :  { %2331 = vrot.lane.b32.xlu1 %v4194_v56, %s3720_s18 }
0x11f1   :  { %2382 = vrot.lane.b32.xlu1 %v4202_v27, %s3720_s18 }
0x11fe   :  { %2384 = vrot.lane.b32.xlu0 %v4202_v27, %s3719_s30 }
0x1267   :  { %v2195_v9 = vpop.xlane.xlu0 %2194 }
0x1268   :  { %v2205_v41 = vsub.f32 %v2135_v53, %v2195_v9 }
0x1269   :  { %v2198_v38 = vpop.xlane.xlu1 %2197 }
0x126a   :  { %v2209_v1 = vmul.f32 1.442695, %v2205_v41  ;;  %v2206_v10 = vsub.f32 %v2138_v14, %v2198_v38  ;;  %v1725_v41 = vsel %vm270_vm3, %v4237_v39, 0.0  ;;  %v1971_v38 = vsel %vm270_vm3, %v4291_v7, 0.0 }
0x126b   :  { %v1974_v39 = vsel %vm270_vm3, %v4293_v18, 0.0 }
0x126c   :  { %v2211_v11 = vmul.f32 1.442695, %v2206_v10  ;;  %3587 = vpow2.f32 %v2209_v1  ;;  %v1731_v1 = vsel %vm270_vm3, %v4249_v50, 0.0  ;;  %v1977_v10 = vsel %vm270_vm3, %v4303_v26, 0.0 }
0x126d   :  { %v2332_v51 = vpop.permute.xlu1 %2331  ;;  %v1734_v50 = vsel %vm270_vm3, %v4251_v0, 0.0  ;;  %v1980_v26 = vsel %vm270_vm3, %v4305_v21, 0.0 }
0x126e   :  { %3589 = vpow2.f32 %v2211_v11 }
0x1271   :  { %v2201_v32 = vpop.xlane.xlu0 %2200  ;;  %v2383_v28 = vpop.permute.xlu1 %2382 }
0x1272   :  { %v2207_v59 = vsub.f32 %v2186_v25, %v2201_v32 }
0x1274   :  { %v2213_v15 = vmul.f32 1.442695, %v2207_v59 }
0x1275   :  { %v2204_v42 = vpop.xlane.xlu0 %2203 }
0x1276   :  { %v2208_v56 = vsub.f32 %v2189_v17, %v2204_v42  ;;  %v3588_v19 = vpop.eup %3587  ;;  %3591 = vpow2.f32 %v2213_v15 }
0x1278   :  { %v4342_v24 = vpop.eup %3589  ;;  %v2215_v20 = vmul.f32 1.442695, %v2208_v56 }
0x1279   :  { %v2229_v27 = vpack.c.bf16 %v4342_v24, %v3588_v19  ;;  %v2385_v30 = vpop.permute.xlu0 %2384 }
0x127a   :  { %3593 = vpow2.f32 %v2215_v20  ;;  %v2390_v33 = vsel %vm172_vm2, %v2385_v30, 0 }
0x127b   :  { %3393 = vmatmul.mubr.msk.bf16.vlgmr.msra.gmra.mrb[64].mxu1 %vm270_vm3, %v2229_v27 }
0x127c   :  { %3403 = vmatpush3.bf16.xpose.msra.mxu1 %v2339_v8  ;;  %3404 = vmatprep.mubr.msk.bf16.mxu1 %vm3712_vm1, %v3711_v13 }
0x127d   :  { %3414 = vmatprep.subr.bf16.mxu1 %v3711_v13 }
0x1280   :  { %v3592_v22 = vpop.eup %3591 }
0x1281   :  { %v2223_v7 = vsel %vm270_vm3, %v3592_v22, 0.0 }
0x1283   :  { %3405 = vmatmul.mubr.msk.bf16.vlgmr.msra.gmra.mrb[68].mxu1 %vm172_vm2, %v2332_v51 }
0x1284   :  { %v3594_v62 = vpop.eup %3593  ;;  %3416 = vmatprep.mubr.msk.bf16.mxu1 %vm3712_vm1, %v3711_v13 }
0x1285   :  { %v2230_v31 = vpack.c.bf16 %v3594_v62, %v3592_v22  ;;  %v2226_v11 = vsel %vm270_vm3, %v3594_v62, 0.0 }
0x1287   :  { %3399 = vmatmul.mubr.msk.bf16.vlgmr.msra.gmra.mrb[64].mxu0 %vm270_vm3, %v2230_v31 }
0x1288   :  { %3409 = vmatpush3.bf16.xpose.msra.mxu0 %v2390_v33  ;;  %3410 = vmatprep.mubr.msk.bf16.mxu0 %vm3712_vm1, %v3711_v13 }
0x1289   :  { %3420 = vmatprep.subr.bf16.mxu0 %v3711_v13 }
0x128f   :  { %3411 = vmatmul.mubr.msk.bf16.vlgmr.msra.gmra.mrb[68].mxu0 %vm172_vm2, %v2383_v28 }
0x1290   :  { %3422 = vmatprep.mubr.msk.bf16.mxu0 %vm3712_vm1, %v3711_v13 }
0x134e   :  { %v4361_v46 = vpop.f32.mrb[64].mxu1 }
0x134f   :  { %v3394_v43 = vpop.f32.mrb[65].mxu1 }
0x1350   :  { %v4363_v52 = vpop.f32.mrb[66].mxu1 }
0x1351   :  { %v3395_v53 = vpop.f32.mrb[67].mxu1 }
0x1356   :  { %v2375_v34 = vpop.f32.mrb[68].mxu1 }
0x1357   :  { %v3406_v35 = vpop.f32.mrb[69].mxu1  ;;  %v2433_v14 = vsel %vm270_vm3, %v2375_v34, -inf }
0x1358   :  { %2434 = vmax.xlane.f32.xlu0 %v2433_v14  ;;  %v2378_v2 = vpop.f32.mrb[70].mxu1 }
0x1359   :  { %v3407_v3 = vpop.f32.mrb[71].mxu1  ;;  %v2436_v12 = vsel %vm270_vm3, %v2378_v2, -inf }
0x135a   :  { %v4367_v58 = vpop.f32.mrb[64].mxu0  ;;  %2437 = vmax.xlane.f32.xlu1 %v2436_v12 }
0x135b   :  { %v3400_v25 = vpop.f32.mrb[65].mxu0 }
0x135c   :  { %v4369_v13 = vpop.f32.mrb[66].mxu0 }
0x135d   :  { %v3401_v5 = vpop.f32.mrb[67].mxu0 }
0x1362   :  { %v2426_v36 = vpop.f32.mrb[68].mxu0 }
0x1363   :  { %v3412_v17 = vpop.f32.mrb[69].mxu0  ;;  %v2439_v6 = vsel %vm270_vm3, %v2426_v36, -inf }
0x1364   :  { %2440 = vmax.xlane.f32.xlu0 %v2439_v6  ;;  %v2429_v4 = vpop.f32.mrb[70].mxu0 }
0x1365   :  { %v3413_v61 = vpop.f32.mrb[71].mxu0  ;;  %v2442_v9 = vsel %vm270_vm3, %v2429_v4, -inf }
0x1368   :  { %2443 = vmax.xlane.f32.xlu0 %v2442_v9 }
0x136b   :  { %2472 = vrot.lane.b32.xlu1 %v4196_v57, %s3713_s28  ;;  %v1728_v57 = vsel %vm270_vm3, %v4240_v44, 0.0  ;;  %v2220_v44 = vsel %vm270_vm3, %v4342_v24, 0.0 }
0x137e   :  { %2520 = vrot.lane.b32.xlu0 %v4204_v23, %s3713_s28  ;;  %v2217_v23 = vsel %vm270_vm3, %v3588_v19, 0.0 }
0x138f   :  { %1726 = vadd.xlane.f32.xlu1 %v1725_v41 }
0x1393   :  { %1972 = vadd.xlane.f32.xlu1 %v1971_v38 }
0x1397   :  { %1732 = vadd.xlane.f32.xlu1 %v1731_v1 }
0x139b   :  { %1978 = vadd.xlane.f32.xlu1 %v1977_v10 }
0x139d   :  { %1729 = vadd.xlane.f32.xlu0 %v1728_v57 }
0x139f   :  { %2218 = vadd.xlane.f32.xlu1 %v2217_v23 }
0x13a1   :  { %1975 = vadd.xlane.f32.xlu0 %v1974_v39 }
0x13a3   :  { %2224 = vadd.xlane.f32.xlu1 %v2223_v7 }
0x13a5   :  { %1735 = vadd.xlane.f32.xlu0 %v1734_v50 }
0x13a9   :  { %1981 = vadd.xlane.f32.xlu0 %v1980_v26 }
0x13ad   :  { %2221 = vadd.xlane.f32.xlu0 %v2220_v44 }
0x13b1   :  { %2227 = vadd.xlane.f32.xlu0 %v2226_v11 }
0x13e5   :  { %v2435_v18 = vpop.xlane.xlu0 %2434 }
0x13e6   :  { %v2445_v32 = vsub.f32 %v2375_v34, %v2435_v18 }
0x13e7   :  { %v2438_v59 = vpop.xlane.xlu1 %2437 }
0x13e8   :  { %v2449_v15 = vmul.f32 1.442695, %v2445_v32  ;;  %v2446_v42 = vsub.f32 %v2378_v2, %v2438_v59 }
0x13ea   :  { %3595 = vpow2.f32 %v2449_v15  ;;  %v2451_v56 = vmul.f32 1.442695, %v2446_v42 }
0x13eb   :  { %v2473_v0 = vpop.permute.xlu1 %2472 }
0x13ec   :  { %3597 = vpow2.f32 %v2451_v56  ;;  %3415 = vmatpush3.bf16.msra.mxu1 %v2473_v0 }
0x13f1   :  { %v2441_v19 = vpop.xlane.xlu0 %2440 }
0x13f2   :  { %v2447_v21 = vsub.f32 %v2426_v36, %v2441_v19 }
0x13f4   :  { %v3596_v20 = vpop.eup %3595  ;;  %v2453_v27 = vmul.f32 1.442695, %v2447_v21 }
0x13f5   :  { %v2444_v8 = vpop.xlane.xlu0 %2443  ;;  %v2457_v24 = vsel %vm270_vm3, %v3596_v20, 0.0 }
0x13f6   :  { %v3598_v51 = vpop.eup %3597  ;;  %3599 = vpow2.f32 %v2453_v27  ;;  %v2448_v22 = vsub.f32 %v2429_v4, %v2444_v8  ;;  %2458 = vadd.xlane.f32.xlu1 %v2457_v24 }
0x13f7   :  { %v2460_v62 = vsel %vm270_vm3, %v3598_v51, 0.0  ;;  %v2469_v30 = vpack.c.bf16 %v3598_v51, %v3596_v20 }
0x13f8   :  { %v2455_v31 = vmul.f32 1.442695, %v2448_v22  ;;  %2461 = vadd.xlane.f32.xlu0 %v2460_v62 }
0x13f9   :  { %v2521_v33 = vpop.permute.xlu0 %2520  ;;  %3417 = vmatmul.mubr.msk.bf16.vlgmr.msra.gmra.mrb[72].mxu1 %vm270_vm3, %v2469_v30 }
0x13fa   :  { %3601 = vpow2.f32 %v2455_v31  ;;  %3421 = vmatpush3.bf16.msra.mxu0 %v2521_v33 }
0x1400   :  { %v3600_v28 = vpop.eup %3599 }
0x1401   :  { %v2463_v43 = vsel %vm270_vm3, %v3600_v28, 0.0 }
0x1402   :  { %2464 = vadd.xlane.f32.xlu1 %v2463_v43 }
0x1404   :  { %v3602_v53 = vpop.eup %3601 }
0x1405   :  { %v2466_v34 = vsel %vm270_vm3, %v3602_v53, 0.0  ;;  %v2470_v35 = vpack.c.bf16 %v3602_v53, %v3600_v28 }
0x1406   :  { %2467 = vadd.xlane.f32.xlu0 %v2466_v34 }
0x1407   :  { %3423 = vmatmul.mubr.msk.bf16.vlgmr.msra.gmra.mrb[72].mxu0 %vm270_vm3, %v2470_v35 }
0x141c   :  { %v1727_v14 = vpop.xlane.xlu1 %1726 }
0x141d   :  { %3603 = vrcp.f32 %v1727_v14 }
0x1420   :  { %v1973_v2 = vpop.xlane.xlu1 %1972 }
0x1421   :  { %3605 = vrcp.f32 %v1973_v2 }
0x1424   :  { %v1733_v3 = vpop.xlane.xlu1 %1732 }
0x1425   :  { %3607 = vrcp.f32 %v1733_v3 }
0x1427   :  { %v3604_v25 = vpop.eup %3603 }
0x1428   :  { %v1979_v12 = vpop.xlane.xlu1 %1978  ;;  %v1837_v6 = vmul.f32 %v3604_v25, %v4267_v54 }
0x1429   :  { %3609 = vrcp.f32 %v1979_v12 }
0x142a   :  { %v1730_v5 = vpop.xlane.xlu0 %1729 }
0x142b   :  { %v3606_v36 = vpop.eup %3605  ;;  %3611 = vrcp.f32 %v1730_v5 }
0x142c   :  { %v2219_v17 = vpop.xlane.xlu1 %2218  ;;  %v2083_v4 = vmul.f32 %v3606_v36, %v4324_v49 }
0x142d   :  { %3613 = vrcp.f32 %v2219_v17 }
0x142e   :  { %v1976_v61 = vpop.xlane.xlu0 %1975  ;;  %v2087_v9 = vadd.f32 %v2083_v4, %v1837_v6 }
0x142f   :  { %3615 = vrcp.f32 %v1976_v61  ;;  %v3608_v38 = vpop.eup %3607 }
0x1430   :  { %v2225_v41 = vpop.xlane.xlu1 %2224  ;;  %v1839_v57 = vmul.f32 %v3608_v38, %v4271_v60 }
0x1431   :  { %3617 = vrcp.f32 %v2225_v41 }
0x1432   :  { %v1736_v1 = vpop.xlane.xlu0 %1735 }
0x1433   :  { %v3610_v10 = vpop.eup %3609  ;;  %3619 = vrcp.f32 %v1736_v1 }
0x1434   :  { %v2085_v23 = vmul.f32 %v3610_v10, %v4329_v37 }
0x1435   :  { %v3612_v39 = vpop.eup %3611 }
0x1436   :  { %v1982_v7 = vpop.xlane.xlu0 %1981  ;;  %v2089_v50 = vadd.f32 %v2085_v23, %v1839_v57  ;;  %v1838_v18 = vmul.f32 %v3612_v39, %v4269_v55 }
0x1437   :  { %v3614_v54 = vpop.eup %3613  ;;  %3621 = vrcp.f32 %v1982_v7 }
0x1438   :  { %v2323_v49 = vmul.f32 %v3614_v54, %v4361_v46 }
0x1439   :  { %v3616_v26 = vpop.eup %3615 }
0x143a   :  { %v2222_v44 = vpop.xlane.xlu0 %2221  ;;  %v2327_v11 = vadd.f32 %v2323_v49, %v2087_v9  ;;  %v2084_v32 = vmul.f32 %v3616_v26, %v4326_v45 }
0x143b   :  { %v3618_v59 = vpop.eup %3617  ;;  %3623 = vrcp.f32 %v2222_v44 }
0x143c   :  { %v2088_v60 = vadd.f32 %v2084_v32, %v1838_v18  ;;  %v2325_v37 = vmul.f32 %v3618_v59, %v4367_v58 }
0x143d   :  { %v3620_v56 = vpop.eup %3619 }
0x143e   :  { %v2228_v15 = vpop.xlane.xlu0 %2227  ;;  %v2329_v42 = vadd.f32 %v2325_v37, %v2089_v50  ;;  %v1840_v19 = vmul.f32 %v3620_v56, %v4274_v16 }
0x143f   :  { %3625 = vrcp.f32 %v2228_v15 }
0x1441   :  { %v3622_v0 = vpop.eup %3621 }
0x1442   :  { %v2086_v46 = vmul.f32 %v3622_v0, %v4332_v63 }
0x1444   :  { %v2090_v21 = vadd.f32 %v2086_v46, %v1840_v19 }
0x1445   :  { %v3624_v20 = vpop.eup %3623 }
0x1446   :  { %v2324_v55 = vmul.f32 %v3624_v20, %v4363_v52  ;;  %v3486_v20 = vld [vmem:[#allocation2 + $0x18] sm:$0xff]  }
0x1448   :  { %v2328_v27 = vadd.f32 %v2324_v55, %v2088_v60  ;;  %v3487_v55 = vld [vmem:[%s4509_s6 + $0x20] sm:$0xff]  }
0x1449   :  { %v3626_v45 = vpop.eup %3625  ;;  %3434 = vmatprep.subr.bf16.mxu0 %v3487_v55 }
0x144a   :  { %v2326_v8 = vmul.f32 %v3626_v45, %v4369_v13  ;;  %v3097_v13 = vld [vmem:[%s4506_s3 + $0x1] ss:$0 sm:$0xff]  ;;  %3435 = vmatpush3.bf16.msra.mxu0 %v3487_v55 }
0x144c   :  { %v2330_v24 = vadd.f32 %v2326_v8, %v2090_v21  ;;  %v3485_v21 = vld [vmem:[#allocation2 + $0x10] sm:$0xff]  }
0x144d   :  { %3426 = vmatprep.subr.bf16.mxu1 %v3485_v21 }
0x144e   :  { %3427 = vmatpush3.bf16.msra.mxu1 %v3485_v21 }
0x144f   :  { %3428 = vmatprep.subr.bf16.mxu1 %v3486_v20 }
0x1452   :  { %3429 = vmatpush3.bf16.msra.mxu1 %v3486_v20 }
0x1483   :  { %v2459_v51 = vpop.xlane.xlu1 %2458 }
0x1484   :  { %3627 = vrcp.f32 %v2459_v51 }
0x1485   :  { %v2462_v58 = vpop.xlane.xlu0 %2461 }
0x1486   :  { %3629 = vrcp.f32 %v2462_v58 }
0x148e   :  { %v3628_v22 = vpop.eup %3627 }
0x148f   :  { %v2465_v30 = vpop.xlane.xlu1 %2464 }
0x1490   :  { %v3630_v33 = vpop.eup %3629  ;;  %3631 = vrcp.f32 %v2465_v30 }
0x1493   :  { %v2468_v28 = vpop.xlane.xlu0 %2467 }
0x1494   :  { %3633 = vrcp.f32 %v2468_v28 }
0x149a   :  { %v3632_v5 = vpop.eup %3631 }
0x149e   :  { %v3634_v4 = vpop.eup %3633 }
0x14cc   :  { %v2512_v62 = vpop.f32.mrb[72].mxu1 }
0x14cd   :  { %v2571_v31 = vmul.f32 %v3628_v22, %v2512_v62  ;;  %v3418_v16 = vpop.f32.mrb[73].mxu1 }
0x14ce   :  { %v2515_v63 = vpop.f32.mrb[74].mxu1 }
0x14cf   :  { %v2575_v43 = vadd.f32 %v2571_v31, %v2327_v11  ;;  %v2572_v53 = vmul.f32 %v3630_v33, %v2515_v63  ;;  %v3419_v52 = vpop.f32.mrb[75].mxu1  ;;  %v3100_v31 = vld [vmem:[%s4511_s8 + $0x1] ss:$0 sm:$0xff] }
0x14d1   :  { %v2579_v34 = vadd.f32 %v2575_v43, %v4170_v29  ;;  %v2576_v35 = vadd.f32 %v2572_v53, %v2328_v27  ;;  %v3488_v27 = vld [vmem:[%s4509_s6 + $0x28] sm:$0xff]  }
0x14d2   :  { %3436 = vmatprep.subr.bf16.mxu0 %v3488_v27 }
0x14d3   :  { %v2580_v14 = vadd.f32 %v2576_v35, %v4172_v40  ;;  %v2591_v2 = vadd.f32 %v3097_v13, %v2579_v34  ;;  %3437 = vmatpush3.bf16.msra.mxu0 %v3488_v27  ;;  %v3101_v35 = vld [vmem:[%s4512_s9 + $0x1] ss:$0 sm:$0xff] }
0x14d5   :  { %v2599_v3 = vsel %vm105_vm0, %v2591_v2, 0.0  ;;  %v2592_v12 = vadd.f32 %v3097_v13, %v2580_v14 }
0x14d6   :  { %2600 = vadd.xlane.f32.xlu1 %v2599_v3 }
0x14d7   :  { %v2602_v25 = vsel %vm105_vm0, %v2592_v12, 0.0 }
0x14d8   :  { %2603 = vadd.xlane.f32.xlu0 %v2602_v25 }
0x14da   :  { %v2560_v36 = vpop.f32.mrb[72].mxu0 }
0x14db   :  { %v2573_v17 = vmul.f32 %v3632_v5, %v2560_v36  ;;  %v3424_v6 = vpop.f32.mrb[73].mxu0 }
0x14dc   :  { %v2563_v61 = vpop.f32.mrb[74].mxu0 }
0x14dd   :  { %v2577_v9 = vadd.f32 %v2573_v17, %v2329_v42  ;;  %v2574_v29 = vmul.f32 %v3634_v4, %v2563_v61  ;;  %v3425_v41 = vpop.f32.mrb[75].mxu0 }
0x14de   :  { %v3489_v41 = vld [vmem:[%s4509_s6 + $0x30] sm:$0xff]  }
0x14df   :  { %v2581_v38 = vadd.f32 %v2577_v9, %v4180_v48  ;;  %v2578_v40 = vadd.f32 %v2574_v29, %v2330_v24  ;;  %3438 = vmatprep.subr.bf16.mxu0 %v3489_v41 }
0x14e0   :  { %3439 = vmatpush3.bf16.msra.mxu0 %v3489_v41 }
0x14e1   :  { %v2582_v1 = vadd.f32 %v2578_v40, %v4178_v47  ;;  %v2593_v10 = vadd.f32 %v3097_v13, %v2581_v38  ;;  %v3490_v38 = vld [vmem:[%s4509_s6 + $0x38] sm:$0xff]   ;;  %v3103_v40 = vld [vmem:[%s4508_s5 + $0x1] ss:$0 sm:$0xff] }
0x14e2   :  { %3440 = vmatprep.subr.bf16.mxu0 %v3490_v38 }
0x14e3   :  { %v2605_v57 = vsel %vm105_vm0, %v2593_v10, 0.0  ;;  %v2594_v23 = vadd.f32 %v3097_v13, %v2582_v1 }
0x14e4   :  { %2606 = vadd.xlane.f32.xlu1 %v2605_v57  ;;  %3441 = vmatpush3.bf16.msra.mxu0 %v3490_v38 }
0x14e5   :  { %v2608_v39 = vsel %vm105_vm0, %v2594_v23, 0.0 }
0x14e6   :  { %2609 = vadd.xlane.f32.xlu0 %v2608_v39 }
0x1563   :  { %v2601_v7 = vpop.xlane.xlu1 %2600 }
0x1564   :  { %v2611_v50 = vmul.f32 0.03125, %v2601_v7 }
0x1565   :  { %v2604_v54 = vpop.xlane.xlu0 %2603 }
0x1566   :  { %v2615_v49 = vsub.f32 %v2591_v2, %v2611_v50  ;;  %v2612_v26 = vmul.f32 0.03125, %v2604_v54 }
0x1568   :  { %v2616_v44 = vsub.f32 %v2592_v12, %v2612_v26  ;;  %v2619_v11 = vmul.f32 %v2615_v49, %v2615_v49 }
0x156a   :  { %v2623_v48 = vsel %vm105_vm0, %v2619_v11, 0.0  ;;  %v2620_v18 = vmul.f32 %v2616_v44, %v2616_v44 }
0x156b   :  { %2624 = vadd.xlane.f32.xlu1 %v2623_v48 }
0x156c   :  { %v2626_v47 = vsel %vm105_vm0, %v2620_v18, 0.0 }
0x156d   :  { %2627 = vadd.xlane.f32.xlu0 %v2626_v47  ;;  %v3117_v47 = vld [vmem:[%s4510_s7 + $0x1] ss:$0 sm:$0xff] }
0x1571   :  { %v2607_v32 = vpop.xlane.xlu1 %2606 }
0x1572   :  { %v2613_v59 = vmul.f32 0.03125, %v2607_v32 }
0x1573   :  { %v2610_v60 = vpop.xlane.xlu0 %2609 }
0x1574   :  { %v2617_v37 = vsub.f32 %v2593_v10, %v2613_v59  ;;  %v2614_v15 = vmul.f32 0.03125, %v2610_v60 }
0x1576   :  { %v2618_v42 = vsub.f32 %v2594_v23, %v2614_v15  ;;  %v2621_v56 = vmul.f32 %v2617_v37, %v2617_v37 }
0x1578   :  { %v2629_v0 = vsel %vm105_vm0, %v2621_v56, 0.0  ;;  %v2622_v19 = vmul.f32 %v2618_v42, %v2618_v42 }
0x1579   :  { %2630 = vadd.xlane.f32.xlu1 %v2629_v0 }
0x157a   :  { %v2632_v46 = vsel %vm105_vm0, %v2622_v19, 0.0 }
0x157b   :  { %2633 = vadd.xlane.f32.xlu0 %v2632_v46 }
0x15f8   :  { %v2625_v45 = vpop.xlane.xlu1 %2624 }
0x15f9   :  { %v2635_v8 = vmul.f32 0.03125, %v2625_v45 }
0x15fa   :  { %v2628_v24 = vpop.xlane.xlu0 %2627 }
0x15fb   :  { %v2639_v51 = vadd.f32 1e-05, %v2635_v8  ;;  %v2636_v58 = vmul.f32 0.03125, %v2628_v24 }
0x15fd   :  { %3635 = vrsqrt.f32 %v2639_v51  ;;  %v2640_v22 = vadd.f32 1e-05, %v2636_v58 }
0x15ff   :  { %3637 = vrsqrt.f32 %v2640_v22 }
0x1606   :  { %v2631_v62 = vpop.xlane.xlu1 %2630 }
0x1607   :  { %v3636_v30 = vpop.eup %3635  ;;  %v2637_v16 = vmul.f32 0.03125, %v2631_v62 }
0x1608   :  { %v2647_v33 = vmul.f32 %v3636_v30, %v2615_v49  ;;  %v2634_v63 = vpop.xlane.xlu0 %2633 }
0x1609   :  { %v3638_v28 = vpop.eup %3637  ;;  %v2641_v43 = vadd.f32 1e-05, %v2637_v16  ;;  %v2638_v53 = vmul.f32 0.03125, %v2634_v63 }
0x160a   :  { %v2648_v52 = vmul.f32 %v3638_v28, %v2616_v44  ;;  %v2657_v13 = vmul.f32 %v3100_v31, %v2647_v33 }
0x160b   :  { %3639 = vrsqrt.f32 %v2641_v43  ;;  %v2642_v34 = vadd.f32 1e-05, %v2638_v53 }
0x160c   :  { %v2658_v14 = vmul.f32 %v3100_v31, %v2648_v52  ;;  %v2667_v2 = vadd.f32 %v3101_v35, %v2657_v13 }
0x160d   :  { %3641 = vrsqrt.f32 %v2642_v34 }
0x160e   :  { %v2668_v3 = vadd.f32 %v3101_v35, %v2658_v14 }
0x1610   :  { %v2671_v12 = vpack.c.bf16 %v2668_v3, %v2667_v2 }
0x1612   :  { %3430 = vmatprep.mubr.msk.bf16.mxu1 %vm105_vm0, %v2671_v12 }
0x1615   :  { %v3640_v25 = vpop.eup %3639 }
0x1616   :  { %v2649_v5 = vmul.f32 %v3640_v25, %v2617_v37 }
0x1617   :  { %v3642_v36 = vpop.eup %3641 }
0x1618   :  { %v2659_v17 = vmul.f32 %v3100_v31, %v2649_v5  ;;  %v2650_v6 = vmul.f32 %v3642_v36, %v2618_v42 }
0x161a   :  { %v2660_v4 = vmul.f32 %v3100_v31, %v2650_v6  ;;  %v2669_v61 = vadd.f32 %v3101_v35, %v2659_v17 }
0x161c   :  { %v2670_v9 = vadd.f32 %v3101_v35, %v2660_v4 }
0x161e   :  { %v2672_v29 = vpack.c.bf16 %v2670_v9, %v2669_v61 }
0x1620   :  { %3431 = vmatmul.mubr.msk.bf16.vlgmr.msra.gmra.mrb[76].mxu1 %vm105_vm0, %v2672_v29 }
0x16f3   :  { %v3432_v1 = vpop.f32.mrb[76].mxu1 }
0x16f4   :  { %v2747_v10 = vadd.f32 %v3432_v1, %v3103_v40  ;;  %v2738_v57 = vpop.f32.mrb[77].mxu1  ;;  %v3126_v1 = vld [vmem:[%s4513_s10 + $0x1] ss:$0 sm:$0xff] }
0x16f5   :  { %v2739_v23 = vadd.f32 %v3103_v40, %v2738_v57  ;;  %v3433_v39 = vpop.f32.mrb[78].mxu1 }
0x16f6   :  { %v2750_v7 = vadd.f32 %v3433_v39, %v3103_v40  ;;  %v2741_v50 = vpop.f32.mrb[79].mxu1  ;;  %v2755_v49 = vmax.f32 %v2747_v10, 0.0 }
0x16f7   :  { %v2742_v54 = vadd.f32 %v3103_v40, %v2741_v50  ;;  %v2753_v44 = vmax.f32 %v2739_v23, 0.0  ;;  %v3127_v23 = vld [vmem:[%s4514_s11 + $0x1] ss:$0 sm:$0xff] }
0x16f8   :  { %v2756_v26 = vmax.f32 %v2750_v7, 0.0 }
0x16f9   :  { %v2754_v11 = vmax.f32 %v2742_v54, 0.0 }
0x16fa   :  { %v2758_v48 = vpack.c.bf16 %v2756_v26, %v2755_v49 }
0x16fb   :  { %v2757_v18 = vpack.c.bf16 %v2754_v11, %v2753_v44 }
0x16fd   :  { %3442 = vmatprep.mubr.msk.bf16.mxu0 %vm1364_vm4, %v2757_v18 }
0x16fe   :  { %3443 = vmatmul.mubr.msk.bf16.vlgmr.msra.gmra.mrb[76].mxu0 %vm1364_vm4, %v2758_v48 }
0x17d1   :  { %v3444_v32 = vpop.f32.mrb[76].mxu0 }
0x17d2   :  { %v2840_v59 = vpop.f32.mrb[77].mxu0  ;;  %v2849_v60 = vadd.f32 %v3444_v32, %v3117_v47 }
0x17d3   :  { %v2841_v37 = vadd.f32 %v3117_v47, %v2840_v59  ;;  %v3445_v15 = vpop.f32.mrb[78].mxu0 }
0x17d4   :  { %v2843_v42 = vpop.f32.mrb[79].mxu0  ;;  %v2852_v0 = vadd.f32 %v3445_v15, %v3117_v47  ;;  %v2857_v46 = vadd.f32 %v2849_v60, %v2669_v61 }
0x17d5   :  { %v2855_v56 = vadd.f32 %v2841_v37, %v2667_v2  ;;  %v2844_v19 = vadd.f32 %v3117_v47, %v2843_v42 }
0x17d6   :  { %v2858_v55 = vadd.f32 %v2852_v0, %v2670_v9  ;;  %v2869_v45 = vsel %vm105_vm0, %v2857_v46, 0.0 }
0x17d7   :  { %v2856_v21 = vadd.f32 %v2844_v19, %v2668_v3  ;;  %v2863_v20 = vsel %vm105_vm0, %v2855_v56, 0.0 }
0x17d8   :  { %2864 = vadd.xlane.f32.xlu1 %v2863_v20  ;;  %v2872_v8 = vsel %vm105_vm0, %v2858_v55, 0.0 }
0x17d9   :  { %v2866_v27 = vsel %vm105_vm0, %v2856_v21, 0.0 }
0x17da   :  { %2867 = vadd.xlane.f32.xlu0 %v2866_v27 }
0x17dc   :  { %2870 = vadd.xlane.f32.xlu1 %v2869_v45 }
0x17de   :  { %2873 = vadd.xlane.f32.xlu0 %v2872_v8 }
0x1865   :  { %v2865_v24 = vpop.xlane.xlu1 %2864 }
0x1866   :  { %v2875_v51 = vmul.f32 0.03125, %v2865_v24 }
0x1867   :  { %v2868_v58 = vpop.xlane.xlu0 %2867 }
0x1868   :  { %v2879_v22 = vsub.f32 %v2855_v56, %v2875_v51  ;;  %v2876_v62 = vmul.f32 0.03125, %v2868_v58 }
0x1869   :  { %v2871_v30 = vpop.xlane.xlu1 %2870 }
0x186a   :  { %v2880_v31 = vsub.f32 %v2856_v21, %v2876_v62  ;;  %v2877_v16 = vmul.f32 0.03125, %v2871_v30  ;;  %v2883_v33 = vmul.f32 %v2879_v22, %v2879_v22 }
0x186b   :  { %v2874_v63 = vpop.xlane.xlu0 %2873 }
0x186c   :  { %v2881_v28 = vsub.f32 %v2857_v46, %v2877_v16  ;;  %v2878_v43 = vmul.f32 0.03125, %v2874_v63  ;;  %v2887_v53 = vsel %vm105_vm0, %v2883_v33, 0.0  ;;  %v2884_v52 = vmul.f32 %v2880_v31, %v2880_v31 }
0x186d   :  { %2888 = vadd.xlane.f32.xlu1 %v2887_v53 }
0x186e   :  { %v2882_v13 = vsub.f32 %v2858_v55, %v2878_v43  ;;  %v2890_v34 = vsel %vm105_vm0, %v2884_v52, 0.0  ;;  %v2885_v35 = vmul.f32 %v2881_v28, %v2881_v28 }
0x186f   :  { %2891 = vadd.xlane.f32.xlu0 %v2890_v34 }
0x1870   :  { %v2893_v14 = vsel %vm105_vm0, %v2885_v35, 0.0  ;;  %v2886_v2 = vmul.f32 %v2882_v13, %v2882_v13 }
0x1871   :  { %2894 = vadd.xlane.f32.xlu1 %v2893_v14 }
0x1872   :  { %v2896_v3 = vsel %vm105_vm0, %v2886_v2, 0.0 }
0x1873   :  { %2897 = vadd.xlane.f32.xlu0 %v2896_v3 }
0x18fa   :  { %v2889_v12 = vpop.xlane.xlu1 %2888 }
0x18fb   :  { %v2899_v25 = vmul.f32 0.03125, %v2889_v12 }
0x18fc   :  { %v2892_v5 = vpop.xlane.xlu0 %2891 }
0x18fd   :  { %v2903_v36 = vadd.f32 1e-05, %v2899_v25  ;;  %v2900_v17 = vmul.f32 0.03125, %v2892_v5 }
0x18fe   :  { %v2895_v6 = vpop.xlane.xlu1 %2894 }
0x18ff   :  { %3643 = vrsqrt.f32 %v2903_v36  ;;  %v2904_v4 = vadd.f32 1e-05, %v2900_v17  ;;  %v2901_v61 = vmul.f32 0.03125, %v2895_v6  ;;  %v3128_v36 = vld [vmem:[%s4515_s12] ss:$0 sm:$0xff]  ;;  %s3018_s12 = sshll.u32 %s3721_s21, 4  ;;  %s3019_s12 = int_to_ptr.vmem [resolvable:$true] %s3018_s12 }
0x1900   :  { %v2898_v9 = vpop.xlane.xlu0 %2897  ;;  %p3686_p9 = scmp.lt.s32.totalorder %s3019_s12, %s3019_s12 }
0x1901   :  { %3645 = vrsqrt.f32 %v2904_v4  ;;  %v2905_v29 = vadd.f32 1e-05, %v2901_v61  ;;  %v2902_v41 = vmul.f32 0.03125, %v2898_v9  ;;  %v3129_v4 = vld [vmem:[%s4516_s13] ss:$0 sm:$0xff]  ;;  %s3681_s13 = scalar_lea.vmem %s3019_s12, 512 }
0x1902   :  { %p3682_p8 = scmp.ne.s32.totalorder %s3019_s12, %s3681_s13  ;;  %p3687_p10 = scmp.lt.s32.totalorder %s3681_s13, %s3681_s13 }
0x1903   :  { %3647 = vrsqrt.f32 %v2905_v29  ;;  %v2906_v38 = vadd.f32 1e-05, %v2902_v41 }
0x1904   :  { %p3688_p11 = por %p3687_p10, %p3686_p9 }
0x1905   :  { %3649 = vrsqrt.f32 %v2906_v38 }
0x1906   :  { %p3689_p12 = pnand %p3688_p11, %p3682_p8 }
0x1909   :  { %v3644_v40 = vpop.eup %3643 }
0x190a   :  { %v2911_v10 = vmul.f32 %v3644_v40, %v2879_v22 }
0x190b   :  { %v3646_v57 = vpop.eup %3645 }
0x190c   :  { %v2921_v39 = vmul.f32 %v3126_v1, %v2911_v10  ;;  %v2912_v7 = vmul.f32 %v3646_v57, %v2880_v31 }
0x190d   :  { %v3648_v50 = vpop.eup %3647 }
0x190e   :  { %v2931_v54 = vadd.f32 %v3127_v23, %v2921_v39  ;;  %v2922_v49 = vmul.f32 %v3126_v1, %v2912_v7  ;;  %v2913_v26 = vmul.f32 %v3648_v50, %v2881_v28 }
0x190f   :  { %v3650_v44 = vpop.eup %3649 }
0x1910   :  { %v2937_v11 = vsel %vm105_vm0, %v2931_v54, 0.0  ;;  %v2932_v48 = vadd.f32 %v3127_v23, %v2922_v49  ;;  %v2923_v18 = vmul.f32 %v3126_v1, %v2913_v26  ;;  %v2914_v47 = vmul.f32 %v3650_v44, %v2882_v13 }
0x1911   :  { %2938 = vadd.xlane.f32.xlu1 %v2937_v11 }
0x1912   :  { %v2940_v32 = vsel %vm105_vm0, %v2932_v48, 0.0  ;;  %v2933_v59 = vadd.f32 %v3127_v23, %v2923_v18  ;;  %v2924_v60 = vmul.f32 %v3126_v1, %v2914_v47 }
0x1913   :  { %2941 = vadd.xlane.f32.xlu0 %v2940_v32 }
0x1914   :  { %v2943_v37 = vsel %vm105_vm0, %v2933_v59, 0.0  ;;  %v2934_v15 = vadd.f32 %v3127_v23, %v2924_v60 }
0x1915   :  { %2944 = vadd.xlane.f32.xlu1 %v2943_v37 }
0x1916   :  { %v2946_v42 = vsel %vm105_vm0, %v2934_v15, 0.0 }
0x1917   :  { %2947 = vadd.xlane.f32.xlu0 %v2946_v42 }
0x199e   :  { %v2939_v56 = vpop.xlane.xlu1 %2938 }
0x199f   :  { %v2949_v0 = vmul.f32 0.03125, %v2939_v56 }
0x19a0   :  { %v2942_v19 = vpop.xlane.xlu0 %2941 }
0x19a1   :  { %v2953_v46 = vsub.f32 %v2931_v54, %v2949_v0  ;;  %v2950_v21 = vmul.f32 0.03125, %v2942_v19 }
0x19a2   :  { %v2945_v20 = vpop.xlane.xlu1 %2944 }
0x19a3   :  { %v2954_v55 = vsub.f32 %v2932_v48, %v2950_v21  ;;  %v2951_v27 = vmul.f32 0.03125, %v2945_v20  ;;  %v2957_v45 = vmul.f32 %v2953_v46, %v2953_v46 }
0x19a4   :  { %v2948_v8 = vpop.xlane.xlu0 %2947 }
0x19a5   :  { %v2955_v24 = vsub.f32 %v2933_v59, %v2951_v27  ;;  %v2952_v51 = vmul.f32 0.03125, %v2948_v8  ;;  %v2961_v58 = vsel %vm105_vm0, %v2957_v45, 0.0  ;;  %v2958_v22 = vmul.f32 %v2954_v55, %v2954_v55 }
0x19a6   :  { %2962 = vadd.xlane.f32.xlu1 %v2961_v58 }
0x19a7   :  { %v2956_v62 = vsub.f32 %v2934_v15, %v2952_v51  ;;  %v2964_v30 = vsel %vm105_vm0, %v2958_v22, 0.0  ;;  %v2959_v31 = vmul.f32 %v2955_v24, %v2955_v24 }
0x19a8   :  { %2965 = vadd.xlane.f32.xlu0 %v2964_v30 }
0x19a9   :  { %v2967_v16 = vsel %vm105_vm0, %v2959_v31, 0.0  ;;  %v2960_v33 = vmul.f32 %v2956_v62, %v2956_v62 }
0x19aa   :  { %2968 = vadd.xlane.f32.xlu1 %v2967_v16 }
0x19ab   :  { %v2970_v63 = vsel %vm105_vm0, %v2960_v33, 0.0 }
0x19ac   :  { %2971 = vadd.xlane.f32.xlu0 %v2970_v63 }
0x1a33   :  { %v2963_v28 = vpop.xlane.xlu1 %2962 }
0x1a34   :  { %v2973_v43 = vmul.f32 0.03125, %v2963_v28 }
0x1a35   :  { %v2966_v53 = vpop.xlane.xlu0 %2965 }
0x1a36   :  { %v2977_v52 = vadd.f32 1e-05, %v2973_v43  ;;  %v2974_v13 = vmul.f32 0.03125, %v2966_v53 }
0x1a37   :  { %v2969_v34 = vpop.xlane.xlu1 %2968 }
0x1a38   :  { %3651 = vrsqrt.f32 %v2977_v52  ;;  %v2978_v35 = vadd.f32 1e-05, %v2974_v13  ;;  %v2975_v14 = vmul.f32 0.03125, %v2969_v34 }
0x1a39   :  { %v2972_v2 = vpop.xlane.xlu0 %2971 }
0x1a3a   :  { %3653 = vrsqrt.f32 %v2978_v35  ;;  %v2979_v3 = vadd.f32 1e-05, %v2975_v14  ;;  %v2976_v12 = vmul.f32 0.03125, %v2972_v2 }
0x1a3c   :  { %3655 = vrsqrt.f32 %v2979_v3  ;;  %v2980_v25 = vadd.f32 1e-05, %v2976_v12 }
0x1a3e   :  { %3657 = vrsqrt.f32 %v2980_v25 }
0x1a42   :  { %v3652_v5 = vpop.eup %3651 }
0x1a43   :  { %v2985_v17 = vmul.f32 %v3652_v5, %v2953_v46 }
0x1a44   :  { %v3654_v6 = vpop.eup %3653 }
0x1a45   :  { %v2995_v61 = vmul.f32 %v3128_v36, %v2985_v17  ;;  %v2986_v9 = vmul.f32 %v3654_v6, %v2954_v55 }
0x1a46   :  { %v3656_v29 = vpop.eup %3655 }
0x1a47   :  { %v3005_v41 = vadd.f32 %v3129_v4, %v2995_v61  ;;  %v2996_v38 = vmul.f32 %v3128_v36, %v2986_v9  ;;  %v2987_v40 = vmul.f32 %v3656_v29, %v2955_v24 }
0x1a48   :  { %v3658_v1 = vpop.eup %3657 }
0x1a49   :  { %3009 = vst.msk [vmem:[#allocation5] sm:$0xff] %vm105_vm0, %v3005_v41  ;;  %v3006_v10 = vadd.f32 %v3129_v4, %v2996_v38  ;;  %v2997_v57 = vmul.f32 %v3128_v36, %v2987_v40  ;;  %v2988_v23 = vmul.f32 %v3658_v1, %v2956_v62 }
0x1a4b   :  { %3010 = vst.msk [vmem:[#allocation5 + $0x8] sm:$0xff] %vm105_vm0, %v3006_v10  ;;  %v3007_v39 = vadd.f32 %v3129_v4, %v2997_v57  ;;  %v2998_v7 = vmul.f32 %v3128_v36, %v2988_v23 }
0x1a4d   :  { %3011 = vst.msk [vmem:[#allocation5 + $0x10] sm:$0xff] %vm105_vm0, %v3007_v39  ;;  %v3008_v50 = vadd.f32 %v3129_v4, %v2998_v7 }
0x1a4f   :  { %3012 = vst.msk [vmem:[#allocation5 + $0x18] sm:$0xff] %vm105_vm0, %v3008_v50 }
0x1a50   :  { %3692 = shalt.err (!%p3689_p12)
}
0x1a51   :  { %s3693_s23 = scalar_lea.hbm %s4517_s14, 512 }
0x1a52   :  { %p3694_p13 = scmp.ne.s32.totalorder %s4517_s14, %s3693_s23  ;;  %p3697_p0 = scmp.lt.u32.totalorder %s3693_s23, %s4517_s14 }
0x1a54   :  { %p3699_p1 = pnand %p3697_p0, %p3694_p13 }
0x1a56   :  { %3702 = shalt.err (!%p3699_p1)
}
0x1a57   :  { %s3722_s16 = smov 128   ;;  %s3723_s17 = smov 8  }
0x1a58   :  { %3024 = dma.vmem_to_hbm [thread:$0]  %s3019_s12, 512, %s4517_s14, [#allocation4], %s3722_s16, %s3722_s16, %s3723_s17  }
0x1a59   :  { %3705 = dma.done.wait [#allocation4], 512  }
0x1a5a   :  { %3706 = vsyncadd [#allocation4], 4294966784 }
0x1a5b   :  { %3028 = vsyncpa [#allocation3], 1 }
0x1a5c   :  { %3029 = vsyncpa [#allocation4], 1 }

</bundles_post_ra>
